<compile_context>
chip_gen: v7x
topology: tpu7x:2x2x1
jax: 0.10.0
libtpu: 0.0.40
codegen_flags: <defaults>
</compile_context>

<pallas_src>
import math

import jax
import jax.numpy as jnp
from jax.experimental import pallas as pl
from jax.experimental.pallas import tpu as pltpu

# ----------------------------- configuration -------------------------------
B = 2            # batch
S = 8            # seq_length
D = 32           # hidden_dim
H = 4            # num_heads
DH = D // H      # head dim
MLP = 64         # mlp_dim
LAYERS = 2       # num_layers
EPS = 1e-6       # LayerNorm eps
HIGHEST = jax.lax.Precision.HIGHEST

# ---- packed K=32 weight slab layout (columns, per layer) ----
QKV_OFF = 0                       # qkv_wt: (D, 3D), Q columns pre-scaled by 1/sqrt(DH)
OUT_OFF = 3 * D                   # out_wt: (D, D)
FC1_OFF = 3 * D + D               # fc1_wt: (D, MLP)
W32_PER_LAYER = FC1_OFF + MLP     # 192 columns per layer
W64_PER_LAYER = D                 # fc2_wt: (MLP, D) -> 32 columns per layer

# ---- packed vector slab layout (rows; every row lane-padded to 128) ----
VEC_W = 128
ROW_POS = 0                       # rows [0, S): positional embedding (S, D)
ROW_L0 = S                        # first per-layer vector row
VPL = 8                           # vectors per layer
R_LN1W, R_LN1B, R_QKVB, R_OUTB, R_LN2W, R_LN2B, R_FC1B, R_FC2B = range(VPL)
ROW_LNF = ROW_L0 + LAYERS * VPL   # final LN: weight row, bias row = ROW_LNF, ROW_LNF+1
N_VEC_ROWS = -(-(ROW_LNF + 2) // 8) * 8   # pad row count to a multiple of 8


# ----------------------------- shared math ---------------------------------
def _layernorm(x, w, b):
    mu = jnp.mean(x, axis=-1, keepdims=True)
    xc = x - mu
    var = jnp.mean(xc * xc, axis=-1, keepdims=True)
    return xc * jax.lax.rsqrt(var + EPS) * w + b


def _gelu_tanh(x):
    # TODO(synk): nn_act is a constructor arg in the PyTorch module; GELU(tanh approx)
    # is used here (exact-erf GELU has no clean Mosaic lowering).
    c = math.sqrt(2.0 / math.pi)
    return 0.5 * x * (1.0 + jnp.tanh(c * (x + 0.044715 * x * x * x)))


# ------------------------------- fused kernel --------------------------------
def encoder_kernel(x_ref, w32_ref, w64_ref, vec_ref, o_ref):
    def vec(row, n):
        # static slice of the packed vector slab -> (1, n); free (no gather).
        return vec_ref[row:row + 1, 0:n]

    def ln(x, wrow):
        return _layernorm(x, vec(wrow, D), vec(wrow + 1, D))

    # positional-embedding add (dropout = identity), flatten batch into rows.
    pos = vec_ref[ROW_POS:ROW_POS + S, 0:D]                   # (S, D)
    x = (x_ref[...] + pos).reshape(B * S, D)                  # (16, 32)

    for l in range(LAYERS):                                   # static unroll
        vb = ROW_L0 + l * VPL
        c32 = l * W32_PER_LAYER
        c64 = l * W64_PER_LAYER

        # --- LN1 + multi-head self-attention --------------------------------
        h = ln(x, vb + R_LN1W)
        qkv = jnp.dot(h, w32_ref[:, c32 + QKV_OFF:c32 + QKV_OFF + 3 * D],
                      preferred_element_type=jnp.float32, precision=HIGHEST)
        qkv = (qkv + vec(vb + R_QKVB, 3 * D)).reshape(B, S, 3 * D)   # (2, 8, 96)

        heads = []
        for hd in range(H):                                   # static unroll over heads
            lo = hd * DH
            qh = qkv[:, :, lo:lo + DH]                        # 1/sqrt(DH) folded into W/bias
            kh = qkv[:, :, D + lo:D + lo + DH]
            vh = qkv[:, :, 2 * D + lo:2 * D + lo + DH]
            # scores, batched over B: 'bqd,bkd->bqk'  -> (B, S, S)
            s = jax.lax.dot_general(qh, kh, (((2,), (2,)), ((0,), (0,))),
                                    preferred_element_type=jnp.float32,
                                    precision=HIGHEST)
            p = jnp.exp(s - jnp.max(s, axis=-1, keepdims=True))
            p = p / jnp.sum(p, axis=-1, keepdims=True)        # exact softmax
            # 'bqk,bkd->bqd' -> (B, S, DH)
            heads.append(jax.lax.dot_general(p, vh, (((2,), (1,)), ((0,), (0,))),
                                             preferred_element_type=jnp.float32,
                                             precision=HIGHEST))

        a = jnp.concatenate(heads, axis=-1).reshape(B * S, D)
        a = jnp.dot(a, w32_ref[:, c32 + OUT_OFF:c32 + OUT_OFF + D],
                    preferred_element_type=jnp.float32, precision=HIGHEST)
        a = a + vec(vb + R_OUTB, D)
        x = x + a                                             # residual (dropout = id)

        # --- LN2 + MLP -------------------------------------------------------
        y = ln(x, vb + R_LN2W)
        y = jnp.dot(y, w32_ref[:, c32 + FC1_OFF:c32 + FC1_OFF + MLP],
                    preferred_element_type=jnp.float32, precision=HIGHEST)
        y = _gelu_tanh(y + vec(vb + R_FC1B, MLP))
        y = jnp.dot(y, w64_ref[:, c64:c64 + D],
                    preferred_element_type=jnp.float32, precision=HIGHEST)
        y = y + vec(vb + R_FC2B, D)
        x = x + y                                             # residual

    # final LayerNorm, single store back as (B, S, D)
    o_ref[...] = ln(x, ROW_LNF).reshape(B, S, D)


# ------------------------------ wrapper --------------------------------------
def encoder_forward(x, w32, w64, vecs):
    # Single invocation, no grid: every operand is one full-array VMEM block
    # (4 prologue DMAs total).
    # TODO(synk): at real ViT sizes (D=768, S=197, MLP=3072) f32 weights are ~28 MiB per
    # layer, which exceeds v7x's 32 MiB default scoped VMEM / 64 MiB physical VMEM.  The
    # scaled version needs a grid axis over layers (dimension_semantics "arbitrary") with
    # per-layer weight streaming (or bf16 + K-blocked BlockSpecs) and an explicit
    # vmem_limit_bytes.  Likewise, with B*S in the hundreds add a "parallel" row-tile grid
    # axis so v7x's second TensorCore is used; at B*S=16 that would be pure overhead.
    in_specs = [pl.BlockSpec(memory_space=pltpu.MemorySpace.VMEM) for _ in range(4)]
    out_specs = pl.BlockSpec(memory_space=pltpu.MemorySpace.VMEM)
    return pl.pallas_call(
        encoder_kernel,
        out_shape=jax.ShapeDtypeStruct((B, S, D), jnp.float32),
        in_specs=in_specs,
        out_specs=out_specs,
    )(x, w32, w64, vecs)


# --------------------------- parameter init ----------------------------------
def init_params(key):
    keys = jax.random.split(key, 1 + LAYERS)
    params = {
        'pos': 0.02 * jax.random.normal(keys[0], (1, S, D), jnp.float32),
        'ln_w': jnp.ones((1, D), jnp.float32),
        'ln_b': jnp.zeros((1, D), jnp.float32),
        'layers': [],
    }
    for i in range(LAYERS):
        ks = jax.random.split(keys[1 + i], 6)

        def xavier(k, fan_in, fan_out, shape):
            lim = math.sqrt(6.0 / (fan_in + fan_out))
            return jax.random.uniform(k, shape, jnp.float32, -lim, lim)

        lp = {
            'ln1_w': jnp.ones((1, D), jnp.float32),
            'ln1_b': jnp.zeros((1, D), jnp.float32),
            # stored pre-transposed so the model computes x @ W^T as x @ Wt;
            # column order is (q|k|v, head-major) so per-head slices are aligned.
            'qkv_wt': xavier(ks[0], D, 3 * D, (D, 3 * D)),
            'qkv_b': jnp.zeros((1, 3 * D), jnp.float32),
            'out_wt': xavier(ks[1], D, D, (D, D)),
            'out_b': jnp.zeros((1, D), jnp.float32),
            'ln2_w': jnp.ones((1, D), jnp.float32),
            'ln2_b': jnp.zeros((1, D), jnp.float32),
            'fc1_wt': xavier(ks[2], D, MLP, (D, MLP)),
            'fc1_b': 1e-6 * jax.random.normal(ks[3], (1, MLP), jnp.float32),
            'fc2_wt': xavier(ks[4], MLP, D, (MLP, D)),
            'fc2_b': 1e-6 * jax.random.normal(ks[5], (1, D), jnp.float32),
        }
        params['layers'].append(lp)
    return params


# --------------------------- operand packing ----------------------------------
def pack_params(params):
    """Pack all weights/vectors into 3 slabs; fold 1/sqrt(DH) into Q weight & bias."""
    scale = 1.0 / math.sqrt(DH)

    w32_cols, w64_cols = [], []
    for lp in params['layers']:
        qkv_wt = lp['qkv_wt'].at[:, 0:D].multiply(scale)      # pre-scale Q columns
        w32_cols += [qkv_wt, lp['out_wt'], lp['fc1_wt']]      # (32,96)+(32,32)+(32,64)
        w64_cols.append(lp['fc2_wt'])                         # (64,32)
    w32 = jnp.concatenate(w32_cols, axis=1)                   # (32, 192*LAYERS)
    w64 = jnp.concatenate(w64_cols, axis=1)                   # (64, 32*LAYERS)

    def pad_row(v):
        v = jnp.asarray(v, jnp.float32).reshape(1, -1)
        return jnp.pad(v, ((0, 0), (0, VEC_W - v.shape[1])))

    rows = [jnp.pad(params['pos'].reshape(S, D), ((0, 0), (0, VEC_W - D)))]
    for lp in params['layers']:
        qkv_b = lp['qkv_b'].at[:, 0:D].multiply(scale)        # pre-scale Q bias
        # order must match R_LN1W..R_FC2B
        rows += [pad_row(lp['ln1_w']), pad_row(lp['ln1_b']), pad_row(qkv_b),
                 pad_row(lp['out_b']), pad_row(lp['ln2_w']), pad_row(lp['ln2_b']),
                 pad_row(lp['fc1_b']), pad_row(lp['fc2_b'])]
    rows += [pad_row(params['ln_w']), pad_row(params['ln_b'])]
    vecs = jnp.concatenate(rows, axis=0)
    vecs = jnp.pad(vecs, ((0, N_VEC_ROWS - vecs.shape[0]), (0, 0)))  # (32, 128)
    return w32, w64, vecs


# --------------------------- pure-JAX reference -------------------------------
def ref_forward(x, params):
    x = x + params['pos']
    for lp in params['layers']:
        h = _layernorm(x, lp['ln1_w'], lp['ln1_b'])
        qkv = jnp.dot(h, lp['qkv_wt'], precision=HIGHEST) + lp['qkv_b']
        q = qkv[..., 0:D].reshape(B, S, H, DH).transpose(0, 2, 1, 3)
        k = qkv[..., D:2 * D].reshape(B, S, H, DH).transpose(0, 2, 1, 3)
        v = qkv[..., 2 * D:3 * D].reshape(B, S, H, DH).transpose(0, 2, 1, 3)
        s = jnp.einsum('bhqd,bhkd->bhqk', q, k, precision=HIGHEST) / math.sqrt(DH)
        p = jax.nn.softmax(s, axis=-1)
        a = jnp.einsum('bhqk,bhkd->bhqd', p, v,
                       precision=HIGHEST).transpose(0, 2, 1, 3).reshape(B, S, D)
        a = jnp.dot(a, lp['out_wt'], precision=HIGHEST) + lp['out_b']
        x = x + a
        y = _layernorm(x, lp['ln2_w'], lp['ln2_b'])
        y = _gelu_tanh(jnp.dot(y, lp['fc1_wt'], precision=HIGHEST) + lp['fc1_b'])
        y = jnp.dot(y, lp['fc2_wt'], precision=HIGHEST) + lp['fc2_b']
        x = x + y
    return _layernorm(x, params['ln_w'], params['ln_b'])


# --------------------------------- main ---------------------------------------
if __name__ == "__main__":
    key = jax.random.PRNGKey(0)
    kx, kp = jax.random.split(key)
    x = jax.random.normal(kx, (B, S, D), jnp.float32)
    params = init_params(kp)

    # Pack once, outside the jitted forward.
    w32, w64, vecs = pack_params(params)

    out = jax.jit(encoder_forward)(x, w32, w64, vecs)
    out = jax.block_until_ready(out)

    ref = ref_forward(x, params)
    assert out.shape == (B, S, D)
    assert bool(jnp.all(jnp.isfinite(out)))
    err = float(jnp.max(jnp.abs(out - ref)))
    # Exact softmax + HIGHEST-precision f32 matmuls on both sides: expected err ~1e-5.
    assert err < 2e-3, f"mismatch vs reference: max abs err {err}"

    # TODO(synk): dropout layers are identity here (inference mode); training-mode
    # dropout would need pltpu.prng_* inside the kernel.
    print("KERNEL_OK")
</pallas_src>

<mosaic_0001>
module attributes {stable_mosaic.version = 11 : i64} {
  func.func @encoder_kernel(%arg0: memref<2x8x32xf32, #tpu.memory_space<vmem>>, %arg1: memref<32x384xf32, #tpu.memory_space<vmem>>, %arg2: memref<64x64xf32, #tpu.memory_space<vmem>>, %arg3: memref<32x128xf32, #tpu.memory_space<vmem>>, %arg4: memref<2x8x32xf32, #tpu.memory_space<vmem>>) attributes {dimension_semantics = [], scalar_prefetch = 0 : i64, scratch_operands = 0 : i64, tpu.core_type = #tpu.core_type<tc>} {
    %c0 = arith.constant 0 : index
    %c0_0 = arith.constant 0 : index
    %0 = vector.load %arg3[%c0, %c0_0] : memref<32x128xf32, #tpu.memory_space<vmem>>, vector<8x32xf32>
    %c0_1 = arith.constant 0 : index
    %c0_2 = arith.constant 0 : index
    %c0_3 = arith.constant 0 : index
    %1 = vector.load %arg0[%c0_1, %c0_2, %c0_3] : memref<2x8x32xf32, #tpu.memory_space<vmem>>, vector<2x8x32xf32>
    %2 = vector.shape_cast %0 : vector<8x32xf32> to vector<1x8x32xf32>
    %3 = vector.broadcast %2 : vector<1x8x32xf32> to vector<2x8x32xf32>
    %4 = arith.addf %1, %3 : vector<2x8x32xf32>
    %5 = vector.shape_cast %4 : vector<2x8x32xf32> to vector<16x32xf32>
    %c8 = arith.constant 8 : index
    %c0_4 = arith.constant 0 : index
    %6 = vector.load %arg3[%c8, %c0_4] : memref<32x128xf32, #tpu.memory_space<vmem>>, vector<1x32xf32>
    %c9 = arith.constant 9 : index
    %c0_5 = arith.constant 0 : index
    %7 = vector.load %arg3[%c9, %c0_5] : memref<32x128xf32, #tpu.memory_space<vmem>>, vector<1x32xf32>
    %cst = arith.constant dense<0.000000e+00> : vector<16xf32>
    %8 = vector.multi_reduction <add>, %5, %cst [1] : vector<16x32xf32> to vector<16xf32>
    %9 = vector.shape_cast %8 : vector<16xf32> to vector<16x1xf32>
    %cst_6 = arith.constant 3.200000e+01 : f32
    %10 = vector.broadcast %cst_6 : f32 to vector<16x1xf32>
    %11 = arith.divf %9, %10 : vector<16x1xf32>
    %12 = vector.broadcast %11 : vector<16x1xf32> to vector<16x32xf32>
    %13 = arith.subf %5, %12 : vector<16x32xf32>
    %14 = arith.mulf %13, %13 : vector<16x32xf32>
    %cst_7 = arith.constant dense<0.000000e+00> : vector<16xf32>
    %15 = vector.multi_reduction <add>, %14, %cst_7 [1] : vector<16x32xf32> to vector<16xf32>
    %16 = vector.shape_cast %15 : vector<16xf32> to vector<16x1xf32>
    %cst_8 = arith.constant 3.200000e+01 : f32
    %17 = vector.broadcast %cst_8 : f32 to vector<16x1xf32>
    %18 = arith.divf %16, %17 : vector<16x1xf32>
    %cst_9 = arith.constant 9.99999997E-7 : f32
    %19 = vector.broadcast %cst_9 : f32 to vector<16x1xf32>
    %20 = arith.addf %18, %19 : vector<16x1xf32>
    %21 = math.rsqrt %20 : vector<16x1xf32>
    %22 = vector.broadcast %21 : vector<16x1xf32> to vector<16x32xf32>
    %23 = arith.mulf %13, %22 : vector<16x32xf32>
    %24 = vector.broadcast %6 : vector<1x32xf32> to vector<16x32xf32>
    %25 = arith.mulf %23, %24 : vector<16x32xf32>
    %26 = vector.broadcast %7 : vector<1x32xf32> to vector<16x32xf32>
    %27 = arith.addf %25, %26 : vector<16x32xf32>
    %c0_10 = arith.constant 0 : index
    %c0_11 = arith.constant 0 : index
    %28 = vector.load %arg1[%c0_10, %c0_11] : memref<32x384xf32, #tpu.memory_space<vmem>>, vector<32x96xf32>
    %cst_12 = arith.constant dense<0.000000e+00> : vector<16x96xf32>
    %29 = tpu.matmul %27, %28, %cst_12 {dimension_numbers = #tpu.dot_dimension_numbers<[1], [0], [0], [1], [0, 0, 1, 1], [], []>, precision = #tpu.contract_precision<fp32>} : vector<16x32xf32>, vector<32x96xf32>, vector<16x96xf32> -> vector<16x96xf32>
    %c10 = arith.constant 10 : index
    %c0_13 = arith.constant 0 : index
    %30 = vector.load %arg3[%c10, %c0_13] : memref<32x128xf32, #tpu.memory_space<vmem>>, vector<1x96xf32>
    %31 = vector.broadcast %30 : vector<1x96xf32> to vector<16x96xf32>
    %32 = arith.addf %29, %31 : vector<16x96xf32>
    %33 = vector.shape_cast %32 : vector<16x96xf32> to vector<2x8x96xf32>
    %34 = vector.extract_strided_slice %33 {offsets = [0, 0, 0], sizes = [2, 8, 8], strides = [1, 1, 1]} : vector<2x8x96xf32> to vector<2x8x8xf32>
    %35 = vector.extract_strided_slice %33 {offsets = [0, 0, 32], sizes = [2, 8, 8], strides = [1, 1, 1]} : vector<2x8x96xf32> to vector<2x8x8xf32>
    %36 = vector.extract_strided_slice %33 {offsets = [0, 0, 64], sizes = [2, 8, 8], strides = [1, 1, 1]} : vector<2x8x96xf32> to vector<2x8x8xf32>
    %cst_14 = arith.constant dense<0.000000e+00> : vector<2x8x8xf32>
    %37 = tpu.matmul %34, %35, %cst_14 {dimension_numbers = #tpu.dot_dimension_numbers<[2], [2], [1], [1], [0, 0, 0, 1, 1, 1], [0], [0]>, precision = #tpu.contract_precision<fp32>} : vector<2x8x8xf32>, vector<2x8x8xf32>, vector<2x8x8xf32> -> vector<2x8x8xf32>
    %cst_15 = arith.constant dense<0xFF800000> : vector<2x8xf32>
    %38 = vector.multi_reduction <maximumf>, %37, %cst_15 [2] : vector<2x8x8xf32> to vector<2x8xf32>
    %39 = vector.shape_cast %38 : vector<2x8xf32> to vector<2x8x1xf32>
    %40 = vector.broadcast %39 : vector<2x8x1xf32> to vector<2x8x8xf32>
    %41 = arith.subf %37, %40 : vector<2x8x8xf32>
    %42 = math.exp %41 : vector<2x8x8xf32>
    %cst_16 = arith.constant dense<0.000000e+00> : vector<2x8xf32>
    %43 = vector.multi_reduction <add>, %42, %cst_16 [2] : vector<2x8x8xf32> to vector<2x8xf32>
    %44 = vector.shape_cast %43 : vector<2x8xf32> to vector<2x8x1xf32>
    %45 = vector.broadcast %44 : vector<2x8x1xf32> to vector<2x8x8xf32>
    %46 = arith.divf %42, %45 : vector<2x8x8xf32>
    %cst_17 = arith.constant dense<0.000000e+00> : vector<2x8x8xf32>
    %47 = tpu.matmul %46, %36, %cst_17 {dimension_numbers = #tpu.dot_dimension_numbers<[2], [1], [1], [2], [0, 0, 0, 1, 1, 2], [0], [0]>, precision = #tpu.contract_precision<fp32>} : vector<2x8x8xf32>, vector<2x8x8xf32>, vector<2x8x8xf32> -> vector<2x8x8xf32>
    %48 = vector.extract_strided_slice %33 {offsets = [0, 0, 8], sizes = [2, 8, 8], strides = [1, 1, 1]} : vector<2x8x96xf32> to vector<2x8x8xf32>
    %49 = vector.extract_strided_slice %33 {offsets = [0, 0, 40], sizes = [2, 8, 8], strides = [1, 1, 1]} : vector<2x8x96xf32> to vector<2x8x8xf32>
    %50 = vector.extract_strided_slice %33 {offsets = [0, 0, 72], sizes = [2, 8, 8], strides = [1, 1, 1]} : vector<2x8x96xf32> to vector<2x8x8xf32>
    %cst_18 = arith.constant dense<0.000000e+00> : vector<2x8x8xf32>
    %51 = tpu.matmul %48, %49, %cst_18 {dimension_numbers = #tpu.dot_dimension_numbers<[2], [2], [1], [1], [0, 0, 0, 1, 1, 1], [0], [0]>, precision = #tpu.contract_precision<fp32>} : vector<2x8x8xf32>, vector<2x8x8xf32>, vector<2x8x8xf32> -> vector<2x8x8xf32>
    %cst_19 = arith.constant dense<0xFF800000> : vector<2x8xf32>
    %52 = vector.multi_reduction <maximumf>, %51, %cst_19 [2] : vector<2x8x8xf32> to vector<2x8xf32>
    %53 = vector.shape_cast %52 : vector<2x8xf32> to vector<2x8x1xf32>
    %54 = vector.broadcast %53 : vector<2x8x1xf32> to vector<2x8x8xf32>
    %55 = arith.subf %51, %54 : vector<2x8x8xf32>
    %56 = math.exp %55 : vector<2x8x8xf32>
    %cst_20 = arith.constant dense<0.000000e+00> : vector<2x8xf32>
    %57 = vector.multi_reduction <add>, %56, %cst_20 [2] : vector<2x8x8xf32> to vector<2x8xf32>
    %58 = vector.shape_cast %57 : vector<2x8xf32> to vector<2x8x1xf32>
    %59 = vector.broadcast %58 : vector<2x8x1xf32> to vector<2x8x8xf32>
    %60 = arith.divf %56, %59 : vector<2x8x8xf32>
    %cst_21 = arith.constant dense<0.000000e+00> : vector<2x8x8xf32>
    %61 = tpu.matmul %60, %50, %cst_21 {dimension_numbers = #tpu.dot_dimension_numbers<[2], [1], [1], [2], [0, 0, 0, 1, 1, 2], [0], [0]>, precision = #tpu.contract_precision<fp32>} : vector<2x8x8xf32>, vector<2x8x8xf32>, vector<2x8x8xf32> -> vector<2x8x8xf32>
    %62 = vector.extract_strided_slice %33 {offsets = [0, 0, 16], sizes = [2, 8, 8], strides = [1, 1, 1]} : vector<2x8x96xf32> to vector<2x8x8xf32>
    %63 = vector.extract_strided_slice %33 {offsets = [0, 0, 48], sizes = [2, 8, 8], strides = [1, 1, 1]} : vector<2x8x96xf32> to vector<2x8x8xf32>
    %64 = vector.extract_strided_slice %33 {offsets = [0, 0, 80], sizes = [2, 8, 8], strides = [1, 1, 1]} : vector<2x8x96xf32> to vector<2x8x8xf32>
    %cst_22 = arith.constant dense<0.000000e+00> : vector<2x8x8xf32>
    %65 = tpu.matmul %62, %63, %cst_22 {dimension_numbers = #tpu.dot_dimension_numbers<[2], [2], [1], [1], [0, 0, 0, 1, 1, 1], [0], [0]>, precision = #tpu.contract_precision<fp32>} : vector<2x8x8xf32>, vector<2x8x8xf32>, vector<2x8x8xf32> -> vector<2x8x8xf32>
    %cst_23 = arith.constant dense<0xFF800000> : vector<2x8xf32>
    %66 = vector.multi_reduction <maximumf>, %65, %cst_23 [2] : vector<2x8x8xf32> to vector<2x8xf32>
    %67 = vector.shape_cast %66 : vector<2x8xf32> to vector<2x8x1xf32>
    %68 = vector.broadcast %67 : vector<2x8x1xf32> to vector<2x8x8xf32>
    %69 = arith.subf %65, %68 : vector<2x8x8xf32>
    %70 = math.exp %69 : vector<2x8x8xf32>
    %cst_24 = arith.constant dense<0.000000e+00> : vector<2x8xf32>
    %71 = vector.multi_reduction <add>, %70, %cst_24 [2] : vector<2x8x8xf32> to vector<2x8xf32>
    %72 = vector.shape_cast %71 : vector<2x8xf32> to vector<2x8x1xf32>
    %73 = vector.broadcast %72 : vector<2x8x1xf32> to vector<2x8x8xf32>
    %74 = arith.divf %70, %73 : vector<2x8x8xf32>
    %cst_25 = arith.constant dense<0.000000e+00> : vector<2x8x8xf32>
    %75 = tpu.matmul %74, %64, %cst_25 {dimension_numbers = #tpu.dot_dimension_numbers<[2], [1], [1], [2], [0, 0, 0, 1, 1, 2], [0], [0]>, precision = #tpu.contract_precision<fp32>} : vector<2x8x8xf32>, vector<2x8x8xf32>, vector<2x8x8xf32> -> vector<2x8x8xf32>
    %76 = vector.extract_strided_slice %33 {offsets = [0, 0, 24], sizes = [2, 8, 8], strides = [1, 1, 1]} : vector<2x8x96xf32> to vector<2x8x8xf32>
    %77 = vector.extract_strided_slice %33 {offsets = [0, 0, 56], sizes = [2, 8, 8], strides = [1, 1, 1]} : vector<2x8x96xf32> to vector<2x8x8xf32>
    %78 = vector.extract_strided_slice %33 {offsets = [0, 0, 88], sizes = [2, 8, 8], strides = [1, 1, 1]} : vector<2x8x96xf32> to vector<2x8x8xf32>
    %cst_26 = arith.constant dense<0.000000e+00> : vector<2x8x8xf32>
    %79 = tpu.matmul %76, %77, %cst_26 {dimension_numbers = #tpu.dot_dimension_numbers<[2], [2], [1], [1], [0, 0, 0, 1, 1, 1], [0], [0]>, precision = #tpu.contract_precision<fp32>} : vector<2x8x8xf32>, vector<2x8x8xf32>, vector<2x8x8xf32> -> vector<2x8x8xf32>
    %cst_27 = arith.constant dense<0xFF800000> : vector<2x8xf32>
    %80 = vector.multi_reduction <maximumf>, %79, %cst_27 [2] : vector<2x8x8xf32> to vector<2x8xf32>
    %81 = vector.shape_cast %80 : vector<2x8xf32> to vector<2x8x1xf32>
    %82 = vector.broadcast %81 : vector<2x8x1xf32> to vector<2x8x8xf32>
    %83 = arith.subf %79, %82 : vector<2x8x8xf32>
    %84 = math.exp %83 : vector<2x8x8xf32>
    %cst_28 = arith.constant dense<0.000000e+00> : vector<2x8xf32>
    %85 = vector.multi_reduction <add>, %84, %cst_28 [2] : vector<2x8x8xf32> to vector<2x8xf32>
    %86 = vector.shape_cast %85 : vector<2x8xf32> to vector<2x8x1xf32>
    %87 = vector.broadcast %86 : vector<2x8x1xf32> to vector<2x8x8xf32>
    %88 = arith.divf %84, %87 : vector<2x8x8xf32>
    %cst_29 = arith.constant dense<0.000000e+00> : vector<2x8x8xf32>
    %89 = tpu.matmul %88, %78, %cst_29 {dimension_numbers = #tpu.dot_dimension_numbers<[2], [1], [1], [2], [0, 0, 0, 1, 1, 2], [0], [0]>, precision = #tpu.contract_precision<fp32>} : vector<2x8x8xf32>, vector<2x8x8xf32>, vector<2x8x8xf32> -> vector<2x8x8xf32>
    %90 = tpu.concatenate %47, %61, %75, %89 in 2 : vector<2x8x8xf32>, vector<2x8x8xf32>, vector<2x8x8xf32>, vector<2x8x8xf32> -> vector<2x8x32xf32>
    %91 = vector.shape_cast %90 : vector<2x8x32xf32> to vector<16x32xf32>
    %c0_30 = arith.constant 0 : index
    %c96 = arith.constant 96 : index
    %92 = vector.load %arg1[%c0_30, %c96] : memref<32x384xf32, #tpu.memory_space<vmem>>, vector<32x32xf32>
    %cst_31 = arith.constant dense<0.000000e+00> : vector<16x32xf32>
    %93 = tpu.matmul %91, %92, %cst_31 {dimension_numbers = #tpu.dot_dimension_numbers<[1], [0], [0], [1], [0, 0, 1, 1], [], []>, precision = #tpu.contract_precision<fp32>} : vector<16x32xf32>, vector<32x32xf32>, vector<16x32xf32> -> vector<16x32xf32>
    %c11 = arith.constant 11 : index
    %c0_32 = arith.constant 0 : index
    %94 = vector.load %arg3[%c11, %c0_32] : memref<32x128xf32, #tpu.memory_space<vmem>>, vector<1x32xf32>
    %95 = vector.broadcast %94 : vector<1x32xf32> to vector<16x32xf32>
    %96 = arith.addf %93, %95 : vector<16x32xf32>
    %97 = arith.addf %5, %96 : vector<16x32xf32>
    %c12 = arith.constant 12 : index
    %c0_33 = arith.constant 0 : index
    %98 = vector.load %arg3[%c12, %c0_33] : memref<32x128xf32, #tpu.memory_space<vmem>>, vector<1x32xf32>
    %c13 = arith.constant 13 : index
    %c0_34 = arith.constant 0 : index
    %99 = vector.load %arg3[%c13, %c0_34] : memref<32x128xf32, #tpu.memory_space<vmem>>, vector<1x32xf32>
    %cst_35 = arith.constant dense<0.000000e+00> : vector<16xf32>
    %100 = vector.multi_reduction <add>, %97, %cst_35 [1] : vector<16x32xf32> to vector<16xf32>
    %101 = vector.shape_cast %100 : vector<16xf32> to vector<16x1xf32>
    %cst_36 = arith.constant 3.200000e+01 : f32
    %102 = vector.broadcast %cst_36 : f32 to vector<16x1xf32>
    %103 = arith.divf %101, %102 : vector<16x1xf32>
    %104 = vector.broadcast %103 : vector<16x1xf32> to vector<16x32xf32>
    %105 = arith.subf %97, %104 : vector<16x32xf32>
    %106 = arith.mulf %105, %105 : vector<16x32xf32>
    %cst_37 = arith.constant dense<0.000000e+00> : vector<16xf32>
    %107 = vector.multi_reduction <add>, %106, %cst_37 [1] : vector<16x32xf32> to vector<16xf32>
    %108 = vector.shape_cast %107 : vector<16xf32> to vector<16x1xf32>
    %cst_38 = arith.constant 3.200000e+01 : f32
    %109 = vector.broadcast %cst_38 : f32 to vector<16x1xf32>
    %110 = arith.divf %108, %109 : vector<16x1xf32>
    %cst_39 = arith.constant 9.99999997E-7 : f32
    %111 = vector.broadcast %cst_39 : f32 to vector<16x1xf32>
    %112 = arith.addf %110, %111 : vector<16x1xf32>
    %113 = math.rsqrt %112 : vector<16x1xf32>
    %114 = vector.broadcast %113 : vector<16x1xf32> to vector<16x32xf32>
    %115 = arith.mulf %105, %114 : vector<16x32xf32>
    %116 = vector.broadcast %98 : vector<1x32xf32> to vector<16x32xf32>
    %117 = arith.mulf %115, %116 : vector<16x32xf32>
    %118 = vector.broadcast %99 : vector<1x32xf32> to vector<16x32xf32>
    %119 = arith.addf %117, %118 : vector<16x32xf32>
    %c0_40 = arith.constant 0 : index
    %c128 = arith.constant 128 : index
    %120 = vector.load %arg1[%c0_40, %c128] : memref<32x384xf32, #tpu.memory_space<vmem>>, vector<32x64xf32>
    %cst_41 = arith.constant dense<0.000000e+00> : vector<16x64xf32>
    %121 = tpu.matmul %119, %120, %cst_41 {dimension_numbers = #tpu.dot_dimension_numbers<[1], [0], [0], [1], [0, 0, 1, 1], [], []>, precision = #tpu.contract_precision<fp32>} : vector<16x32xf32>, vector<32x64xf32>, vector<16x64xf32> -> vector<16x64xf32>
    %c14 = arith.constant 14 : index
    %c0_42 = arith.constant 0 : index
    %122 = vector.load %arg3[%c14, %c0_42] : memref<32x128xf32, #tpu.memory_space<vmem>>, vector<1x64xf32>
    %123 = vector.broadcast %122 : vector<1x64xf32> to vector<16x64xf32>
    %124 = arith.addf %121, %123 : vector<16x64xf32>
    %cst_43 = arith.constant 5.000000e-01 : f32
    %125 = vector.broadcast %cst_43 : f32 to vector<16x64xf32>
    %126 = arith.mulf %125, %124 : vector<16x64xf32>
    %cst_44 = arith.constant 4.471500e-02 : f32
    %127 = vector.broadcast %cst_44 : f32 to vector<16x64xf32>
    %128 = arith.mulf %127, %124 : vector<16x64xf32>
    %129 = arith.mulf %128, %124 : vector<16x64xf32>
    %130 = arith.mulf %129, %124 : vector<16x64xf32>
    %131 = arith.addf %124, %130 : vector<16x64xf32>
    %cst_45 = arith.constant 0.797884583 : f32
    %132 = vector.broadcast %cst_45 : f32 to vector<16x64xf32>
    %133 = arith.mulf %132, %131 : vector<16x64xf32>
    %134 = math.tanh %133 : vector<16x64xf32>
    %cst_46 = arith.constant 1.000000e+00 : f32
    %135 = vector.broadcast %cst_46 : f32 to vector<16x64xf32>
    %136 = arith.addf %135, %134 : vector<16x64xf32>
    %137 = arith.mulf %126, %136 : vector<16x64xf32>
    %c0_47 = arith.constant 0 : index
    %c0_48 = arith.constant 0 : index
    %138 = vector.load %arg2[%c0_47, %c0_48] : memref<64x64xf32, #tpu.memory_space<vmem>>, vector<64x32xf32>
    %cst_49 = arith.constant dense<0.000000e+00> : vector<16x32xf32>
    %139 = tpu.matmul %137, %138, %cst_49 {dimension_numbers = #tpu.dot_dimension_numbers<[1], [0], [0], [1], [0, 0, 1, 1], [], []>, precision = #tpu.contract_precision<fp32>} : vector<16x64xf32>, vector<64x32xf32>, vector<16x32xf32> -> vector<16x32xf32>
    %c15 = arith.constant 15 : index
    %c0_50 = arith.constant 0 : index
    %140 = vector.load %arg3[%c15, %c0_50] : memref<32x128xf32, #tpu.memory_space<vmem>>, vector<1x32xf32>
    %141 = vector.broadcast %140 : vector<1x32xf32> to vector<16x32xf32>
    %142 = arith.addf %139, %141 : vector<16x32xf32>
    %143 = arith.addf %97, %142 : vector<16x32xf32>
    %c16 = arith.constant 16 : index
    %c0_51 = arith.constant 0 : index
    %144 = vector.load %arg3[%c16, %c0_51] : memref<32x128xf32, #tpu.memory_space<vmem>>, vector<1x32xf32>
    %c17 = arith.constant 17 : index
    %c0_52 = arith.constant 0 : index
    %145 = vector.load %arg3[%c17, %c0_52] : memref<32x128xf32, #tpu.memory_space<vmem>>, vector<1x32xf32>
    %cst_53 = arith.constant dense<0.000000e+00> : vector<16xf32>
    %146 = vector.multi_reduction <add>, %143, %cst_53 [1] : vector<16x32xf32> to vector<16xf32>
    %147 = vector.shape_cast %146 : vector<16xf32> to vector<16x1xf32>
    %cst_54 = arith.constant 3.200000e+01 : f32
    %148 = vector.broadcast %cst_54 : f32 to vector<16x1xf32>
    %149 = arith.divf %147, %148 : vector<16x1xf32>
    %150 = vector.broadcast %149 : vector<16x1xf32> to vector<16x32xf32>
    %151 = arith.subf %143, %150 : vector<16x32xf32>
    %152 = arith.mulf %151, %151 : vector<16x32xf32>
    %cst_55 = arith.constant dense<0.000000e+00> : vector<16xf32>
    %153 = vector.multi_reduction <add>, %152, %cst_55 [1] : vector<16x32xf32> to vector<16xf32>
    %154 = vector.shape_cast %153 : vector<16xf32> to vector<16x1xf32>
    %cst_56 = arith.constant 3.200000e+01 : f32
    %155 = vector.broadcast %cst_56 : f32 to vector<16x1xf32>
    %156 = arith.divf %154, %155 : vector<16x1xf32>
    %cst_57 = arith.constant 9.99999997E-7 : f32
    %157 = vector.broadcast %cst_57 : f32 to vector<16x1xf32>
    %158 = arith.addf %156, %157 : vector<16x1xf32>
    %159 = math.rsqrt %158 : vector<16x1xf32>
    %160 = vector.broadcast %159 : vector<16x1xf32> to vector<16x32xf32>
    %161 = arith.mulf %151, %160 : vector<16x32xf32>
    %162 = vector.broadcast %144 : vector<1x32xf32> to vector<16x32xf32>
    %163 = arith.mulf %161, %162 : vector<16x32xf32>
    %164 = vector.broadcast %145 : vector<1x32xf32> to vector<16x32xf32>
    %165 = arith.addf %163, %164 : vector<16x32xf32>
    %c0_58 = arith.constant 0 : index
    %c192 = arith.constant 192 : index
    %166 = vector.load %arg1[%c0_58, %c192] : memref<32x384xf32, #tpu.memory_space<vmem>>, vector<32x96xf32>
    %cst_59 = arith.constant dense<0.000000e+00> : vector<16x96xf32>
    %167 = tpu.matmul %165, %166, %cst_59 {dimension_numbers = #tpu.dot_dimension_numbers<[1], [0], [0], [1], [0, 0, 1, 1], [], []>, precision = #tpu.contract_precision<fp32>} : vector<16x32xf32>, vector<32x96xf32>, vector<16x96xf32> -> vector<16x96xf32>
    %c18 = arith.constant 18 : index
    %c0_60 = arith.constant 0 : index
    %168 = vector.load %arg3[%c18, %c0_60] : memref<32x128xf32, #tpu.memory_space<vmem>>, vector<1x96xf32>
    %169 = vector.broadcast %168 : vector<1x96xf32> to vector<16x96xf32>
    %170 = arith.addf %167, %169 : vector<16x96xf32>
    %171 = vector.shape_cast %170 : vector<16x96xf32> to vector<2x8x96xf32>
    %172 = vector.extract_strided_slice %171 {offsets = [0, 0, 0], sizes = [2, 8, 8], strides = [1, 1, 1]} : vector<2x8x96xf32> to vector<2x8x8xf32>
    %173 = vector.extract_strided_slice %171 {offsets = [0, 0, 32], sizes = [2, 8, 8], strides = [1, 1, 1]} : vector<2x8x96xf32> to vector<2x8x8xf32>
    %174 = vector.extract_strided_slice %171 {offsets = [0, 0, 64], sizes = [2, 8, 8], strides = [1, 1, 1]} : vector<2x8x96xf32> to vector<2x8x8xf32>
    %cst_61 = arith.constant dense<0.000000e+00> : vector<2x8x8xf32>
    %175 = tpu.matmul %172, %173, %cst_61 {dimension_numbers = #tpu.dot_dimension_numbers<[2], [2], [1], [1], [0, 0, 0, 1, 1, 1], [0], [0]>, precision = #tpu.contract_precision<fp32>} : vector<2x8x8xf32>, vector<2x8x8xf32>, vector<2x8x8xf32> -> vector<2x8x8xf32>
    %cst_62 = arith.constant dense<0xFF800000> : vector<2x8xf32>
    %176 = vector.multi_reduction <maximumf>, %175, %cst_62 [2] : vector<2x8x8xf32> to vector<2x8xf32>
    %177 = vector.shape_cast %176 : vector<2x8xf32> to vector<2x8x1xf32>
    %178 = vector.broadcast %177 : vector<2x8x1xf32> to vector<2x8x8xf32>
    %179 = arith.subf %175, %178 : vector<2x8x8xf32>
    %180 = math.exp %179 : vector<2x8x8xf32>
    %cst_63 = arith.constant dense<0.000000e+00> : vector<2x8xf32>
    %181 = vector.multi_reduction <add>, %180, %cst_63 [2] : vector<2x8x8xf32> to vector<2x8xf32>
    %182 = vector.shape_cast %181 : vector<2x8xf32> to vector<2x8x1xf32>
    %183 = vector.broadcast %182 : vector<2x8x1xf32> to vector<2x8x8xf32>
    %184 = arith.divf %180, %183 : vector<2x8x8xf32>
    %cst_64 = arith.constant dense<0.000000e+00> : vector<2x8x8xf32>
    %185 = tpu.matmul %184, %174, %cst_64 {dimension_numbers = #tpu.dot_dimension_numbers<[2], [1], [1], [2], [0, 0, 0, 1, 1, 2], [0], [0]>, precision = #tpu.contract_precision<fp32>} : vector<2x8x8xf32>, vector<2x8x8xf32>, vector<2x8x8xf32> -> vector<2x8x8xf32>
    %186 = vector.extract_strided_slice %171 {offsets = [0, 0, 8], sizes = [2, 8, 8], strides = [1, 1, 1]} : vector<2x8x96xf32> to vector<2x8x8xf32>
    %187 = vector.extract_strided_slice %171 {offsets = [0, 0, 40], sizes = [2, 8, 8], strides = [1, 1, 1]} : vector<2x8x96xf32> to vector<2x8x8xf32>
    %188 = vector.extract_strided_slice %171 {offsets = [0, 0, 72], sizes = [2, 8, 8], strides = [1, 1, 1]} : vector<2x8x96xf32> to vector<2x8x8xf32>
    %cst_65 = arith.constant dense<0.000000e+00> : vector<2x8x8xf32>
    %189 = tpu.matmul %186, %187, %cst_65 {dimension_numbers = #tpu.dot_dimension_numbers<[2], [2], [1], [1], [0, 0, 0, 1, 1, 1], [0], [0]>, precision = #tpu.contract_precision<fp32>} : vector<2x8x8xf32>, vector<2x8x8xf32>, vector<2x8x8xf32> -> vector<2x8x8xf32>
    %cst_66 = arith.constant dense<0xFF800000> : vector<2x8xf32>
    %190 = vector.multi_reduction <maximumf>, %189, %cst_66 [2] : vector<2x8x8xf32> to vector<2x8xf32>
    %191 = vector.shape_cast %190 : vector<2x8xf32> to vector<2x8x1xf32>
    %192 = vector.broadcast %191 : vector<2x8x1xf32> to vector<2x8x8xf32>
    %193 = arith.subf %189, %192 : vector<2x8x8xf32>
    %194 = math.exp %193 : vector<2x8x8xf32>
    %cst_67 = arith.constant dense<0.000000e+00> : vector<2x8xf32>
    %195 = vector.multi_reduction <add>, %194, %cst_67 [2] : vector<2x8x8xf32> to vector<2x8xf32>
    %196 = vector.shape_cast %195 : vector<2x8xf32> to vector<2x8x1xf32>
    %197 = vector.broadcast %196 : vector<2x8x1xf32> to vector<2x8x8xf32>
    %198 = arith.divf %194, %197 : vector<2x8x8xf32>
    %cst_68 = arith.constant dense<0.000000e+00> : vector<2x8x8xf32>
    %199 = tpu.matmul %198, %188, %cst_68 {dimension_numbers = #tpu.dot_dimension_numbers<[2], [1], [1], [2], [0, 0, 0, 1, 1, 2], [0], [0]>, precision = #tpu.contract_precision<fp32>} : vector<2x8x8xf32>, vector<2x8x8xf32>, vector<2x8x8xf32> -> vector<2x8x8xf32>
    %200 = vector.extract_strided_slice %171 {offsets = [0, 0, 16], sizes = [2, 8, 8], strides = [1, 1, 1]} : vector<2x8x96xf32> to vector<2x8x8xf32>
    %201 = vector.extract_strided_slice %171 {offsets = [0, 0, 48], sizes = [2, 8, 8], strides = [1, 1, 1]} : vector<2x8x96xf32> to vector<2x8x8xf32>
    %202 = vector.extract_strided_slice %171 {offsets = [0, 0, 80], sizes = [2, 8, 8], strides = [1, 1, 1]} : vector<2x8x96xf32> to vector<2x8x8xf32>
    %cst_69 = arith.constant dense<0.000000e+00> : vector<2x8x8xf32>
    %203 = tpu.matmul %200, %201, %cst_69 {dimension_numbers = #tpu.dot_dimension_numbers<[2], [2], [1], [1], [0, 0, 0, 1, 1, 1], [0], [0]>, precision = #tpu.contract_precision<fp32>} : vector<2x8x8xf32>, vector<2x8x8xf32>, vector<2x8x8xf32> -> vector<2x8x8xf32>
    %cst_70 = arith.constant dense<0xFF800000> : vector<2x8xf32>
    %204 = vector.multi_reduction <maximumf>, %203, %cst_70 [2] : vector<2x8x8xf32> to vector<2x8xf32>
    %205 = vector.shape_cast %204 : vector<2x8xf32> to vector<2x8x1xf32>
    %206 = vector.broadcast %205 : vector<2x8x1xf32> to vector<2x8x8xf32>
    %207 = arith.subf %203, %206 : vector<2x8x8xf32>
    %208 = math.exp %207 : vector<2x8x8xf32>
    %cst_71 = arith.constant dense<0.000000e+00> : vector<2x8xf32>
    %209 = vector.multi_reduction <add>, %208, %cst_71 [2] : vector<2x8x8xf32> to vector<2x8xf32>
    %210 = vector.shape_cast %209 : vector<2x8xf32> to vector<2x8x1xf32>
    %211 = vector.broadcast %210 : vector<2x8x1xf32> to vector<2x8x8xf32>
    %212 = arith.divf %208, %211 : vector<2x8x8xf32>
    %cst_72 = arith.constant dense<0.000000e+00> : vector<2x8x8xf32>
    %213 = tpu.matmul %212, %202, %cst_72 {dimension_numbers = #tpu.dot_dimension_numbers<[2], [1], [1], [2], [0, 0, 0, 1, 1, 2], [0], [0]>, precision = #tpu.contract_precision<fp32>} : vector<2x8x8xf32>, vector<2x8x8xf32>, vector<2x8x8xf32> -> vector<2x8x8xf32>
    %214 = vector.extract_strided_slice %171 {offsets = [0, 0, 24], sizes = [2, 8, 8], strides = [1, 1, 1]} : vector<2x8x96xf32> to vector<2x8x8xf32>
    %215 = vector.extract_strided_slice %171 {offsets = [0, 0, 56], sizes = [2, 8, 8], strides = [1, 1, 1]} : vector<2x8x96xf32> to vector<2x8x8xf32>
    %216 = vector.extract_strided_slice %171 {offsets = [0, 0, 88], sizes = [2, 8, 8], strides = [1, 1, 1]} : vector<2x8x96xf32> to vector<2x8x8xf32>
    %cst_73 = arith.constant dense<0.000000e+00> : vector<2x8x8xf32>
    %217 = tpu.matmul %214, %215, %cst_73 {dimension_numbers = #tpu.dot_dimension_numbers<[2], [2], [1], [1], [0, 0, 0, 1, 1, 1], [0], [0]>, precision = #tpu.contract_precision<fp32>} : vector<2x8x8xf32>, vector<2x8x8xf32>, vector<2x8x8xf32> -> vector<2x8x8xf32>
    %cst_74 = arith.constant dense<0xFF800000> : vector<2x8xf32>
    %218 = vector.multi_reduction <maximumf>, %217, %cst_74 [2] : vector<2x8x8xf32> to vector<2x8xf32>
    %219 = vector.shape_cast %218 : vector<2x8xf32> to vector<2x8x1xf32>
    %220 = vector.broadcast %219 : vector<2x8x1xf32> to vector<2x8x8xf32>
    %221 = arith.subf %217, %220 : vector<2x8x8xf32>
    %222 = math.exp %221 : vector<2x8x8xf32>
    %cst_75 = arith.constant dense<0.000000e+00> : vector<2x8xf32>
    %223 = vector.multi_reduction <add>, %222, %cst_75 [2] : vector<2x8x8xf32> to vector<2x8xf32>
    %224 = vector.shape_cast %223 : vector<2x8xf32> to vector<2x8x1xf32>
    %225 = vector.broadcast %224 : vector<2x8x1xf32> to vector<2x8x8xf32>
    %226 = arith.divf %222, %225 : vector<2x8x8xf32>
    %cst_76 = arith.constant dense<0.000000e+00> : vector<2x8x8xf32>
    %227 = tpu.matmul %226, %216, %cst_76 {dimension_numbers = #tpu.dot_dimension_numbers<[2], [1], [1], [2], [0, 0, 0, 1, 1, 2], [0], [0]>, precision = #tpu.contract_precision<fp32>} : vector<2x8x8xf32>, vector<2x8x8xf32>, vector<2x8x8xf32> -> vector<2x8x8xf32>
    %228 = tpu.concatenate %185, %199, %213, %227 in 2 : vector<2x8x8xf32>, vector<2x8x8xf32>, vector<2x8x8xf32>, vector<2x8x8xf32> -> vector<2x8x32xf32>
    %229 = vector.shape_cast %228 : vector<2x8x32xf32> to vector<16x32xf32>
    %c0_77 = arith.constant 0 : index
    %c288 = arith.constant 288 : index
    %230 = vector.load %arg1[%c0_77, %c288] : memref<32x384xf32, #tpu.memory_space<vmem>>, vector<32x32xf32>
    %cst_78 = arith.constant dense<0.000000e+00> : vector<16x32xf32>
    %231 = tpu.matmul %229, %230, %cst_78 {dimension_numbers = #tpu.dot_dimension_numbers<[1], [0], [0], [1], [0, 0, 1, 1], [], []>, precision = #tpu.contract_precision<fp32>} : vector<16x32xf32>, vector<32x32xf32>, vector<16x32xf32> -> vector<16x32xf32>
    %c19 = arith.constant 19 : index
    %c0_79 = arith.constant 0 : index
    %232 = vector.load %arg3[%c19, %c0_79] : memref<32x128xf32, #tpu.memory_space<vmem>>, vector<1x32xf32>
    %233 = vector.broadcast %232 : vector<1x32xf32> to vector<16x32xf32>
    %234 = arith.addf %231, %233 : vector<16x32xf32>
    %235 = arith.addf %143, %234 : vector<16x32xf32>
    %c20 = arith.constant 20 : index
    %c0_80 = arith.constant 0 : index
    %236 = vector.load %arg3[%c20, %c0_80] : memref<32x128xf32, #tpu.memory_space<vmem>>, vector<1x32xf32>
    %c21 = arith.constant 21 : index
    %c0_81 = arith.constant 0 : index
    %237 = vector.load %arg3[%c21, %c0_81] : memref<32x128xf32, #tpu.memory_space<vmem>>, vector<1x32xf32>
    %cst_82 = arith.constant dense<0.000000e+00> : vector<16xf32>
    %238 = vector.multi_reduction <add>, %235, %cst_82 [1] : vector<16x32xf32> to vector<16xf32>
    %239 = vector.shape_cast %238 : vector<16xf32> to vector<16x1xf32>
    %cst_83 = arith.constant 3.200000e+01 : f32
    %240 = vector.broadcast %cst_83 : f32 to vector<16x1xf32>
    %241 = arith.divf %239, %240 : vector<16x1xf32>
    %242 = vector.broadcast %241 : vector<16x1xf32> to vector<16x32xf32>
    %243 = arith.subf %235, %242 : vector<16x32xf32>
    %244 = arith.mulf %243, %243 : vector<16x32xf32>
    %cst_84 = arith.constant dense<0.000000e+00> : vector<16xf32>
    %245 = vector.multi_reduction <add>, %244, %cst_84 [1] : vector<16x32xf32> to vector<16xf32>
    %246 = vector.shape_cast %245 : vector<16xf32> to vector<16x1xf32>
    %cst_85 = arith.constant 3.200000e+01 : f32
    %247 = vector.broadcast %cst_85 : f32 to vector<16x1xf32>
    %248 = arith.divf %246, %247 : vector<16x1xf32>
    %cst_86 = arith.constant 9.99999997E-7 : f32
    %249 = vector.broadcast %cst_86 : f32 to vector<16x1xf32>
    %250 = arith.addf %248, %249 : vector<16x1xf32>
    %251 = math.rsqrt %250 : vector<16x1xf32>
    %252 = vector.broadcast %251 : vector<16x1xf32> to vector<16x32xf32>
    %253 = arith.mulf %243, %252 : vector<16x32xf32>
    %254 = vector.broadcast %236 : vector<1x32xf32> to vector<16x32xf32>
    %255 = arith.mulf %253, %254 : vector<16x32xf32>
    %256 = vector.broadcast %237 : vector<1x32xf32> to vector<16x32xf32>
    %257 = arith.addf %255, %256 : vector<16x32xf32>
    %c0_87 = arith.constant 0 : index
    %c320 = arith.constant 320 : index
    %258 = vector.load %arg1[%c0_87, %c320] : memref<32x384xf32, #tpu.memory_space<vmem>>, vector<32x64xf32>
    %cst_88 = arith.constant dense<0.000000e+00> : vector<16x64xf32>
    %259 = tpu.matmul %257, %258, %cst_88 {dimension_numbers = #tpu.dot_dimension_numbers<[1], [0], [0], [1], [0, 0, 1, 1], [], []>, precision = #tpu.contract_precision<fp32>} : vector<16x32xf32>, vector<32x64xf32>, vector<16x64xf32> -> vector<16x64xf32>
    %c22 = arith.constant 22 : index
    %c0_89 = arith.constant 0 : index
    %260 = vector.load %arg3[%c22, %c0_89] : memref<32x128xf32, #tpu.memory_space<vmem>>, vector<1x64xf32>
    %261 = vector.broadcast %260 : vector<1x64xf32> to vector<16x64xf32>
    %262 = arith.addf %259, %261 : vector<16x64xf32>
    %cst_90 = arith.constant 5.000000e-01 : f32
    %263 = vector.broadcast %cst_90 : f32 to vector<16x64xf32>
    %264 = arith.mulf %263, %262 : vector<16x64xf32>
    %cst_91 = arith.constant 4.471500e-02 : f32
    %265 = vector.broadcast %cst_91 : f32 to vector<16x64xf32>
    %266 = arith.mulf %265, %262 : vector<16x64xf32>
    %267 = arith.mulf %266, %262 : vector<16x64xf32>
    %268 = arith.mulf %267, %262 : vector<16x64xf32>
    %269 = arith.addf %262, %268 : vector<16x64xf32>
    %cst_92 = arith.constant 0.797884583 : f32
    %270 = vector.broadcast %cst_92 : f32 to vector<16x64xf32>
    %271 = arith.mulf %270, %269 : vector<16x64xf32>
    %272 = math.tanh %271 : vector<16x64xf32>
    %cst_93 = arith.constant 1.000000e+00 : f32
    %273 = vector.broadcast %cst_93 : f32 to vector<16x64xf32>
    %274 = arith.addf %273, %272 : vector<16x64xf32>
    %275 = arith.mulf %264, %274 : vector<16x64xf32>
    %c0_94 = arith.constant 0 : index
    %c32 = arith.constant 32 : index
    %276 = vector.load %arg2[%c0_94, %c32] : memref<64x64xf32, #tpu.memory_space<vmem>>, vector<64x32xf32>
    %cst_95 = arith.constant dense<0.000000e+00> : vector<16x32xf32>
    %277 = tpu.matmul %275, %276, %cst_95 {dimension_numbers = #tpu.dot_dimension_numbers<[1], [0], [0], [1], [0, 0, 1, 1], [], []>, precision = #tpu.contract_precision<fp32>} : vector<16x64xf32>, vector<64x32xf32>, vector<16x32xf32> -> vector<16x32xf32>
    %c23 = arith.constant 23 : index
    %c0_96 = arith.constant 0 : index
    %278 = vector.load %arg3[%c23, %c0_96] : memref<32x128xf32, #tpu.memory_space<vmem>>, vector<1x32xf32>
    %279 = vector.broadcast %278 : vector<1x32xf32> to vector<16x32xf32>
    %280 = arith.addf %277, %279 : vector<16x32xf32>
    %281 = arith.addf %235, %280 : vector<16x32xf32>
    %c24 = arith.constant 24 : index
    %c0_97 = arith.constant 0 : index
    %282 = vector.load %arg3[%c24, %c0_97] : memref<32x128xf32, #tpu.memory_space<vmem>>, vector<1x32xf32>
    %c25 = arith.constant 25 : index
    %c0_98 = arith.constant 0 : index
    %283 = vector.load %arg3[%c25, %c0_98] : memref<32x128xf32, #tpu.memory_space<vmem>>, vector<1x32xf32>
    %cst_99 = arith.constant dense<0.000000e+00> : vector<16xf32>
    %284 = vector.multi_reduction <add>, %281, %cst_99 [1] : vector<16x32xf32> to vector<16xf32>
    %285 = vector.shape_cast %284 : vector<16xf32> to vector<16x1xf32>
    %cst_100 = arith.constant 3.200000e+01 : f32
    %286 = vector.broadcast %cst_100 : f32 to vector<16x1xf32>
    %287 = arith.divf %285, %286 : vector<16x1xf32>
    %288 = vector.broadcast %287 : vector<16x1xf32> to vector<16x32xf32>
    %289 = arith.subf %281, %288 : vector<16x32xf32>
    %290 = arith.mulf %289, %289 : vector<16x32xf32>
    %cst_101 = arith.constant dense<0.000000e+00> : vector<16xf32>
    %291 = vector.multi_reduction <add>, %290, %cst_101 [1] : vector<16x32xf32> to vector<16xf32>
    %292 = vector.shape_cast %291 : vector<16xf32> to vector<16x1xf32>
    %cst_102 = arith.constant 3.200000e+01 : f32
    %293 = vector.broadcast %cst_102 : f32 to vector<16x1xf32>
    %294 = arith.divf %292, %293 : vector<16x1xf32>
    %cst_103 = arith.constant 9.99999997E-7 : f32
    %295 = vector.broadcast %cst_103 : f32 to vector<16x1xf32>
    %296 = arith.addf %294, %295 : vector<16x1xf32>
    %297 = math.rsqrt %296 : vector<16x1xf32>
    %298 = vector.broadcast %297 : vector<16x1xf32> to vector<16x32xf32>
    %299 = arith.mulf %289, %298 : vector<16x32xf32>
    %300 = vector.broadcast %282 : vector<1x32xf32> to vector<16x32xf32>
    %301 = arith.mulf %299, %300 : vector<16x32xf32>
    %302 = vector.broadcast %283 : vector<1x32xf32> to vector<16x32xf32>
    %303 = arith.addf %301, %302 : vector<16x32xf32>
    %304 = vector.shape_cast %303 : vector<16x32xf32> to vector<2x8x32xf32>
    %c0_104 = arith.constant 0 : index
    %c0_105 = arith.constant 0 : index
    %c0_106 = arith.constant 0 : index
    %305 = vector.load %arg4[%c0_104, %c0_105, %c0_106] : memref<2x8x32xf32, #tpu.memory_space<vmem>>, vector<2x8x32xf32>
    tpu.vector_store %arg4[%c0_104, %c0_105, %c0_106], %304 {strides = array<i32>} : memref<2x8x32xf32, #tpu.memory_space<vmem>>, vector<2x8x32xf32>,
    return
  }
}

</mosaic_0001>

<bundles_post_ra>
// kernel: encoder_forward.1
= control target key start
LH: loop header
LB: loop body
LE: loop exit
PB: predicated region body
PF: predicated region fallthrough
CT: control target
= control target key end

     0   :  { %9 = vsyncpa [#allocation3], 0  ;;  %s24669_s0 = inlined_call_operand.hbm [shape: f32[2,8,32], index: 0, kind: input, shape index: {}]   ;;  %s24670_s1 = inlined_call_operand.hbm [shape: f32[32,384], index: 1, kind: input, shape index: {}]   ;;  %s24671_s2 = inlined_call_operand.hbm [shape: f32[64,64], index: 2, kind: input, shape index: {}]   ;;  %s24672_s3 = inlined_call_operand.hbm [shape: f32[32,128], index: 3, kind: input, shape index: {}]   ;;  %s24673_s4 = inlined_call_operand.hbm [shape: f32[2,8,32], index: 4, kind: output, shape index: {}]  }
   0x1   :  { %10 = vsyncpa [#allocation6], 0 }
   0x2   :  { %11 = vsyncpa [#allocation9], 0 }
   0x3   :  { %12 = vsyncpa [#allocation4], 0  ;;  %s23081_s15 = smov [#allocation5]   ;;  %s22963_s19 = scalar_lea.hbm %s24670_s1, 1536 }
   0x4   :  { %s30_s16 = sshll.u32 %s23081_s15, 4  ;;  %p22964_p0 = scmp.ne.s32.totalorder %s24670_s1, %s22963_s19  ;;  %s31_s16 = int_to_ptr.vmem [resolvable:$true] %s30_s16 }
   0x5   :  { %p22967_p1 = scmp.lt.u32.totalorder %s22963_s19, %s24670_s1 }
   0x7   :  { %p22969_p2 = pnand %p22967_p1, %p22964_p0 }
   0x9   :  { %22972 = shalt.err (!%p22969_p2)
}
   0xa   :  { %s22973_s24 = scalar_lea.vmem %s31_s16, 1536  ;;  %p22978_p4 = scmp.lt.s32.totalorder %s31_s16, %s31_s16 }
   0xb   :  { %p22974_p3 = scmp.ne.s32.totalorder %s31_s16, %s22973_s24  ;;  %p22979_p5 = scmp.lt.s32.totalorder %s22973_s24, %s22973_s24 }
   0xd   :  { %p22980_p6 = por %p22979_p5, %p22978_p4 }
   0xf   :  { %p22981_p7 = pnand %p22980_p6, %p22974_p3 }
  0x11   :  { %22984 = shalt.err (!%p22981_p7)
}
  0x12   :  { %s23082_s25 = smov 384   ;;  %s23083_s26 = smov 24  }
  0x13   :  { %36 = dma.hbm_to_vmem [thread:$0]  %s24670_s1, 1536, %s31_s16, [#allocation6], %s23082_s25, %s23082_s25, %s23083_s26  }
  0x14   :  { %s23084_s29 = smov [#allocation2]   ;;  %s22985_s7 = scalar_lea.hbm %s24669_s0, 256 }
  0x15   :  { %s18_s30 = sshll.u32 %s23084_s29, 4  ;;  %p22986_p8 = scmp.ne.s32.totalorder %s24669_s0, %s22985_s7  ;;  %s19_s30 = int_to_ptr.vmem [resolvable:$true] %s18_s30 }
  0x16   :  { %p22989_p9 = scmp.lt.u32.totalorder %s22985_s7, %s24669_s0 }
  0x18   :  { %p22991_p10 = pnand %p22989_p9, %p22986_p8 }
  0x1a   :  { %22994 = shalt.err (!%p22991_p10)
}
  0x1b   :  { %s22995_s12 = scalar_lea.vmem %s19_s30, 256  ;;  %p23000_p12 = scmp.lt.s32.totalorder %s19_s30, %s19_s30 }
  0x1c   :  { %p22996_p11 = scmp.ne.s32.totalorder %s19_s30, %s22995_s12  ;;  %p23001_p13 = scmp.lt.s32.totalorder %s22995_s12, %s22995_s12 }
  0x1e   :  { %p23002_p0 = por %p23001_p13, %p23000_p12 }
  0x20   :  { %p23003_p1 = pnand %p23002_p0, %p22996_p11 }
  0x22   :  { %23006 = shalt.err (!%p23003_p1)
}
  0x23   :  { %s23085_s1 = smov 128   ;;  %s23086_s13 = smov 8  }
  0x24   :  { %24 = dma.hbm_to_vmem [thread:$0]  %s24669_s0, 256, %s19_s30, [#allocation3], %s23085_s1, %s23085_s1, %s23086_s13  }
  0x25   :  { %s23087_s16 = smov [#allocation7]   ;;  %s23088_s18 = smov [#allocation8]  }
  0x26   :  { %s42_s17 = sshll.u32 %s23087_s16, 4  ;;  %s54_s19 = sshll.u32 %s23088_s18, 4  ;;  %s43_s17 = int_to_ptr.vmem [resolvable:$true] %s42_s17  ;;  %s23158_s19 = int_to_ptr.vmem [resolvable:$true] %s54_s19 }
  0x27   :  { %s23007_s22 = scalar_lea.hbm %s24671_s2, 1024 }
  0x28   :  { %p23008_p2 = scmp.ne.s32.totalorder %s24671_s2, %s23007_s22  ;;  %p23011_p3 = scmp.lt.u32.totalorder %s23007_s22, %s24671_s2 }
  0x2a   :  { %p23013_p4 = pnand %p23011_p3, %p23008_p2 }
  0x2c   :  { %23016 = shalt.err (!%p23013_p4)
}
  0x2d   :  { %s23017_s0 = scalar_lea.vmem %s43_s17, 1024  ;;  %p23022_p6 = scmp.lt.s32.totalorder %s43_s17, %s43_s17 }
  0x2e   :  { %p23018_p5 = scmp.ne.s32.totalorder %s43_s17, %s23017_s0  ;;  %p23023_p7 = scmp.lt.s32.totalorder %s23017_s0, %s23017_s0 }
  0x30   :  { %p23024_p8 = por %p23023_p7, %p23022_p6 }
  0x32   :  { %p23025_p9 = pnand %p23024_p8, %p23018_p5 }
  0x34   :  { %23028 = shalt.err (!%p23025_p9)
}
  0x35   :  { %48 = dma.hbm_to_vmem [thread:$0]  %s24671_s2, 1024, %s43_s17, [#allocation6], %s23085_s1, %s23085_s1, %s23086_s13  }
  0x36   :  { %s23029_s6 = scalar_lea.hbm %s24672_s3, 512 }
  0x37   :  { %p23030_p10 = scmp.ne.s32.totalorder %s24672_s3, %s23029_s6  ;;  %p23033_p11 = scmp.lt.u32.totalorder %s23029_s6, %s24672_s3 }
  0x39   :  { %p23035_p12 = pnand %p23033_p11, %p23030_p10 }
  0x3b   :  { %23038 = shalt.err (!%p23035_p12)
}
  0x3c   :  { %s23039_s11 = scalar_lea.vmem %s23158_s19, 512  ;;  %p23044_p0 = scmp.lt.s32.totalorder %s23158_s19, %s23158_s19 }
  0x3d   :  { %p23040_p13 = scmp.ne.s32.totalorder %s23158_s19, %s23039_s11  ;;  %p23045_p1 = scmp.lt.s32.totalorder %s23039_s11, %s23039_s11 }
  0x3f   :  { %p23046_p2 = por %p23045_p1, %p23044_p0 }
  0x41   :  { %p23047_p3 = pnand %p23046_p2, %p23040_p13 }
  0x43   :  { %23050 = shalt.err (!%p23047_p3)
}
  0x44   :  { %60 = dma.hbm_to_vmem [thread:$0]  %s24672_s3, 512, %s23158_s19, [#allocation9], %s23085_s1, %s23085_s1, %s23086_s13  }
  0x45   :  { %23073 = dma.done.wait [#allocation3], 256  }
  0x46   :  { %23074 = vsyncadd [#allocation3], 4294967040 }
  0x47   :  { %23075 = dma.done.wait [#allocation6], 2560  }
  0x48   :  { %23076 = vsyncadd [#allocation6], 4294964736 }
  0x49   :  { %23077 = dma.done.wait [#allocation9], 512  }
  0x4a   :  { %23078 = vsyncadd [#allocation9], 4294966784  ;;  %v73_v0 = vld [vmem:[#allocation8] sm:$0xff]  ;;  %v74_v1 = vld [vmem:[#allocation2] sm:$0xff]  ;;  %vm80_vm0 = vcmask 261120   ;;  %vm23090_vm1 = vmmov 0  }
  0x4b   :  { %v75_v2 = vld [vmem:[#allocation2 + $0x8] sm:$0xff]  ;;  %v23195_v3 = vadd.f32 %v74_v1, %v73_v0  ;;  %v120_v17 = vld [vmem:[#allocation5] sm:$0xff]  ;;  %v122_v19 = vld [vmem:[#allocation5 + $0x30] sm:$0xff]  ;;  %s23091_s3 = smov 96   ;;  %vm666_vm2 = vcmask 64512   ;;  %s23092_s14 = smov 64  }
  0x4c   :  { %v23197_v4 = vadd.f32 %v75_v2, %v73_v0  ;;  %v121_v18 = vld [vmem:[#allocation5 + $0x18] sm:$0xff]  ;;  %v136_v20 = vand.u32 4294901760, %v120_v17  ;;  %v123_v22 = vld [vmem:[#allocation5 + $0x48] sm:$0xff]  ;;  %v142_v23 = vand.u32 4294901760, %v122_v19  ;;  %s23093_s15 = smov 88   ;;  %s23094_s16 = smov 120  }
  0x4d   :  { %v81_v5 = vsel %vm80_vm0, %v23195_v3, 0.0  ;;  %v139_v21 = vand.u32 4294901760, %v121_v18  ;;  %v145_v24 = vand.u32 4294901760, %v123_v22  ;;  %v19613_v56 = vld [vmem:[#allocation8 + $0x8] ss:$0 sm:$0xff]  ;;  %s23095_s17 = smov 56  }
  0x4e   :  { %82 = vadd.xlane.f32.xlu0 %v81_v5  ;;  %v84_v6 = vsel %vm80_vm0, %v23197_v4, 0.0  ;;  %v226_v27 = vsub.f32 %v120_v17, %v136_v20  ;;  %v240_v33 = vsub.f32 %v122_v19, %v142_v23  ;;  %v19614_v58 = vld [vmem:[#allocation8 + $0x9] ss:$0 sm:$0xff]  ;;  %s23096_s18 = smov 112   ;;  %s23097_s19 = smov 80   ;;  %vm8027_vm3 = vcmask 195584  }
  0x4f   :  { %v23207_v25 = vpack.c.bf16 %v139_v21, %v136_v20  ;;  %v23209_v26 = vpack.c.bf16 %v145_v24, %v142_v23  ;;  %v233_v28 = vsub.f32 %v121_v18, %v139_v21  ;;  %v247_v34 = vsub.f32 %v123_v22, %v145_v24  ;;  %s23098_s20 = smov 48   ;;  %s23099_s21 = smov 104  }
  0x50   :  { %v227_v29 = vand.u32 4294901760, %v226_v27  ;;  %v241_v37 = vand.u32 4294901760, %v240_v33  ;;  %s23100_s22 = smov 72   ;;  %s23101_s23 = smov 40   ;;  %vm8024_vm4 = vcmask 130048   ;;  %vm9201_vm5 = vcmask 523264  }
  0x51   :  { %21936 = vmatprep.subr.bf16.mxu0 %v23207_v25  ;;  %v234_v30 = vand.u32 4294901760, %v233_v28  ;;  %v248_v38 = vand.u32 4294901760, %v247_v34  ;;  %v21951_v45 = vpack.c.bf16 %v233_v28, %v226_v27  ;;  %v21955_v46 = vpack.c.bf16 %v247_v34, %v240_v33  ;;  %s23102_s24 = smov 16   ;;  %s23103_s25 = smov 32  }
  0x52   :  { %85 = vadd.xlane.f32.xlu0 %v84_v6  ;;  %21938 = vmatpush3.bf16.msra.mxu0 %v23207_v25  ;;  %v228_v31 = vsub.f32 %v226_v27, %v227_v29  ;;  %v242_v40 = vsub.f32 %v240_v33, %v241_v37 }
  0x53   :  { %21940 = vmatprep.subr.bf16.mxu0 %v23209_v26  ;;  %v235_v32 = vsub.f32 %v233_v28, %v234_v30  ;;  %v249_v41 = vsub.f32 %v247_v34, %v248_v38  ;;  %v21967_v47 = vpack.c.bf16 %v234_v30, %v227_v29  ;;  %v21971_v48 = vpack.c.bf16 %v248_v38, %v241_v37 }
  0x54   :  { %v229_v35 = vand.u32 4294901760, %v228_v31  ;;  %v243_v42 = vand.u32 4294901760, %v242_v40 }
  0x55   :  { %v236_v36 = vand.u32 4294901760, %v235_v32  ;;  %v250_v43 = vand.u32 4294901760, %v249_v41 }
  0x56   :  { %21942 = vmatpush3.bf16.msra.mxu0 %v23209_v26 }
  0x57   :  { %v21943_v39 = vpack.c.bf16 %v236_v36, %v229_v35  ;;  %v21947_v44 = vpack.c.bf16 %v250_v43, %v243_v42 }
  0x59   :  { %21944 = vmatprep.subr.bf16.mxu0 %v21943_v39 }
  0xdb   :  { %v83_v7 = vpop.xlane.xlu0 %82 }
  0xdc   :  { %v88_v8 = vmul.f32 0.03125, %v83_v7 }
  0xde   :  { %v90_v9 = vsub.f32 %v23195_v3, %v88_v8 }
  0xdf   :  { %v86_v10 = vpop.xlane.xlu0 %85 }
  0xe0   :  { %v89_v11 = vmul.f32 0.03125, %v86_v10  ;;  %v92_v12 = vmul.f32 %v90_v9, %v90_v9 }
  0xe2   :  { %v91_v13 = vsub.f32 %v23197_v4, %v89_v11  ;;  %v94_v14 = vsel %vm80_vm0, %v92_v12, 0.0 }
  0xe3   :  { %95 = vadd.xlane.f32.xlu1 %v94_v14 }
  0xe4   :  { %v93_v15 = vmul.f32 %v91_v13, %v91_v13 }
  0xe6   :  { %v97_v16 = vsel %vm80_vm0, %v93_v15, 0.0 }
  0xe7   :  { %98 = vadd.xlane.f32.xlu1 %v97_v16  ;;  %v19615_v16 = vld [vmem:[#allocation8 + $0xa] ss:$0 sm:$0xff] }
 0x170   :  { %v96_v49 = vpop.xlane.xlu1 %95 }
 0x171   :  { %v100_v50 = vmul.f32 0.03125, %v96_v49 }
 0x173   :  { %v102_v51 = vadd.f32 1e-06, %v100_v50 }
 0x174   :  { %v99_v52 = vpop.xlane.xlu1 %98 }
 0x175   :  { %22855 = vrsqrt.f32 %v102_v51  ;;  %v101_v53 = vmul.f32 0.03125, %v99_v52 }
 0x177   :  { %v103_v54 = vadd.f32 1e-06, %v101_v53 }
 0x179   :  { %22857 = vrsqrt.f32 %v103_v54 }
 0x17f   :  { %v22856_v55 = vpop.eup %22855 }
 0x180   :  { %v106_v57 = vmul.f32 %v22856_v55, %v90_v9 }
 0x182   :  { %v112_v59 = vmul.f32 %v19613_v56, %v106_v57 }
 0x183   :  { %v22858_v60 = vpop.eup %22857 }
 0x184   :  { %v107_v61 = vmul.f32 %v22858_v60, %v91_v13  ;;  %v118_v62 = vadd.f32 %v19614_v58, %v112_v59  ;;  %v23089_v13 = vmov 0.0  }
 0x185   :  { %20417 = vmatprep.subr.mxu1 %v23089_v13  ;;  %20419 = vmatprep.mubr.msk.f32.mxu1 %vm23090_vm1, %v23089_v13 }
 0x186   :  { %v113_v63 = vmul.f32 %v19613_v56, %v107_v61  ;;  %v130_v0 = vsel %vm80_vm0, %v118_v62, 0 }
 0x187   :  { %v204_v1 = vand.u32 4294901760, %v130_v0 }
 0x188   :  { %v119_v2 = vadd.f32 %v19614_v58, %v113_v63 }
 0x189   :  { %v205_v5 = vsub.f32 %v130_v0, %v204_v1 }
 0x18a   :  { %v133_v6 = vsel %vm80_vm0, %v119_v2, 0 }
 0x18b   :  { %v206_v7 = vand.u32 4294901760, %v205_v5  ;;  %v214_v8 = vand.u32 4294901760, %v133_v6 }
 0x18d   :  { %v207_v10 = vsub.f32 %v205_v5, %v206_v7  ;;  %v215_v11 = vsub.f32 %v133_v6, %v214_v8 }
 0x18f   :  { %v208_v12 = vand.u32 4294901760, %v207_v10  ;;  %v216_v14 = vand.u32 4294901760, %v215_v11 }
 0x191   :  { %20359 = vmatprep.mubr.f32.mxu0 %v208_v12  ;;  %v217_v9 = vsub.f32 %v215_v11, %v216_v14 }
 0x193   :  { %v218_v15 = vand.u32 4294901760, %v217_v9 }
 0x195   :  { %20360 = vmatmul.mubr.f32.vlgmr.msra.gmra.mrb[0].mxu0 %v218_v15 }
 0x196   :  { %21946 = vmatpush3.bf16.msra.mxu0 %v21943_v39  ;;  %20370 = vmatprep.mubr.f32.mxu0 %v204_v1 }
 0x197   :  { %21948 = vmatprep.subr.bf16.mxu0 %v21947_v44 }
 0x19a   :  { %21950 = vmatpush3.bf16.msra.mxu0 %v21947_v44 }
 0x19b   :  { %21952 = vmatprep.subr.bf16.mxu0 %v21951_v45 }
 0x19d   :  { %20371 = vmatmul.mubr.f32.vlgmr.msra.gmra.mrb[0].mxu0 %v214_v8 }
 0x19e   :  { %21954 = vmatpush3.bf16.msra.mxu0 %v21951_v45  ;;  %20381 = vmatprep.mubr.f32.mxu0 %v205_v5 }
 0x19f   :  { %21956 = vmatprep.subr.bf16.mxu0 %v21955_v46 }
 0x1a2   :  { %21958 = vmatpush3.bf16.msra.mxu0 %v21955_v46 }
 0x1a3   :  { %21960 = vmatprep.subr.bf16.mxu0 %v23207_v25 }
 0x1a5   :  { %20382 = vmatmul.mubr.f32.vlgmr.msra.gmra.mrb[0].mxu0 %v215_v11 }
 0x1a6   :  { %21962 = vmatpush3.bf16.msra.mxu0 %v23207_v25  ;;  %20392 = vmatprep.mubr.f32.mxu0 %v206_v7 }
 0x1a7   :  { %21964 = vmatprep.subr.bf16.mxu0 %v23209_v26 }
 0x1aa   :  { %21966 = vmatpush3.bf16.msra.mxu0 %v23209_v26 }
 0x1ab   :  { %21968 = vmatprep.subr.bf16.mxu0 %v21967_v47 }
 0x1ad   :  { %20393 = vmatmul.mubr.f32.vlgmr.msra.gmra.mrb[0].mxu0 %v216_v14 }
 0x1ae   :  { %21970 = vmatpush3.bf16.msra.mxu0 %v21967_v47  ;;  %20403 = vmatprep.mubr.f32.mxu0 %v204_v1 }
 0x1af   :  { %21972 = vmatprep.subr.bf16.mxu0 %v21971_v48 }
 0x1b2   :  { %21974 = vmatpush3.bf16.msra.mxu0 %v21971_v48 }
 0x1b3   :  { %21976 = vmatprep.subr.bf16.mxu0 %v23207_v25 }
 0x1b5   :  { %20404 = vmatmul.mubr.f32.vlgmr.msra.gmra.mrb[0].mxu0 %v214_v8 }
 0x1b6   :  { %21978 = vmatpush3.bf16.msra.mxu0 %v23207_v25  ;;  %20414 = vmatprep.mubr.f32.mxu0 %v204_v1 }
 0x1b7   :  { %21980 = vmatprep.subr.bf16.mxu0 %v23209_v26 }
 0x1ba   :  { %21982 = vmatpush3.bf16.msra.mxu0 %v23209_v26 }
 0x1bb   :  { %20477 = vmatprep.subr.mxu0 %v23089_v13 }
 0x1bd   :  { %20415 = vmatmul.mubr.f32.vlgmr.msra.gmra.mrb[0].mxu0 %v214_v8 }
 0x1be   :  { %20479 = vmatprep.mubr.msk.f32.mxu0 %vm23090_vm1, %v23089_v13 }
 0x290   :  { %v20416_v17 = vpop.f32.mrb[0].mxu0 }
 0x291   :  { %v23231_v18 = vadd.f32 %v20416_v17, %v19615_v16  ;;  %v653_v19 = vpop.f32.mrb[1].mxu0 }
 0x292   :  { %v23233_v20 = vadd.f32 %v19615_v16, %v653_v19 }
 0x293   :  { %1118 = vrot.lane.b32.xlu1 %v23231_v18, %s23091_s3  ;;  %v1120_v35 = vsel %vm666_vm2, %v23231_v18, 0 }
 0x294   :  { %664 = vrot.lane.b32.xlu0 %v23233_v20, %s23091_s3  ;;  %v667_v21 = vsel %vm666_vm2, %v23233_v20, 0  ;;  %v1190_v37 = vand.u32 4294901760, %v1120_v35 }
 0x295   :  { %v737_v22 = vand.u32 4294901760, %v667_v21 }
 0x296   :  { %v1191_v39 = vsub.f32 %v1120_v35, %v1190_v37 }
 0x297   :  { %v738_v23 = vsub.f32 %v667_v21, %v737_v22 }
 0x298   :  { %v1192_v41 = vand.u32 4294901760, %v1191_v39 }
 0x299   :  { %v739_v24 = vand.u32 4294901760, %v738_v23 }
 0x29a   :  { %v1193_v43 = vsub.f32 %v1191_v39, %v1192_v41 }
 0x29b   :  { %v740_v27 = vsub.f32 %v738_v23, %v739_v24 }
 0x29c   :  { %v1194_v45 = vand.u32 4294901760, %v1193_v43 }
 0x29d   :  { %v741_v30 = vand.u32 4294901760, %v740_v27 }
 0x305   :  { %v1119_v34 = vpop.permute.xlu1 %1118 }
 0x306   :  { %v665_v25 = vpop.permute.xlu0 %664  ;;  %v1122_v36 = vsel %vm666_vm2, %v1119_v34, 0 }
 0x307   :  { %v669_v26 = vsel %vm666_vm2, %v665_v25, 0  ;;  %v1125_v38 = vand.u32 4294901760, %v1122_v36 }
 0x308   :  { %v672_v28 = vand.u32 4294901760, %v669_v26 }
 0x309   :  { %v1202_v40 = vsub.f32 %v1122_v36, %v1125_v38 }
 0x30a   :  { %v749_v29 = vsub.f32 %v669_v26, %v672_v28  ;;  %20418 = vmatpush3.xpose.msra.mxu1 %v672_v28 }
 0x30b   :  { %20422 = vmatprep.subr.mxu1 %v23089_v13  ;;  %v1203_v42 = vand.u32 4294901760, %v1202_v40 }
 0x30c   :  { %v750_v31 = vand.u32 4294901760, %v749_v29 }
 0x30d   :  { %20420 = vmatmul.mubr.f32.vlgmr.msra.gmra.mrb[0].mxu1 %v741_v30  ;;  %v1204_v44 = vsub.f32 %v1202_v40, %v1203_v42 }
 0x30e   :  { %v751_v32 = vsub.f32 %v749_v29, %v750_v31  ;;  %20424 = vmatprep.mubr.msk.f32.mxu1 %vm23090_vm1, %v23089_v13 }
 0x30f   :  { %v1205_v46 = vand.u32 4294901760, %v1204_v44 }
 0x310   :  { %v752_v33 = vand.u32 4294901760, %v751_v32 }
 0x312   :  { %20423 = vmatpush3.xpose.msra.mxu1 %v752_v33 }
 0x313   :  { %20427 = vmatprep.subr.mxu1 %v23089_v13 }
 0x315   :  { %20425 = vmatmul.mubr.f32.vlgmr.msra.gmra.mrb[0].mxu1 %v737_v22 }
 0x316   :  { %20428 = vmatpush3.xpose.msra.mxu1 %v749_v29  ;;  %20429 = vmatprep.mubr.msk.f32.mxu1 %vm23090_vm1, %v23089_v13 }
 0x317   :  { %20432 = vmatprep.subr.mxu1 %v23089_v13 }
 0x31d   :  { %20430 = vmatmul.mubr.f32.vlgmr.msra.gmra.mrb[0].mxu1 %v738_v23 }
 0x31e   :  { %20433 = vmatpush3.xpose.msra.mxu1 %v672_v28  ;;  %20434 = vmatprep.mubr.msk.f32.mxu1 %vm23090_vm1, %v23089_v13 }
 0x31f   :  { %20437 = vmatprep.subr.mxu1 %v23089_v13 }
 0x325   :  { %20435 = vmatmul.mubr.f32.vlgmr.msra.gmra.mrb[0].mxu1 %v739_v24 }
 0x326   :  { %20438 = vmatpush3.xpose.msra.mxu1 %v750_v31  ;;  %20439 = vmatprep.mubr.msk.f32.mxu1 %vm23090_vm1, %v23089_v13 }
 0x327   :  { %20442 = vmatprep.subr.mxu1 %v23089_v13 }
 0x32d   :  { %20440 = vmatmul.mubr.f32.vlgmr.msra.gmra.mrb[0].mxu1 %v737_v22 }
 0x32e   :  { %20443 = vmatpush3.xpose.msra.mxu1 %v672_v28  ;;  %20444 = vmatprep.mubr.msk.f32.mxu1 %vm23090_vm1, %v23089_v13 }
 0x32f   :  { %20447 = vmatprep.subr.mxu1 %v23089_v13 }
 0x335   :  { %20445 = vmatmul.mubr.f32.vlgmr.msra.gmra.mrb[0].mxu1 %v737_v22 }
 0x336   :  { %20448 = vmatpush3.xpose.msra.mxu1 %v1125_v38  ;;  %20449 = vmatprep.mubr.msk.f32.mxu1 %vm23090_vm1, %v23089_v13 }
 0x337   :  { %20452 = vmatprep.subr.mxu1 %v23089_v13 }
 0x339   :  { %20450 = vmatmul.mubr.f32.vlgmr.msra.gmra.mrb[2].mxu1 %v1194_v45 }
 0x33a   :  { %20453 = vmatpush3.xpose.msra.mxu1 %v1205_v46  ;;  %20454 = vmatprep.mubr.msk.f32.mxu1 %vm23090_vm1, %v23089_v13 }
 0x33b   :  { %20457 = vmatprep.subr.mxu1 %v23089_v13 }
 0x341   :  { %20455 = vmatmul.mubr.f32.vlgmr.msra.gmra.mrb[2].mxu1 %v1190_v37 }
 0x342   :  { %20458 = vmatpush3.xpose.msra.mxu1 %v1202_v40  ;;  %20459 = vmatprep.mubr.msk.f32.mxu1 %vm23090_vm1, %v23089_v13 }
 0x343   :  { %20462 = vmatprep.subr.mxu1 %v23089_v13 }
 0x349   :  { %20460 = vmatmul.mubr.f32.vlgmr.msra.gmra.mrb[2].mxu1 %v1191_v39 }
 0x34a   :  { %20463 = vmatpush3.xpose.msra.mxu1 %v1125_v38  ;;  %20464 = vmatprep.mubr.msk.f32.mxu1 %vm23090_vm1, %v23089_v13 }
 0x34b   :  { %20467 = vmatprep.subr.mxu1 %v23089_v13 }
 0x351   :  { %20465 = vmatmul.mubr.f32.vlgmr.msra.gmra.mrb[2].mxu1 %v1192_v41 }
 0x352   :  { %20468 = vmatpush3.xpose.msra.mxu1 %v1203_v42  ;;  %20469 = vmatprep.mubr.msk.f32.mxu1 %vm23090_vm1, %v23089_v13 }
 0x353   :  { %20472 = vmatprep.subr.mxu1 %v23089_v13 }
 0x359   :  { %20470 = vmatmul.mubr.f32.vlgmr.msra.gmra.mrb[2].mxu1 %v1190_v37 }
 0x35a   :  { %20473 = vmatpush3.xpose.msra.mxu1 %v1125_v38  ;;  %20474 = vmatprep.mubr.msk.f32.mxu1 %vm23090_vm1, %v23089_v13 }
 0x35b   :  { %20507 = vmatprep.subr.mxu1 %v23089_v13 }
 0x361   :  { %20475 = vmatmul.mubr.f32.vlgmr.msra.gmra.mrb[2].mxu1 %v1190_v37 }
 0x362   :  { %20509 = vmatprep.mubr.msk.f32.mxu1 %vm23090_vm1, %v23089_v13 }
 0x408   :  { %v1113_v47 = vpop.f32.mrb[0].mxu1 }
 0x409   :  { %v20446_v48 = vpop.f32.mrb[1].mxu1  ;;  %v1570_v49 = vsel %vm666_vm2, %v1113_v47, -inf }
 0x40a   :  { %1571 = vmax.xlane.f32.xlu1 %v1570_v49 }
 0x434   :  { %v1566_v50 = vpop.f32.mrb[2].mxu1 }
 0x435   :  { %v20476_v51 = vpop.f32.mrb[3].mxu1  ;;  %v1573_v52 = vsel %vm666_vm2, %v1566_v50, -inf }
 0x436   :  { %1574 = vmax.xlane.f32.xlu0 %v1573_v52 }
 0x497   :  { %v1572_v53 = vpop.xlane.xlu1 %1571 }
 0x498   :  { %v1576_v54 = vsub.f32 %v1113_v47, %v1572_v53 }
 0x49a   :  { %v1578_v55 = vmul.f32 1.442695, %v1576_v54 }
 0x49c   :  { %22859 = vpow2.f32 %v1578_v55 }
 0x4a6   :  { %v22860_v56 = vpop.eup %22859 }
 0x4a7   :  { %v1582_v57 = vsel %vm666_vm2, %v22860_v56, 0.0 }
 0x4a8   :  { %1583 = vadd.xlane.f32.xlu0 %v1582_v57 }
 0x4be   :  { %1592 = vrot.lane.b32.xlu0 %v23233_v20, %s23092_s14 }
 0x4c2   :  { %2498 = vrot.lane.b32.xlu0 %v23233_v20, %s23093_s15 }
 0x4c3   :  { %v1575_v58 = vpop.xlane.xlu0 %1574 }
 0x4c4   :  { %v1577_v59 = vsub.f32 %v1566_v50, %v1575_v58 }
 0x4c6   :  { %v1580_v60 = vmul.f32 1.442695, %v1577_v59 }
 0x4c8   :  { %22861 = vpow2.f32 %v1580_v60 }
 0x4d2   :  { %v22862_v61 = vpop.eup %22861 }
 0x4d3   :  { %v1585_v62 = vsel %vm666_vm2, %v22862_v61, 0.0 }
 0x4d4   :  { %1586 = vadd.xlane.f32.xlu1 %v1585_v62 }
 0x4e5   :  { %2044 = vrot.lane.b32.xlu1 %v23231_v18, %s23092_s14 }
 0x4e9   :  { %2496 = vrot.lane.b32.xlu1 %v23233_v20, %s23094_s16 }
 0x4ed   :  { %2950 = vrot.lane.b32.xlu1 %v23231_v18, %s23094_s16 }
 0x4f1   :  { %2952 = vrot.lane.b32.xlu1 %v23231_v18, %s23093_s15 }
 0x535   :  { %v1584_v63 = vpop.xlane.xlu0 %1583 }
 0x536   :  { %22863 = vrcp.f32 %v1584_v63 }
 0x539   :  { %v1593_v0 = vpop.permute.xlu0 %1592 }
 0x53a   :  { %v1599_v1 = vand.u32 4294901760, %v1593_v0 }
 0x53c   :  { %20478 = vmatpush3.msra.mxu0 %v1599_v1  ;;  %v1676_v6 = vsub.f32 %v1593_v0, %v1599_v1 }
 0x53d   :  { %20482 = vmatprep.subr.mxu0 %v23089_v13  ;;  %v2499_v19 = vpop.permute.xlu0 %2498 }
 0x53e   :  { %v1677_v10 = vand.u32 4294901760, %v1676_v6  ;;  %v2502_v22 = vsel %vm666_vm2, %v2499_v19, 0 }
 0x53f   :  { %v23315_v24 = vand.u32 4294901760, %v2502_v22 }
 0x540   :  { %v22864_v2 = vpop.eup %22863  ;;  %v1678_v14 = vsub.f32 %v1676_v6, %v1677_v10 }
 0x541   :  { %v1589_v5 = vmul.f32 %v22864_v2, %v22860_v56  ;;  %v2582_v29 = vsub.f32 %v2502_v22, %v23315_v24 }
 0x542   :  { %v1679_v16 = vand.u32 4294901760, %v1678_v14 }
 0x543   :  { %v1596_v7 = vsel %vm666_vm2, %v1589_v5, 0  ;;  %v2583_v36 = vand.u32 4294901760, %v2582_v29 }
 0x544   :  { %v1664_v8 = vand.u32 4294901760, %v1596_v7 }
 0x545   :  { %v2584_v41 = vsub.f32 %v2582_v29, %v2583_v36 }
 0x546   :  { %v1665_v11 = vsub.f32 %v1596_v7, %v1664_v8 }
 0x547   :  { %v2585_v47 = vand.u32 4294901760, %v2584_v41 }
 0x548   :  { %v1666_v12 = vand.u32 4294901760, %v1665_v11 }
 0x54a   :  { %v1667_v9 = vsub.f32 %v1665_v11, %v1666_v12 }
 0x54c   :  { %v1668_v15 = vand.u32 4294901760, %v1667_v9 }
 0x54e   :  { %20480 = vmatmul.mubr.f32.vlgmr.msra.gmra.mrb[2].mxu0 %v1668_v15 }
 0x54f   :  { %20483 = vmatpush3.msra.mxu0 %v1679_v16  ;;  %20484 = vmatprep.mubr.msk.f32.mxu0 %vm23090_vm1, %v23089_v13 }
 0x550   :  { %20487 = vmatprep.subr.mxu0 %v23089_v13 }
 0x556   :  { %20485 = vmatmul.mubr.f32.vlgmr.msra.gmra.mrb[2].mxu0 %v1664_v8 }
 0x557   :  { %20488 = vmatpush3.msra.mxu0 %v1676_v6  ;;  %20489 = vmatprep.mubr.msk.f32.mxu0 %vm23090_vm1, %v23089_v13 }
 0x558   :  { %20492 = vmatprep.subr.mxu0 %v23089_v13 }
 0x55e   :  { %20490 = vmatmul.mubr.f32.vlgmr.msra.gmra.mrb[2].mxu0 %v1665_v11 }
 0x55f   :  { %20493 = vmatpush3.msra.mxu0 %v1599_v1  ;;  %20494 = vmatprep.mubr.msk.f32.mxu0 %vm23090_vm1, %v23089_v13 }
 0x560   :  { %20497 = vmatprep.subr.mxu0 %v23089_v13 }
 0x561   :  { %v1587_v17 = vpop.xlane.xlu1 %1586 }
 0x562   :  { %22865 = vrcp.f32 %v1587_v17 }
 0x565   :  { %v2045_v21 = vpop.permute.xlu1 %2044 }
 0x566   :  { %v23309_v23 = vand.u32 4294901760, %v2045_v21  ;;  %20495 = vmatmul.mubr.f32.vlgmr.msra.gmra.mrb[2].mxu0 %v1666_v12 }
 0x567   :  { %20498 = vmatpush3.msra.mxu0 %v1677_v10  ;;  %20499 = vmatprep.mubr.msk.f32.mxu0 %vm23090_vm1, %v23089_v13 }
 0x568   :  { %20508 = vmatpush3.msra.mxu1 %v23309_v23  ;;  %20502 = vmatprep.subr.mxu0 %v23089_v13  ;;  %v2128_v31 = vsub.f32 %v2045_v21, %v23309_v23 }
 0x569   :  { %v2497_v25 = vpop.permute.xlu1 %2496  ;;  %20512 = vmatprep.subr.mxu1 %v23089_v13 }
 0x56a   :  { %v2500_v26 = vsel %vm666_vm2, %v2497_v25, 0  ;;  %v2129_v37 = vand.u32 4294901760, %v2128_v31 }
 0x56b   :  { %v23319_v27 = vand.u32 4294901760, %v2500_v26 }
 0x56c   :  { %v22866_v28 = vpop.eup %22865  ;;  %v2130_v42 = vsub.f32 %v2128_v31, %v2129_v37 }
 0x56d   :  { %v1591_v30 = vmul.f32 %v22866_v28, %v22862_v61  ;;  %v2571_v32 = vsub.f32 %v2500_v26, %v23319_v27  ;;  %v2951_v48 = vpop.permute.xlu1 %2950 }
 0x56e   :  { %20500 = vmatmul.mubr.f32.vlgmr.msra.gmra.mrb[2].mxu0 %v1664_v8  ;;  %v2131_v46 = vand.u32 4294901760, %v2130_v42  ;;  %v2954_v50 = vsel %vm666_vm2, %v2951_v48, 0 }
 0x56f   :  { %20503 = vmatpush3.msra.mxu0 %v1599_v1  ;;  %20504 = vmatprep.mubr.msk.f32.mxu0 %vm23090_vm1, %v23089_v13  ;;  %v2048_v33 = vsel %vm666_vm2, %v1591_v30, 0  ;;  %v2572_v34 = vand.u32 4294901760, %v2571_v32  ;;  %v3024_v52 = vand.u32 4294901760, %v2954_v50 }
 0x570   :  { %20537 = vmatprep.subr.mxu0 %v23089_v13  ;;  %v23328_v35 = vand.u32 4294901760, %v2048_v33 }
 0x571   :  { %v2573_v39 = vsub.f32 %v2571_v32, %v2572_v34  ;;  %v2953_v49 = vpop.permute.xlu1 %2952  ;;  %v3025_v54 = vsub.f32 %v2954_v50, %v3024_v52 }
 0x572   :  { %v2117_v38 = vsub.f32 %v2048_v33, %v23328_v35  ;;  %v2956_v51 = vsel %vm666_vm2, %v2953_v49, 0 }
 0x573   :  { %v2574_v45 = vand.u32 4294901760, %v2573_v39  ;;  %v2959_v53 = vand.u32 4294901760, %v2956_v51  ;;  %v3026_v56 = vand.u32 4294901760, %v3025_v54 }
 0x574   :  { %v2118_v40 = vand.u32 4294901760, %v2117_v38 }
 0x575   :  { %v3036_v55 = vsub.f32 %v2956_v51, %v2959_v53  ;;  %v3027_v58 = vsub.f32 %v3025_v54, %v3026_v56 }
 0x576   :  { %20505 = vmatmul.mubr.f32.vlgmr.msra.gmra.mrb[2].mxu0 %v1664_v8  ;;  %v2119_v43 = vsub.f32 %v2117_v38, %v2118_v40 }
 0x577   :  { %20538 = vmatpush3.xpose.msra.mxu0 %v23315_v24  ;;  %20539 = vmatprep.mubr.msk.f32.mxu0 %vm23090_vm1, %v23089_v13  ;;  %v3037_v57 = vand.u32 4294901760, %v3036_v55  ;;  %v3028_v60 = vand.u32 4294901760, %v3027_v58 }
 0x578   :  { %20542 = vmatprep.subr.mxu0 %v23089_v13  ;;  %v2120_v44 = vand.u32 4294901760, %v2119_v43 }
 0x579   :  { %v3038_v59 = vsub.f32 %v3036_v55, %v3037_v57 }
 0x57a   :  { %20510 = vmatmul.mubr.f32.vlgmr.msra.gmra.mrb[4].mxu1 %v2120_v44  ;;  %20540 = vmatmul.mubr.f32.vlgmr.msra.gmra.mrb[4].mxu0 %v2574_v45 }
 0x57b   :  { %20513 = vmatpush3.msra.mxu1 %v2131_v46  ;;  %20543 = vmatpush3.xpose.msra.mxu0 %v2585_v47  ;;  %v3039_v61 = vand.u32 4294901760, %v3038_v59 }
 0x57c   :  { %20514 = vmatprep.mubr.msk.f32.mxu1 %vm23090_vm1, %v23089_v13  ;;  %20517 = vmatprep.subr.mxu1 %v23089_v13 }
 0x57d   :  { %20544 = vmatprep.mubr.msk.f32.mxu0 %vm23090_vm1, %v23089_v13  ;;  %20547 = vmatprep.subr.mxu0 %v23089_v13 }
 0x582   :  { %20515 = vmatmul.mubr.f32.vlgmr.msra.gmra.mrb[4].mxu1 %v23328_v35  ;;  %20545 = vmatmul.mubr.f32.vlgmr.msra.gmra.mrb[4].mxu0 %v23319_v27 }
 0x583   :  { %20518 = vmatpush3.msra.mxu1 %v2128_v31  ;;  %20548 = vmatpush3.xpose.msra.mxu0 %v2582_v29 }
 0x584   :  { %20519 = vmatprep.mubr.msk.f32.mxu1 %vm23090_vm1, %v23089_v13  ;;  %20522 = vmatprep.subr.mxu1 %v23089_v13 }
 0x585   :  { %20549 = vmatprep.mubr.msk.f32.mxu0 %vm23090_vm1, %v23089_v13  ;;  %20552 = vmatprep.subr.mxu0 %v23089_v13 }
 0x58a   :  { %20520 = vmatmul.mubr.f32.vlgmr.msra.gmra.mrb[4].mxu1 %v2117_v38  ;;  %20550 = vmatmul.mubr.f32.vlgmr.msra.gmra.mrb[4].mxu0 %v2571_v32 }
 0x58b   :  { %20523 = vmatpush3.msra.mxu1 %v23309_v23  ;;  %20553 = vmatpush3.xpose.msra.mxu0 %v23315_v24 }
 0x58c   :  { %20524 = vmatprep.mubr.msk.f32.mxu1 %vm23090_vm1, %v23089_v13  ;;  %20527 = vmatprep.subr.mxu1 %v23089_v13 }
 0x58d   :  { %20554 = vmatprep.mubr.msk.f32.mxu0 %vm23090_vm1, %v23089_v13  ;;  %20557 = vmatprep.subr.mxu0 %v23089_v13 }
 0x592   :  { %20525 = vmatmul.mubr.f32.vlgmr.msra.gmra.mrb[4].mxu1 %v2118_v40  ;;  %20555 = vmatmul.mubr.f32.vlgmr.msra.gmra.mrb[4].mxu0 %v2572_v34 }
 0x593   :  { %20528 = vmatpush3.msra.mxu1 %v2129_v37  ;;  %20558 = vmatpush3.xpose.msra.mxu0 %v2583_v36 }
 0x594   :  { %20529 = vmatprep.mubr.msk.f32.mxu1 %vm23090_vm1, %v23089_v13  ;;  %20532 = vmatprep.subr.mxu1 %v23089_v13 }
 0x595   :  { %20559 = vmatprep.mubr.msk.f32.mxu0 %vm23090_vm1, %v23089_v13  ;;  %20562 = vmatprep.subr.mxu0 %v23089_v13 }
 0x59a   :  { %20530 = vmatmul.mubr.f32.vlgmr.msra.gmra.mrb[4].mxu1 %v23328_v35  ;;  %20560 = vmatmul.mubr.f32.vlgmr.msra.gmra.mrb[4].mxu0 %v23319_v27 }
 0x59b   :  { %20533 = vmatpush3.msra.mxu1 %v23309_v23  ;;  %20563 = vmatpush3.xpose.msra.mxu0 %v23315_v24 }
 0x59c   :  { %20534 = vmatprep.mubr.msk.f32.mxu1 %vm23090_vm1, %v23089_v13  ;;  %20564 = vmatprep.mubr.msk.f32.mxu0 %vm23090_vm1, %v23089_v13 }
 0x59d   :  { %20567 = vmatprep.subr.mxu1 %v23089_v13  ;;  %20597 = vmatprep.subr.mxu0 %v23089_v13 }
 0x5a2   :  { %20535 = vmatmul.mubr.f32.vlgmr.msra.gmra.mrb[4].mxu1 %v23328_v35  ;;  %20565 = vmatmul.mubr.f32.vlgmr.msra.gmra.mrb[4].mxu0 %v23319_v27 }
 0x5a3   :  { %20568 = vmatpush3.xpose.msra.mxu1 %v2959_v53  ;;  %20569 = vmatprep.mubr.msk.f32.mxu1 %vm23090_vm1, %v23089_v13 }
 0x5a4   :  { %20572 = vmatprep.subr.mxu1 %v23089_v13  ;;  %20599 = vmatprep.mubr.msk.f32.mxu0 %vm23090_vm1, %v23089_v13 }
 0x5a6   :  { %20570 = vmatmul.mubr.f32.vlgmr.msra.gmra.mrb[6].mxu1 %v3028_v60 }
 0x5a7   :  { %20573 = vmatpush3.xpose.msra.mxu1 %v3039_v61  ;;  %20574 = vmatprep.mubr.msk.f32.mxu1 %vm23090_vm1, %v23089_v13 }
 0x5a8   :  { %20577 = vmatprep.subr.mxu1 %v23089_v13 }
 0x5ae   :  { %20575 = vmatmul.mubr.f32.vlgmr.msra.gmra.mrb[6].mxu1 %v3024_v52 }
 0x5af   :  { %20578 = vmatpush3.xpose.msra.mxu1 %v3036_v55  ;;  %20579 = vmatprep.mubr.msk.f32.mxu1 %vm23090_vm1, %v23089_v13 }
 0x5b0   :  { %20582 = vmatprep.subr.mxu1 %v23089_v13 }
 0x5b6   :  { %20580 = vmatmul.mubr.f32.vlgmr.msra.gmra.mrb[6].mxu1 %v3025_v54 }
 0x5b7   :  { %20583 = vmatpush3.xpose.msra.mxu1 %v2959_v53  ;;  %20584 = vmatprep.mubr.msk.f32.mxu1 %vm23090_vm1, %v23089_v13 }
 0x5b8   :  { %20587 = vmatprep.subr.mxu1 %v23089_v13 }
 0x5be   :  { %20585 = vmatmul.mubr.f32.vlgmr.msra.gmra.mrb[6].mxu1 %v3026_v56 }
 0x5bf   :  { %20588 = vmatpush3.xpose.msra.mxu1 %v3037_v57  ;;  %20589 = vmatprep.mubr.msk.f32.mxu1 %vm23090_vm1, %v23089_v13 }
 0x5c0   :  { %20592 = vmatprep.subr.mxu1 %v23089_v13 }
 0x5c6   :  { %20590 = vmatmul.mubr.f32.vlgmr.msra.gmra.mrb[6].mxu1 %v3024_v52 }
 0x5c7   :  { %20593 = vmatpush3.xpose.msra.mxu1 %v2959_v53  ;;  %20594 = vmatprep.mubr.msk.f32.mxu1 %vm23090_vm1, %v23089_v13 }
 0x5c8   :  { %20627 = vmatprep.subr.mxu1 %v23089_v13 }
 0x5ce   :  { %20595 = vmatmul.mubr.f32.vlgmr.msra.gmra.mrb[6].mxu1 %v3024_v52 }
 0x5cf   :  { %20629 = vmatprep.mubr.msk.f32.mxu1 %vm23090_vm1, %v23089_v13 }
 0x649   :  { %v23399_v62 = vpop.f32.mrb[2].mxu0 }
 0x64a   :  { %v20506_v63 = vpop.f32.mrb[3].mxu0 }
 0x675   :  { %v23401_v0 = vpop.f32.mrb[4].mxu1  ;;  %v2946_v1 = vpop.f32.mrb[4].mxu0 }
 0x676   :  { %v20536_v2 = vpop.f32.mrb[5].mxu1  ;;  %v20566_v5 = vpop.f32.mrb[5].mxu0  ;;  %v3404_v6 = vsel %vm666_vm2, %v2946_v1, -inf }
 0x677   :  { %3405 = vmax.xlane.f32.xlu0 %v3404_v6 }
 0x6a1   :  { %v3400_v7 = vpop.f32.mrb[6].mxu1 }
 0x6a2   :  { %v20596_v8 = vpop.f32.mrb[7].mxu1  ;;  %v3407_v10 = vsel %vm666_vm2, %v3400_v7, -inf }
 0x6a3   :  { %3408 = vmax.xlane.f32.xlu1 %v3407_v10 }
 0x6b4   :  { %3878 = vrot.lane.b32.xlu1 %v23231_v18, %s23095_s17 }
 0x6b8   :  { %4330 = vrot.lane.b32.xlu1 %v23233_v20, %s23096_s18 }
 0x6bc   :  { %4784 = vrot.lane.b32.xlu1 %v23231_v18, %s23096_s18 }
 0x6c0   :  { %4786 = vrot.lane.b32.xlu1 %v23231_v18, %s23097_s19 }
 0x704   :  { %v3406_v11 = vpop.xlane.xlu0 %3405 }
 0x705   :  { %v3410_v12 = vsub.f32 %v2946_v1, %v3406_v11 }
 0x707   :  { %v3412_v14 = vmul.f32 1.442695, %v3410_v12 }
 0x709   :  { %22867 = vpow2.f32 %v3412_v14 }
 0x713   :  { %v22868_v9 = vpop.eup %22867 }
 0x714   :  { %v3416_v15 = vsel %vm666_vm2, %v22868_v9, 0.0 }
 0x715   :  { %3417 = vadd.xlane.f32.xlu0 %v3416_v15 }
 0x730   :  { %v3409_v16 = vpop.xlane.xlu1 %3408 }
 0x731   :  { %v3411_v17 = vsub.f32 %v3400_v7, %v3409_v16 }
 0x733   :  { %v3414_v19 = vmul.f32 1.442695, %v3411_v17 }
 0x734   :  { %v3879_v21 = vpop.permute.xlu1 %3878 }
 0x735   :  { %22869 = vpow2.f32 %v3414_v19  ;;  %v23414_v22 = vand.u32 4294901760, %v3879_v21 }
 0x737   :  { %20628 = vmatpush3.msra.mxu1 %v23414_v22  ;;  %v3962_v41 = vsub.f32 %v3879_v21, %v23414_v22 }
 0x738   :  { %20632 = vmatprep.subr.mxu1 %v23089_v13  ;;  %v4331_v53 = vpop.permute.xlu1 %4330 }
 0x739   :  { %v3963_v46 = vand.u32 4294901760, %v3962_v41  ;;  %v4334_v55 = vsel %vm666_vm2, %v4331_v53, 0 }
 0x73a   :  { %v23449_v57 = vand.u32 4294901760, %v4334_v55 }
 0x73b   :  { %v3964_v49 = vsub.f32 %v3962_v41, %v3963_v46 }
 0x73c   :  { %v4405_v59 = vsub.f32 %v4334_v55, %v23449_v57  ;;  %v4785_v61 = vpop.permute.xlu1 %4784 }
 0x73d   :  { %v3965_v52 = vand.u32 4294901760, %v3964_v49  ;;  %v4788_v7 = vsel %vm666_vm2, %v4785_v61, 0 }
 0x73e   :  { %v4406_v63 = vand.u32 4294901760, %v4405_v59  ;;  %v23475_v11 = vand.u32 4294901760, %v4788_v7 }
 0x73f   :  { %v22870_v23 = vpop.eup %22869 }
 0x740   :  { %v3419_v24 = vsel %vm666_vm2, %v22870_v23, 0.0  ;;  %v4407_v2 = vsub.f32 %v4405_v59, %v4406_v63  ;;  %v4787_v5 = vpop.permute.xlu1 %4786 }
 0x741   :  { %3420 = vadd.xlane.f32.xlu0 %v3419_v24  ;;  %v4790_v8 = vsel %vm666_vm2, %v4787_v5, 0 }
 0x742   :  { %v4408_v10 = vand.u32 4294901760, %v4407_v2  ;;  %v4793_v14 = vand.u32 4294901760, %v4790_v8 }
 0x744   :  { %v4870_v15 = vsub.f32 %v4790_v8, %v4793_v14 }
 0x746   :  { %v4871_v17 = vand.u32 4294901760, %v4870_v15 }
 0x748   :  { %v4872_v21 = vsub.f32 %v4870_v15, %v4871_v17 }
 0x757   :  { %3426 = vrot.lane.b32.xlu0 %v23233_v20, %s23095_s17 }
 0x75b   :  { %4332 = vrot.lane.b32.xlu0 %v23233_v20, %s23097_s19 }
 0x7a2   :  { %v3418_v25 = vpop.xlane.xlu0 %3417 }
 0x7a3   :  { %22871 = vrcp.f32 %v3418_v25 }
 0x7ad   :  { %v22872_v26 = vpop.eup %22871 }
 0x7ae   :  { %v3423_v27 = vmul.f32 %v22872_v26, %v22868_v9  ;;  %v4859_v9 = vsub.f32 %v4788_v7, %v23475_v11 }
 0x7b0   :  { %v3430_v28 = vsel %vm666_vm2, %v3423_v27, 0  ;;  %v4860_v16 = vand.u32 4294901760, %v4859_v9 }
 0x7b1   :  { %v23424_v29 = vand.u32 4294901760, %v3430_v28 }
 0x7b2   :  { %v4861_v19 = vsub.f32 %v4859_v9, %v4860_v16 }
 0x7b3   :  { %v3499_v30 = vsub.f32 %v3430_v28, %v23424_v29 }
 0x7b5   :  { %v3500_v31 = vand.u32 4294901760, %v3499_v30 }
 0x7b7   :  { %v3501_v33 = vsub.f32 %v3499_v30, %v3500_v31 }
 0x7b9   :  { %v3502_v36 = vand.u32 4294901760, %v3501_v33 }
 0x7ce   :  { %v3421_v32 = vpop.xlane.xlu0 %3420 }
 0x7cf   :  { %22873 = vrcp.f32 %v3421_v32 }
 0x7d2   :  { %v3427_v34 = vpop.permute.xlu0 %3426 }
 0x7d3   :  { %v3433_v35 = vand.u32 4294901760, %v3427_v34 }
 0x7d5   :  { %v3510_v37 = vsub.f32 %v3427_v34, %v3433_v35  ;;  %20598 = vmatpush3.msra.mxu0 %v3433_v35 }
 0x7d6   :  { %20600 = vmatmul.mubr.f32.vlgmr.msra.gmra.mrb[6].mxu0 %v3502_v36  ;;  %20602 = vmatprep.subr.mxu0 %v23089_v13  ;;  %v4333_v54 = vpop.permute.xlu0 %4332 }
 0x7d7   :  { %v3511_v38 = vand.u32 4294901760, %v3510_v37  ;;  %20604 = vmatprep.mubr.msk.f32.mxu0 %vm23090_vm1, %v23089_v13  ;;  %v4336_v56 = vsel %vm666_vm2, %v4333_v54, 0 }
 0x7d8   :  { %v23453_v58 = vand.u32 4294901760, %v4336_v56 }
 0x7d9   :  { %v22874_v39 = vpop.eup %22873  ;;  %v3512_v40 = vsub.f32 %v3510_v37, %v3511_v38 }
 0x7da   :  { %v3425_v42 = vmul.f32 %v22874_v39, %v22870_v23  ;;  %v4416_v60 = vsub.f32 %v4336_v56, %v23453_v58  ;;  %v4873_v23 = vand.u32 4294901760, %v4872_v21 }
 0x7db   :  { %v3513_v43 = vand.u32 4294901760, %v3512_v40 }
 0x7dc   :  { %v3882_v44 = vsel %vm666_vm2, %v3425_v42, 0  ;;  %v4417_v1 = vand.u32 4294901760, %v4416_v60 }
 0x7dd   :  { %20603 = vmatpush3.msra.mxu0 %v3513_v43  ;;  %v23432_v45 = vand.u32 4294901760, %v3882_v44 }
 0x7de   :  { %20605 = vmatmul.mubr.f32.vlgmr.msra.gmra.mrb[6].mxu0 %v23424_v29  ;;  %20607 = vmatprep.subr.mxu0 %v23089_v13  ;;  %v4418_v6 = vsub.f32 %v4416_v60, %v4417_v1 }
 0x7df   :  { %20608 = vmatpush3.msra.mxu0 %v3510_v37  ;;  %20609 = vmatprep.mubr.msk.f32.mxu0 %vm23090_vm1, %v23089_v13  ;;  %v3951_v47 = vsub.f32 %v3882_v44, %v23432_v45 }
 0x7e0   :  { %20612 = vmatprep.subr.mxu0 %v23089_v13  ;;  %v4419_v12 = vand.u32 4294901760, %v4418_v6 }
 0x7e1   :  { %v3952_v48 = vand.u32 4294901760, %v3951_v47 }
 0x7e3   :  { %v3953_v50 = vsub.f32 %v3951_v47, %v3952_v48 }
 0x7e5   :  { %v3954_v51 = vand.u32 4294901760, %v3953_v50 }
 0x7e6   :  { %20610 = vmatmul.mubr.f32.vlgmr.msra.gmra.mrb[6].mxu0 %v3499_v30 }
 0x7e7   :  { %20613 = vmatpush3.msra.mxu0 %v3433_v35  ;;  %20630 = vmatmul.mubr.f32.vlgmr.msra.gmra.mrb[8].mxu1 %v3954_v51 }
 0x7e8   :  { %20633 = vmatpush3.msra.mxu1 %v3965_v52  ;;  %20614 = vmatprep.mubr.msk.f32.mxu0 %vm23090_vm1, %v23089_v13 }
 0x7e9   :  { %20617 = vmatprep.subr.mxu0 %v23089_v13  ;;  %20634 = vmatprep.mubr.msk.f32.mxu1 %vm23090_vm1, %v23089_v13 }
 0x7ea   :  { %20637 = vmatprep.subr.mxu1 %v23089_v13 }
 0x7ee   :  { %20615 = vmatmul.mubr.f32.vlgmr.msra.gmra.mrb[6].mxu0 %v3500_v31 }
 0x7ef   :  { %20618 = vmatpush3.msra.mxu0 %v3511_v38  ;;  %20635 = vmatmul.mubr.f32.vlgmr.msra.gmra.mrb[8].mxu1 %v23432_v45 }
 0x7f0   :  { %20638 = vmatpush3.msra.mxu1 %v3962_v41  ;;  %20619 = vmatprep.mubr.msk.f32.mxu0 %vm23090_vm1, %v23089_v13 }
 0x7f1   :  { %20622 = vmatprep.subr.mxu0 %v23089_v13  ;;  %20639 = vmatprep.mubr.msk.f32.mxu1 %vm23090_vm1, %v23089_v13 }
 0x7f2   :  { %20642 = vmatprep.subr.mxu1 %v23089_v13 }
 0x7f6   :  { %20620 = vmatmul.mubr.f32.vlgmr.msra.gmra.mrb[6].mxu0 %v23424_v29 }
 0x7f7   :  { %20623 = vmatpush3.msra.mxu0 %v3433_v35  ;;  %20640 = vmatmul.mubr.f32.vlgmr.msra.gmra.mrb[8].mxu1 %v3951_v47 }
 0x7f8   :  { %20643 = vmatpush3.msra.mxu1 %v23414_v22  ;;  %20624 = vmatprep.mubr.msk.f32.mxu0 %vm23090_vm1, %v23089_v13 }
 0x7f9   :  { %20657 = vmatprep.subr.mxu0 %v23089_v13  ;;  %20644 = vmatprep.mubr.msk.f32.mxu1 %vm23090_vm1, %v23089_v13 }
 0x7fa   :  { %20647 = vmatprep.subr.mxu1 %v23089_v13 }
 0x7fe   :  { %20625 = vmatmul.mubr.f32.vlgmr.msra.gmra.mrb[6].mxu0 %v23424_v29 }
 0x7ff   :  { %20658 = vmatpush3.xpose.msra.mxu0 %v23453_v58  ;;  %20645 = vmatmul.mubr.f32.vlgmr.msra.gmra.mrb[8].mxu1 %v3952_v48 }
 0x800   :  { %20648 = vmatpush3.msra.mxu1 %v3963_v46  ;;  %20659 = vmatprep.mubr.msk.f32.mxu0 %vm23090_vm1, %v23089_v13 }
 0x801   :  { %20662 = vmatprep.subr.mxu0 %v23089_v13  ;;  %20649 = vmatprep.mubr.msk.f32.mxu1 %vm23090_vm1, %v23089_v13 }
 0x802   :  { %20660 = vmatmul.mubr.f32.vlgmr.msra.gmra.mrb[8].mxu0 %v4408_v10  ;;  %20652 = vmatprep.subr.mxu1 %v23089_v13 }
 0x803   :  { %20663 = vmatpush3.xpose.msra.mxu0 %v4419_v12  ;;  %20664 = vmatprep.mubr.msk.f32.mxu0 %vm23090_vm1, %v23089_v13 }
 0x804   :  { %20667 = vmatprep.subr.mxu0 %v23089_v13 }
 0x807   :  { %20650 = vmatmul.mubr.f32.vlgmr.msra.gmra.mrb[8].mxu1 %v23432_v45 }
 0x808   :  { %20653 = vmatpush3.msra.mxu1 %v23414_v22  ;;  %20654 = vmatprep.mubr.msk.f32.mxu1 %vm23090_vm1, %v23089_v13  ;;  %v4862_v22 = vand.u32 4294901760, %v4861_v19 }
 0x809   :  { %20687 = vmatprep.subr.mxu1 %v23089_v13 }
 0x80a   :  { %20665 = vmatmul.mubr.f32.vlgmr.msra.gmra.mrb[8].mxu0 %v23449_v57 }
 0x80b   :  { %20668 = vmatpush3.xpose.msra.mxu0 %v4416_v60  ;;  %20669 = vmatprep.mubr.msk.f32.mxu0 %vm23090_vm1, %v23089_v13 }
 0x80c   :  { %20672 = vmatprep.subr.mxu0 %v23089_v13 }
 0x80f   :  { %20655 = vmatmul.mubr.f32.vlgmr.msra.gmra.mrb[8].mxu1 %v23432_v45 }
 0x810   :  { %20688 = vmatpush3.xpose.msra.mxu1 %v4793_v14  ;;  %20689 = vmatprep.mubr.msk.f32.mxu1 %vm23090_vm1, %v23089_v13 }
 0x811   :  { %20692 = vmatprep.subr.mxu1 %v23089_v13 }
 0x812   :  { %20670 = vmatmul.mubr.f32.vlgmr.msra.gmra.mrb[8].mxu0 %v4405_v59 }
 0x813   :  { %20673 = vmatpush3.xpose.msra.mxu0 %v23453_v58  ;;  %20690 = vmatmul.mubr.f32.vlgmr.msra.gmra.mrb[10].mxu1 %v4862_v22 }
 0x814   :  { %20693 = vmatpush3.xpose.msra.mxu1 %v4873_v23  ;;  %20674 = vmatprep.mubr.msk.f32.mxu0 %vm23090_vm1, %v23089_v13 }
 0x815   :  { %20677 = vmatprep.subr.mxu0 %v23089_v13  ;;  %20694 = vmatprep.mubr.msk.f32.mxu1 %vm23090_vm1, %v23089_v13 }
 0x816   :  { %20697 = vmatprep.subr.mxu1 %v23089_v13 }
 0x81a   :  { %20675 = vmatmul.mubr.f32.vlgmr.msra.gmra.mrb[8].mxu0 %v4406_v63 }
 0x81b   :  { %20678 = vmatpush3.xpose.msra.mxu0 %v4417_v1  ;;  %20695 = vmatmul.mubr.f32.vlgmr.msra.gmra.mrb[10].mxu1 %v23475_v11 }
 0x81c   :  { %20698 = vmatpush3.xpose.msra.mxu1 %v4870_v15  ;;  %20679 = vmatprep.mubr.msk.f32.mxu0 %vm23090_vm1, %v23089_v13 }
 0x81d   :  { %20682 = vmatprep.subr.mxu0 %v23089_v13  ;;  %20699 = vmatprep.mubr.msk.f32.mxu1 %vm23090_vm1, %v23089_v13 }
 0x81e   :  { %20702 = vmatprep.subr.mxu1 %v23089_v13 }
 0x822   :  { %20680 = vmatmul.mubr.f32.vlgmr.msra.gmra.mrb[8].mxu0 %v23449_v57 }
 0x823   :  { %20683 = vmatpush3.xpose.msra.mxu0 %v23453_v58  ;;  %20700 = vmatmul.mubr.f32.vlgmr.msra.gmra.mrb[10].mxu1 %v4859_v9 }
 0x824   :  { %20703 = vmatpush3.xpose.msra.mxu1 %v4793_v14  ;;  %20684 = vmatprep.mubr.msk.f32.mxu0 %vm23090_vm1, %v23089_v13 }
 0x825   :  { %20704 = vmatprep.mubr.msk.f32.mxu1 %vm23090_vm1, %v23089_v13  ;;  %20707 = vmatprep.subr.mxu1 %v23089_v13 }
 0x826   :  { %20717 = vmatprep.subr.mxu0 %v23089_v13 }
 0x82a   :  { %20685 = vmatmul.mubr.f32.vlgmr.msra.gmra.mrb[8].mxu0 %v23449_v57 }
 0x82b   :  { %20705 = vmatmul.mubr.f32.vlgmr.msra.gmra.mrb[10].mxu1 %v4860_v16  ;;  %20719 = vmatprep.mubr.msk.f32.mxu0 %vm23090_vm1, %v23089_v13 }
 0x82c   :  { %20708 = vmatpush3.xpose.msra.mxu1 %v4871_v17  ;;  %20709 = vmatprep.mubr.msk.f32.mxu1 %vm23090_vm1, %v23089_v13 }
 0x82d   :  { %20712 = vmatprep.subr.mxu1 %v23089_v13 }
 0x833   :  { %20710 = vmatmul.mubr.f32.vlgmr.msra.gmra.mrb[10].mxu1 %v23475_v11 }
 0x834   :  { %20713 = vmatpush3.xpose.msra.mxu1 %v4793_v14  ;;  %20714 = vmatprep.mubr.msk.f32.mxu1 %vm23090_vm1, %v23089_v13 }
 0x835   :  { %20747 = vmatprep.subr.mxu1 %v23089_v13 }
 0x83b   :  { %20715 = vmatmul.mubr.f32.vlgmr.msra.gmra.mrb[10].mxu1 %v23475_v11 }
 0x83c   :  { %20749 = vmatprep.mubr.msk.f32.mxu1 %vm23090_vm1, %v23089_v13 }
 0x8d1   :  { %v23533_v24 = vpop.f32.mrb[6].mxu0 }
 0x8d2   :  { %v20626_v25 = vpop.f32.mrb[7].mxu0 }
 0x8e2   :  { %v23535_v26 = vpop.f32.mrb[8].mxu1 }
 0x8e3   :  { %v20656_v27 = vpop.f32.mrb[9].mxu1 }
 0x8fd   :  { %v4780_v28 = vpop.f32.mrb[8].mxu0 }
 0x8fe   :  { %v20686_v29 = vpop.f32.mrb[9].mxu0  ;;  %v5238_v30 = vsel %vm666_vm2, %v4780_v28, -inf }
 0x8ff   :  { %5239 = vmax.xlane.f32.xlu0 %v5238_v30 }
 0x90e   :  { %v5234_v31 = vpop.f32.mrb[10].mxu1 }
 0x90f   :  { %v20716_v32 = vpop.f32.mrb[11].mxu1  ;;  %v5241_v33 = vsel %vm666_vm2, %v5234_v31, -inf }
 0x910   :  { %5242 = vmax.xlane.f32.xlu1 %v5241_v33 }
 0x921   :  { %5712 = vrot.lane.b32.xlu1 %v23231_v18, %s23098_s20 }
 0x925   :  { %6164 = vrot.lane.b32.xlu1 %v23233_v20, %s23099_s21 }
 0x929   :  { %6618 = vrot.lane.b32.xlu1 %v23231_v18, %s23099_s21 }
 0x92d   :  { %6620 = vrot.lane.b32.xlu1 %v23231_v18, %s23100_s22 }
 0x98c   :  { %v5240_v34 = vpop.xlane.xlu0 %5239 }
 0x98d   :  { %v5244_v35 = vsub.f32 %v4780_v28, %v5240_v34 }
 0x98f   :  { %v5246_v36 = vmul.f32 1.442695, %v5244_v35 }
 0x991   :  { %22875 = vpow2.f32 %v5246_v36 }
 0x99b   :  { %v22876_v37 = vpop.eup %22875 }
 0x99c   :  { %v5250_v38 = vsel %vm666_vm2, %v22876_v37, 0.0 }
 0x99d   :  { %5251 = vadd.xlane.f32.xlu0 %v5250_v38  ;;  %v5243_v39 = vpop.xlane.xlu1 %5242 }
 0x99e   :  { %v5245_v40 = vsub.f32 %v5234_v31, %v5243_v39 }
 0x9a0   :  { %v5248_v41 = vmul.f32 1.442695, %v5245_v40 }
 0x9a1   :  { %v5713_v42 = vpop.permute.xlu1 %5712 }
 0x9a2   :  { %22877 = vpow2.f32 %v5248_v41  ;;  %v23548_v43 = vand.u32 4294901760, %v5713_v42 }
 0x9a4   :  { %20748 = vmatpush3.msra.mxu1 %v23548_v43  ;;  %v5796_v63 = vsub.f32 %v5713_v42, %v23548_v43 }
 0x9a5   :  { %20752 = vmatprep.subr.mxu1 %v23089_v13  ;;  %v6165_v15 = vpop.permute.xlu1 %6164 }
 0x9a6   :  { %v5797_v7 = vand.u32 4294901760, %v5796_v63  ;;  %v6168_v17 = vsel %vm666_vm2, %v6165_v15, 0 }
 0x9a7   :  { %v23583_v21 = vand.u32 4294901760, %v6168_v17 }
 0x9a8   :  { %v5798_v11 = vsub.f32 %v5796_v63, %v5797_v7 }
 0x9a9   :  { %v6239_v23 = vsub.f32 %v6168_v17, %v23583_v21  ;;  %v6619_v27 = vpop.permute.xlu1 %6618 }
 0x9aa   :  { %v5799_v9 = vand.u32 4294901760, %v5798_v11  ;;  %v6622_v33 = vsel %vm666_vm2, %v6619_v27, 0 }
 0x9ab   :  { %v6240_v28 = vand.u32 4294901760, %v6239_v23  ;;  %v23609_v36 = vand.u32 4294901760, %v6622_v33 }
 0x9ac   :  { %v22878_v44 = vpop.eup %22877 }
 0x9ad   :  { %v5253_v45 = vsel %vm666_vm2, %v22878_v44, 0.0  ;;  %v6241_v30 = vsub.f32 %v6239_v23, %v6240_v28  ;;  %v6621_v31 = vpop.permute.xlu1 %6620  ;;  %v6693_v39 = vsub.f32 %v6622_v33, %v23609_v36 }
 0x9ae   :  { %5254 = vadd.xlane.f32.xlu0 %v5253_v45  ;;  %v6624_v34 = vsel %vm666_vm2, %v6621_v31, 0 }
 0x9af   :  { %v6242_v35 = vand.u32 4294901760, %v6241_v30  ;;  %v6627_v38 = vand.u32 4294901760, %v6624_v34  ;;  %v6694_v41 = vand.u32 4294901760, %v6693_v39 }
 0x9b1   :  { %v6704_v40 = vsub.f32 %v6624_v34, %v6627_v38 }
 0x9b3   :  { %v6705_v42 = vand.u32 4294901760, %v6704_v40 }
 0x9b5   :  { %v6706_v45 = vsub.f32 %v6704_v40, %v6705_v42 }
 0x9c4   :  { %5260 = vrot.lane.b32.xlu0 %v23233_v20, %s23098_s20 }
 0x9c8   :  { %6166 = vrot.lane.b32.xlu0 %v23233_v20, %s23100_s22 }
 0xa2a   :  { %v5252_v46 = vpop.xlane.xlu0 %5251 }
 0xa2b   :  { %22879 = vrcp.f32 %v5252_v46  ;;  %v6707_v46 = vand.u32 4294901760, %v6706_v45 }
 0xa35   :  { %v22880_v47 = vpop.eup %22879 }
 0xa36   :  { %v5257_v48 = vmul.f32 %v22880_v47, %v22876_v37 }
 0xa38   :  { %v5264_v49 = vsel %vm666_vm2, %v5257_v48, 0 }
 0xa39   :  { %v23558_v50 = vand.u32 4294901760, %v5264_v49 }
 0xa3b   :  { %v5255_v51 = vpop.xlane.xlu0 %5254  ;;  %v5333_v52 = vsub.f32 %v5264_v49, %v23558_v50 }
 0xa3c   :  { %22881 = vrcp.f32 %v5255_v51 }
 0xa3d   :  { %v5334_v53 = vand.u32 4294901760, %v5333_v52 }
 0xa3f   :  { %v5261_v54 = vpop.permute.xlu0 %5260  ;;  %v5335_v55 = vsub.f32 %v5333_v52, %v5334_v53 }
 0xa40   :  { %v5267_v56 = vand.u32 4294901760, %v5261_v54 }
 0xa41   :  { %v5336_v57 = vand.u32 4294901760, %v5335_v55 }
 0xa42   :  { %v5344_v58 = vsub.f32 %v5261_v54, %v5267_v56  ;;  %20718 = vmatpush3.msra.mxu0 %v5267_v56 }
 0xa43   :  { %20720 = vmatmul.mubr.f32.vlgmr.msra.gmra.mrb[10].mxu0 %v5336_v57  ;;  %20722 = vmatprep.subr.mxu0 %v23089_v13  ;;  %v6167_v16 = vpop.permute.xlu0 %6166 }
 0xa44   :  { %v5345_v59 = vand.u32 4294901760, %v5344_v58  ;;  %20724 = vmatprep.mubr.msk.f32.mxu0 %vm23090_vm1, %v23089_v13  ;;  %v6170_v19 = vsel %vm666_vm2, %v6167_v16, 0 }
 0xa45   :  { %v23587_v22 = vand.u32 4294901760, %v6170_v19 }
 0xa46   :  { %v22882_v60 = vpop.eup %22881  ;;  %v5346_v61 = vsub.f32 %v5344_v58, %v5345_v59 }
 0xa47   :  { %v5259_v1 = vmul.f32 %v22882_v60, %v22878_v44  ;;  %v6250_v25 = vsub.f32 %v6170_v19, %v23587_v22  ;;  %v6695_v44 = vsub.f32 %v6693_v39, %v6694_v41 }
 0xa48   :  { %v5347_v2 = vand.u32 4294901760, %v5346_v61 }
 0xa49   :  { %v5716_v5 = vsel %vm666_vm2, %v5259_v1, 0  ;;  %v6251_v29 = vand.u32 4294901760, %v6250_v25 }
 0xa4a   :  { %20723 = vmatpush3.msra.mxu0 %v5347_v2  ;;  %v23566_v6 = vand.u32 4294901760, %v5716_v5 }
 0xa4b   :  { %20725 = vmatmul.mubr.f32.vlgmr.msra.gmra.mrb[10].mxu0 %v23558_v50  ;;  %20727 = vmatprep.subr.mxu0 %v23089_v13  ;;  %v6252_v32 = vsub.f32 %v6250_v25, %v6251_v29 }
 0xa4c   :  { %20728 = vmatpush3.msra.mxu0 %v5344_v58  ;;  %20729 = vmatprep.mubr.msk.f32.mxu0 %vm23090_vm1, %v23089_v13  ;;  %v5785_v8 = vsub.f32 %v5716_v5, %v23566_v6 }
 0xa4d   :  { %20732 = vmatprep.subr.mxu0 %v23089_v13  ;;  %v6253_v37 = vand.u32 4294901760, %v6252_v32 }
 0xa4e   :  { %v5786_v10 = vand.u32 4294901760, %v5785_v8 }
 0xa50   :  { %v5787_v12 = vsub.f32 %v5785_v8, %v5786_v10 }
 0xa52   :  { %v5788_v14 = vand.u32 4294901760, %v5787_v12 }
 0xa53   :  { %20730 = vmatmul.mubr.f32.vlgmr.msra.gmra.mrb[10].mxu0 %v5333_v52 }
 0xa54   :  { %20733 = vmatpush3.msra.mxu0 %v5267_v56  ;;  %20750 = vmatmul.mubr.f32.vlgmr.msra.gmra.mrb[12].mxu1 %v5788_v14 }
 0xa55   :  { %20753 = vmatpush3.msra.mxu1 %v5799_v9  ;;  %20734 = vmatprep.mubr.msk.f32.mxu0 %vm23090_vm1, %v23089_v13 }
 0xa56   :  { %20737 = vmatprep.subr.mxu0 %v23089_v13  ;;  %20754 = vmatprep.mubr.msk.f32.mxu1 %vm23090_vm1, %v23089_v13 }
 0xa57   :  { %20757 = vmatprep.subr.mxu1 %v23089_v13 }
 0xa5b   :  { %20735 = vmatmul.mubr.f32.vlgmr.msra.gmra.mrb[10].mxu0 %v5334_v53 }
 0xa5c   :  { %20738 = vmatpush3.msra.mxu0 %v5345_v59  ;;  %20755 = vmatmul.mubr.f32.vlgmr.msra.gmra.mrb[12].mxu1 %v23566_v6 }
 0xa5d   :  { %20758 = vmatpush3.msra.mxu1 %v5796_v63  ;;  %20739 = vmatprep.mubr.msk.f32.mxu0 %vm23090_vm1, %v23089_v13 }
 0xa5e   :  { %20742 = vmatprep.subr.mxu0 %v23089_v13  ;;  %20759 = vmatprep.mubr.msk.f32.mxu1 %vm23090_vm1, %v23089_v13 }
 0xa5f   :  { %20762 = vmatprep.subr.mxu1 %v23089_v13 }
 0xa63   :  { %20740 = vmatmul.mubr.f32.vlgmr.msra.gmra.mrb[10].mxu0 %v23558_v50 }
 0xa64   :  { %20743 = vmatpush3.msra.mxu0 %v5267_v56  ;;  %20760 = vmatmul.mubr.f32.vlgmr.msra.gmra.mrb[12].mxu1 %v5785_v8 }
 0xa65   :  { %20763 = vmatpush3.msra.mxu1 %v23548_v43  ;;  %20744 = vmatprep.mubr.msk.f32.mxu0 %vm23090_vm1, %v23089_v13 }
 0xa66   :  { %20777 = vmatprep.subr.mxu0 %v23089_v13  ;;  %20764 = vmatprep.mubr.msk.f32.mxu1 %vm23090_vm1, %v23089_v13 }
 0xa67   :  { %20767 = vmatprep.subr.mxu1 %v23089_v13 }
 0xa6b   :  { %20745 = vmatmul.mubr.f32.vlgmr.msra.gmra.mrb[10].mxu0 %v23558_v50 }
 0xa6c   :  { %20778 = vmatpush3.xpose.msra.mxu0 %v23587_v22  ;;  %20765 = vmatmul.mubr.f32.vlgmr.msra.gmra.mrb[12].mxu1 %v5786_v10 }
 0xa6d   :  { %20768 = vmatpush3.msra.mxu1 %v5797_v7  ;;  %20779 = vmatprep.mubr.msk.f32.mxu0 %vm23090_vm1, %v23089_v13 }
 0xa6e   :  { %20782 = vmatprep.subr.mxu0 %v23089_v13  ;;  %20769 = vmatprep.mubr.msk.f32.mxu1 %vm23090_vm1, %v23089_v13 }
 0xa6f   :  { %20780 = vmatmul.mubr.f32.vlgmr.msra.gmra.mrb[12].mxu0 %v6242_v35  ;;  %20772 = vmatprep.subr.mxu1 %v23089_v13 }
 0xa70   :  { %20783 = vmatpush3.xpose.msra.mxu0 %v6253_v37  ;;  %20784 = vmatprep.mubr.msk.f32.mxu0 %vm23090_vm1, %v23089_v13 }
 0xa71   :  { %20787 = vmatprep.subr.mxu0 %v23089_v13 }
 0xa74   :  { %20770 = vmatmul.mubr.f32.vlgmr.msra.gmra.mrb[12].mxu1 %v23566_v6 }
 0xa75   :  { %20773 = vmatpush3.msra.mxu1 %v23548_v43  ;;  %20774 = vmatprep.mubr.msk.f32.mxu1 %vm23090_vm1, %v23089_v13  ;;  %v6696_v43 = vand.u32 4294901760, %v6695_v44 }
 0xa76   :  { %20807 = vmatprep.subr.mxu1 %v23089_v13 }
 0xa77   :  { %20785 = vmatmul.mubr.f32.vlgmr.msra.gmra.mrb[12].mxu0 %v23583_v21 }
 0xa78   :  { %20788 = vmatpush3.xpose.msra.mxu0 %v6250_v25  ;;  %20789 = vmatprep.mubr.msk.f32.mxu0 %vm23090_vm1, %v23089_v13 }
 0xa79   :  { %20792 = vmatprep.subr.mxu0 %v23089_v13 }
 0xa7c   :  { %20775 = vmatmul.mubr.f32.vlgmr.msra.gmra.mrb[12].mxu1 %v23566_v6 }
 0xa7d   :  { %20808 = vmatpush3.xpose.msra.mxu1 %v6627_v38  ;;  %20809 = vmatprep.mubr.msk.f32.mxu1 %vm23090_vm1, %v23089_v13 }
 0xa7e   :  { %20812 = vmatprep.subr.mxu1 %v23089_v13 }
 0xa7f   :  { %20790 = vmatmul.mubr.f32.vlgmr.msra.gmra.mrb[12].mxu0 %v6239_v23 }
 0xa80   :  { %20793 = vmatpush3.xpose.msra.mxu0 %v23587_v22  ;;  %20810 = vmatmul.mubr.f32.vlgmr.msra.gmra.mrb[14].mxu1 %v6696_v43  ;;  %v22950_v43 = vld [vmem:[#allocation5 + $0x48] sm:$0xff] }
 0xa81   :  { %20813 = vmatpush3.xpose.msra.mxu1 %v6707_v46  ;;  %20794 = vmatprep.mubr.msk.f32.mxu0 %vm23090_vm1, %v23089_v13 }
 0xa82   :  { %20797 = vmatprep.subr.mxu0 %v23089_v13  ;;  %20814 = vmatprep.mubr.msk.f32.mxu1 %vm23090_vm1, %v23089_v13 }
 0xa83   :  { %20817 = vmatprep.subr.mxu1 %v23089_v13 }
 0xa87   :  { %20795 = vmatmul.mubr.f32.vlgmr.msra.gmra.mrb[12].mxu0 %v6240_v28 }
 0xa88   :  { %20798 = vmatpush3.xpose.msra.mxu0 %v6251_v29  ;;  %20815 = vmatmul.mubr.f32.vlgmr.msra.gmra.mrb[14].mxu1 %v23609_v36 }
 0xa89   :  { %20818 = vmatpush3.xpose.msra.mxu1 %v6704_v40  ;;  %20799 = vmatprep.mubr.msk.f32.mxu0 %vm23090_vm1, %v23089_v13 }
 0xa8a   :  { %20802 = vmatprep.subr.mxu0 %v23089_v13  ;;  %20819 = vmatprep.mubr.msk.f32.mxu1 %vm23090_vm1, %v23089_v13 }
 0xa8b   :  { %20822 = vmatprep.subr.mxu1 %v23089_v13 }
 0xa8f   :  { %20800 = vmatmul.mubr.f32.vlgmr.msra.gmra.mrb[12].mxu0 %v23583_v21 }
 0xa90   :  { %20803 = vmatpush3.xpose.msra.mxu0 %v23587_v22  ;;  %20820 = vmatmul.mubr.f32.vlgmr.msra.gmra.mrb[14].mxu1 %v6693_v39 }
 0xa91   :  { %20823 = vmatpush3.xpose.msra.mxu1 %v6627_v38  ;;  %20804 = vmatprep.mubr.msk.f32.mxu0 %vm23090_vm1, %v23089_v13 }
 0xa92   :  { %20824 = vmatprep.mubr.msk.f32.mxu1 %vm23090_vm1, %v23089_v13  ;;  %20827 = vmatprep.subr.mxu1 %v23089_v13 }
 0xa93   :  { %20837 = vmatprep.subr.mxu0 %v23089_v13 }
 0xa97   :  { %20805 = vmatmul.mubr.f32.vlgmr.msra.gmra.mrb[12].mxu0 %v23583_v21 }
 0xa98   :  { %20825 = vmatmul.mubr.f32.vlgmr.msra.gmra.mrb[14].mxu1 %v6694_v41  ;;  %20839 = vmatprep.mubr.msk.f32.mxu0 %vm23090_vm1, %v23089_v13  ;;  %v22948_v41 = vld [vmem:[#allocation5] sm:$0xff] }
 0xa99   :  { %20828 = vmatpush3.xpose.msra.mxu1 %v6705_v42  ;;  %20829 = vmatprep.mubr.msk.f32.mxu1 %vm23090_vm1, %v23089_v13  ;;  %v22949_v42 = vld [vmem:[#allocation5 + $0x30] sm:$0xff] }
 0xa9a   :  { %20832 = vmatprep.subr.mxu1 %v23089_v13 }
 0xaa0   :  { %20830 = vmatmul.mubr.f32.vlgmr.msra.gmra.mrb[14].mxu1 %v23609_v36 }
 0xaa1   :  { %20833 = vmatpush3.xpose.msra.mxu1 %v6627_v38  ;;  %20834 = vmatprep.mubr.msk.f32.mxu1 %vm23090_vm1, %v23089_v13  ;;  %v22947_v38 = vld [vmem:[#allocation5 + $0x18] sm:$0xff] }
 0xaa2   :  { %20867 = vmatprep.subr.mxu1 %v23089_v13 }
 0xaa8   :  { %20835 = vmatmul.mubr.f32.vlgmr.msra.gmra.mrb[14].mxu1 %v23609_v36 }
 0xaa9   :  { %20869 = vmatprep.mubr.msk.f32.mxu1 %vm23090_vm1, %v23089_v13 }
 0xb3e   :  { %v5708_v47 = vpop.f32.mrb[10].mxu0 }
 0xb3f   :  { %v20746_v48 = vpop.f32.mrb[11].mxu0 }
 0xb4f   :  { %v6160_v49 = vpop.f32.mrb[12].mxu1 }
 0xb50   :  { %v20776_v50 = vpop.f32.mrb[13].mxu1 }
 0xb6a   :  { %v6614_v51 = vpop.f32.mrb[12].mxu0 }
 0xb6b   :  { %v20806_v52 = vpop.f32.mrb[13].mxu0  ;;  %v7072_v53 = vsel %vm666_vm2, %v6614_v51, -inf }
 0xb6c   :  { %7073 = vmax.xlane.f32.xlu0 %v7072_v53 }
 0xb7b   :  { %v7068_v54 = vpop.f32.mrb[14].mxu1 }
 0xb7c   :  { %v20836_v55 = vpop.f32.mrb[15].mxu1  ;;  %v7075_v56 = vsel %vm666_vm2, %v7068_v54, -inf }
 0xb7d   :  { %7076 = vmax.xlane.f32.xlu1 %v7075_v56 }
 0xb8e   :  { %7546 = vrot.lane.b32.xlu1 %v23231_v18, %s23101_s23 }
 0xb92   :  { %8000 = vrot.lane.b32.xlu1 %v23533_v24, %s23086_s13 }
 0xb96   :  { %8002 = vrot.lane.b32.xlu1 %v23535_v26, %s23086_s13 }
 0xb9a   :  { %8010 = vrot.lane.b32.xlu1 %v6160_v49, %s23102_s24 }
 0xb9e   :  { %8041 = vrot.lane.b32.xlu1 %v22947_v38, %s23103_s25 }
 0xbf9   :  { %v7074_v57 = vpop.xlane.xlu0 %7073 }
 0xbfa   :  { %v7078_v58 = vsub.f32 %v6614_v51, %v7074_v57 }
 0xbfc   :  { %v7080_v59 = vmul.f32 1.442695, %v7078_v58 }
 0xbfe   :  { %22883 = vpow2.f32 %v7080_v59 }
 0xc08   :  { %v22884_v60 = vpop.eup %22883 }
 0xc09   :  { %v7084_v61 = vsel %vm666_vm2, %v22884_v60, 0.0 }
 0xc0a   :  { %7085 = vadd.xlane.f32.xlu0 %v7084_v61  ;;  %v7077_v63 = vpop.xlane.xlu1 %7076 }
 0xc0b   :  { %v7079_v1 = vsub.f32 %v7068_v54, %v7077_v63 }
 0xc0d   :  { %v7082_v18 = vmul.f32 1.442695, %v7079_v1 }
 0xc0e   :  { %v7547_v2 = vpop.permute.xlu1 %7546 }
 0xc0f   :  { %22885 = vpow2.f32 %v7082_v18  ;;  %v23677_v24 = vand.u32 4294901760, %v7547_v2 }
 0xc11   :  { %20868 = vmatpush3.msra.mxu1 %v23677_v24  ;;  %v7630_v25 = vsub.f32 %v7547_v2, %v23677_v24 }
 0xc12   :  { %20872 = vmatprep.subr.mxu1 %v23089_v13  ;;  %v8001_v46 = vpop.permute.xlu1 %8000 }
 0xc13   :  { %v7631_v31 = vand.u32 4294901760, %v7630_v25  ;;  %v8022_v50 = vsel %vm666_vm2, %v23399_v62, %v8001_v46 }
 0xc15   :  { %v7632_v34 = vsub.f32 %v7630_v25, %v7631_v31 }
 0xc17   :  { %v7633_v37 = vand.u32 4294901760, %v7632_v34 }
 0xc19   :  { %v22886_v26 = vpop.eup %22885 }
 0xc1a   :  { %v7087_v5 = vsel %vm666_vm2, %v22886_v26, 0.0 }
 0xc1b   :  { %7088 = vadd.xlane.f32.xlu0 %v7087_v5 }
 0xc31   :  { %7094 = vrot.lane.b32.xlu0 %v23233_v20, %s23101_s23 }
 0xc35   :  { %8008 = vrot.lane.b32.xlu0 %v5708_v47, %s23102_s24  ;;  %v8003_v47 = vpop.permute.xlu1 %8002 }
 0xc39   :  { %v8011_v49 = vpop.permute.xlu1 %8010 }
 0xc3d   :  { %v8042_v55 = vpop.permute.xlu1 %8041 }
 0xc97   :  { %v7086_v6 = vpop.xlane.xlu0 %7085 }
 0xc98   :  { %22887 = vrcp.f32 %v7086_v6 }
 0xca2   :  { %v22888_v7 = vpop.eup %22887 }
 0xca3   :  { %v7091_v8 = vmul.f32 %v22888_v7, %v22884_v60  ;;  %v8061_v60 = vand.u32 4294901760, %v8042_v55  ;;  %v8023_v7 = vsel %vm666_vm2, %v23401_v0, %v8003_v47 }
 0xca5   :  { %v7098_v10 = vsel %vm666_vm2, %v7091_v8, 0  ;;  %v8155_v62 = vsub.f32 %v8042_v55, %v8061_v60  ;;  %v8026_v8 = vsel %vm8024_vm4, %v8023_v7, %v8011_v49 }
 0xca6   :  { %v7166_v11 = vand.u32 4294901760, %v7098_v10 }
 0xca8   :  { %v7089_v12 = vpop.xlane.xlu0 %7088  ;;  %v7167_v14 = vsub.f32 %v7098_v10, %v7166_v11 }
 0xca9   :  { %22889 = vrcp.f32 %v7089_v12 }
 0xcaa   :  { %v7168_v9 = vand.u32 4294901760, %v7167_v14 }
 0xcac   :  { %v7095_v15 = vpop.permute.xlu0 %7094  ;;  %v7169_v16 = vsub.f32 %v7167_v14, %v7168_v9 }
 0xcad   :  { %v7101_v17 = vand.u32 4294901760, %v7095_v15 }
 0xcae   :  { %v7170_v19 = vand.u32 4294901760, %v7169_v16 }
 0xcaf   :  { %v7178_v21 = vsub.f32 %v7095_v15, %v7101_v17  ;;  %20838 = vmatpush3.msra.mxu0 %v7101_v17 }
 0xcb0   :  { %20840 = vmatmul.mubr.f32.vlgmr.msra.gmra.mrb[14].mxu0 %v7170_v19  ;;  %20842 = vmatprep.subr.mxu0 %v23089_v13  ;;  %v8009_v48 = vpop.permute.xlu0 %8008 }
 0xcb1   :  { %v7179_v20 = vand.u32 4294901760, %v7178_v21  ;;  %20844 = vmatprep.mubr.msk.f32.mxu0 %vm23090_vm1, %v23089_v13  ;;  %v8025_v51 = vsel %vm8024_vm4, %v8022_v50, %v8009_v48 }
 0xcb3   :  { %v22890_v22 = vpop.eup %22889  ;;  %v7180_v23 = vsub.f32 %v7178_v21, %v7179_v20 }
 0xcb4   :  { %v7093_v27 = vmul.f32 %v22890_v22, %v22886_v26  ;;  %v8156_v26 = vand.u32 4294901760, %v8155_v62 }
 0xcb5   :  { %v7181_v28 = vand.u32 4294901760, %v7180_v23 }
 0xcb6   :  { %v7550_v29 = vsel %vm666_vm2, %v7093_v27, 0  ;;  %v8157_v10 = vsub.f32 %v8155_v62, %v8156_v26 }
 0xcb7   :  { %20843 = vmatpush3.msra.mxu0 %v7181_v28  ;;  %v7618_v30 = vand.u32 4294901760, %v7550_v29 }
 0xcb8   :  { %20845 = vmatmul.mubr.f32.vlgmr.msra.gmra.mrb[14].mxu0 %v7166_v11  ;;  %20847 = vmatprep.subr.mxu0 %v23089_v13  ;;  %v8158_v19 = vand.u32 4294901760, %v8157_v10 }
 0xcb9   :  { %20848 = vmatpush3.msra.mxu0 %v7178_v21  ;;  %20849 = vmatprep.mubr.msk.f32.mxu0 %vm23090_vm1, %v23089_v13  ;;  %v7619_v32 = vsub.f32 %v7550_v29, %v7618_v30 }
 0xcba   :  { %20852 = vmatprep.subr.mxu0 %v23089_v13 }
 0xcbb   :  { %v7620_v33 = vand.u32 4294901760, %v7619_v32 }
 0xcbd   :  { %v7621_v35 = vsub.f32 %v7619_v32, %v7620_v33 }
 0xcbf   :  { %v7622_v36 = vand.u32 4294901760, %v7621_v35 }
 0xcc0   :  { %20850 = vmatmul.mubr.f32.vlgmr.msra.gmra.mrb[14].mxu0 %v7167_v14 }
 0xcc1   :  { %20853 = vmatpush3.msra.mxu0 %v7101_v17  ;;  %20870 = vmatmul.mubr.f32.vlgmr.msra.gmra.mrb[16].mxu1 %v7622_v36 }
 0xcc2   :  { %20873 = vmatpush3.msra.mxu1 %v7633_v37  ;;  %20854 = vmatprep.mubr.msk.f32.mxu0 %vm23090_vm1, %v23089_v13 }
 0xcc3   :  { %20857 = vmatprep.subr.mxu0 %v23089_v13  ;;  %20874 = vmatprep.mubr.msk.f32.mxu1 %vm23090_vm1, %v23089_v13 }
 0xcc4   :  { %20877 = vmatprep.subr.mxu1 %v23089_v13 }
 0xcc8   :  { %20855 = vmatmul.mubr.f32.vlgmr.msra.gmra.mrb[14].mxu0 %v7168_v9 }
 0xcc9   :  { %20858 = vmatpush3.msra.mxu0 %v7179_v20  ;;  %20875 = vmatmul.mubr.f32.vlgmr.msra.gmra.mrb[16].mxu1 %v7618_v30 }
 0xcca   :  { %20878 = vmatpush3.msra.mxu1 %v7630_v25  ;;  %20859 = vmatprep.mubr.msk.f32.mxu0 %vm23090_vm1, %v23089_v13 }
 0xccb   :  { %20862 = vmatprep.subr.mxu0 %v23089_v13  ;;  %20879 = vmatprep.mubr.msk.f32.mxu1 %vm23090_vm1, %v23089_v13 }
 0xccc   :  { %20882 = vmatprep.subr.mxu1 %v23089_v13 }
 0xcd0   :  { %20860 = vmatmul.mubr.f32.vlgmr.msra.gmra.mrb[14].mxu0 %v7166_v11 }
 0xcd1   :  { %20863 = vmatpush3.msra.mxu0 %v7101_v17  ;;  %20880 = vmatmul.mubr.f32.vlgmr.msra.gmra.mrb[16].mxu1 %v7619_v32 }
 0xcd2   :  { %20883 = vmatpush3.msra.mxu1 %v23677_v24  ;;  %20864 = vmatprep.mubr.msk.f32.mxu0 %vm23090_vm1, %v23089_v13 }
 0xcd3   :  { %20884 = vmatprep.mubr.msk.f32.mxu1 %vm23090_vm1, %v23089_v13  ;;  %20887 = vmatprep.subr.mxu1 %v23089_v13 }
 0xcd8   :  { %20865 = vmatmul.mubr.f32.vlgmr.msra.gmra.mrb[14].mxu0 %v7166_v11 }
 0xcd9   :  { %20885 = vmatmul.mubr.f32.vlgmr.msra.gmra.mrb[16].mxu1 %v7620_v33 }
 0xcda   :  { %20888 = vmatpush3.msra.mxu1 %v7631_v31  ;;  %20889 = vmatprep.mubr.msk.f32.mxu1 %vm23090_vm1, %v23089_v13 }
 0xcdb   :  { %20892 = vmatprep.subr.mxu1 %v23089_v13 }
 0xce1   :  { %20890 = vmatmul.mubr.f32.vlgmr.msra.gmra.mrb[16].mxu1 %v7618_v30 }
 0xce2   :  { %20893 = vmatpush3.msra.mxu1 %v23677_v24  ;;  %20894 = vmatprep.mubr.msk.f32.mxu1 %vm23090_vm1, %v23089_v13 }
 0xce9   :  { %20895 = vmatmul.mubr.f32.vlgmr.msra.gmra.mrb[16].mxu1 %v7618_v30 }
 0xdab   :  { %v7542_v39 = vpop.f32.mrb[14].mxu0 }
 0xdac   :  { %8016 = vrot.lane.b32.xlu0 %v7542_v39, %s23083_s26  ;;  %v20866_v40 = vpop.f32.mrb[15].mxu0 }
 0xdb0   :  { %8039 = vrot.lane.b32.xlu0 %v22948_v41, %s23103_s25  ;;  %v19616_v41 = vld [vmem:[#allocation8 + $0xb] ss:$0 sm:$0xff] }
 0xdb4   :  { %8043 = vrot.lane.b32.xlu0 %v22949_v42, %s23103_s25 }
 0xdbc   :  { %v7994_v44 = vpop.f32.mrb[16].mxu1 }
 0xdbd   :  { %8018 = vrot.lane.b32.xlu1 %v7994_v44, %s23083_s26  ;;  %v20896_v45 = vpop.f32.mrb[17].mxu1 }
 0xdc1   :  { %8045 = vrot.lane.b32.xlu1 %v22950_v43, %s23103_s25 }
 0xe1e   :  { %v8017_v52 = vpop.permute.xlu0 %8016 }
 0xe1f   :  { %v8028_v53 = vsel %vm8027_vm3, %v8025_v51, %v8017_v52 }
 0xe20   :  { %v8052_v54 = vsel %vm80_vm0, %v8028_v53, 0 }
 0xe21   :  { %v23726_v56 = vand.u32 4294901760, %v8052_v54 }
 0xe22   :  { %v8040_v57 = vpop.permute.xlu0 %8039 }
 0xe23   :  { %v8127_v58 = vsub.f32 %v8052_v54, %v23726_v56  ;;  %v8058_v59 = vand.u32 4294901760, %v8040_v57 }
 0xe25   :  { %v23729_v61 = vpack.c.bf16 %v8061_v60, %v8058_v59  ;;  %v8128_v63 = vand.u32 4294901760, %v8127_v58  ;;  %v8148_v18 = vsub.f32 %v8040_v57, %v8058_v59  ;;  %v23761_v59 = vld [vmem:[#allocation5 + $0x20] sm:$0xff]  ;;  %v23763_v60 = vld [vmem:[#allocation5 + $0x38] sm:$0xff] }
 0xe26   :  { %v8044_v24 = vpop.permute.xlu0 %8043 }
 0xe27   :  { %v8129_v1 = vsub.f32 %v8127_v58, %v8128_v63  ;;  %21984 = vmatprep.subr.bf16.mxu0 %v23729_v61  ;;  %v8149_v5 = vand.u32 4294901760, %v8148_v18  ;;  %v8064_v6 = vand.u32 4294901760, %v8044_v24  ;;  %v21999_v37 = vpack.c.bf16 %v8155_v62, %v8148_v18  ;;  %v23767_v62 = vld [vmem:[#allocation5 + $0x50] sm:$0xff] }
 0xe28   :  { %21986 = vmatpush3.bf16.msra.mxu0 %v23729_v61 }
 0xe29   :  { %v8130_v2 = vand.u32 4294901760, %v8129_v1  ;;  %v8150_v12 = vsub.f32 %v8148_v18, %v8149_v5  ;;  %v8162_v14 = vsub.f32 %v8044_v24, %v8064_v6  ;;  %v22015_v39 = vpack.c.bf16 %v8156_v26, %v8149_v5 }
 0xe2a   :  { %v8649_v1 = vand.u32 4294901760, %v23763_v60  ;;  %v8652_v18 = vand.u32 4294901760, %v23767_v62 }
 0xe2b   :  { %20905 = vmatprep.mubr.f32.mxu0 %v8130_v2  ;;  %v8163_v21 = vand.u32 4294901760, %v8162_v14  ;;  %v8151_v23 = vand.u32 4294901760, %v8150_v12 }
 0xe2c   :  { %v23773_v24 = vpack.c.bf16 %v8652_v18, %v8649_v1  ;;  %v8754_v12 = vsub.f32 %v23767_v62, %v8652_v18 }
 0xe2d   :  { %v8164_v28 = vsub.f32 %v8162_v14, %v8163_v21  ;;  %v21991_v30 = vpack.c.bf16 %v8158_v19, %v8151_v23 }
 0xe2f   :  { %v8019_v11 = vpop.permute.xlu1 %8018  ;;  %v8165_v34 = vand.u32 4294901760, %v8164_v28 }
 0xe30   :  { %v8029_v9 = vsel %vm8027_vm3, %v8026_v8, %v8019_v11  ;;  %v8747_v11 = vsub.f32 %v23763_v60, %v8649_v1 }
 0xe31   :  { %v8055_v15 = vsel %vm80_vm0, %v8029_v9, 0 }
 0xe32   :  { %v8136_v16 = vand.u32 4294901760, %v8055_v15 }
 0xe33   :  { %v8046_v17 = vpop.permute.xlu1 %8045 }
 0xe34   :  { %v8137_v20 = vsub.f32 %v8055_v15, %v8136_v16  ;;  %v8067_v22 = vand.u32 4294901760, %v8046_v17  ;;  %v8748_v15 = vand.u32 4294901760, %v8747_v11 }
 0xe36   :  { %v8138_v25 = vand.u32 4294901760, %v8137_v20  ;;  %v21987_v27 = vpack.c.bf16 %v8067_v22, %v8064_v6  ;;  %v8169_v0 = vsub.f32 %v8046_v17, %v8067_v22  ;;  %v8749_v19 = vsub.f32 %v8747_v11, %v8748_v15 }
 0xe38   :  { %v8170_v29 = vand.u32 4294901760, %v8169_v0  ;;  %21988 = vmatprep.subr.bf16.mxu0 %v21987_v27  ;;  %v8139_v31 = vsub.f32 %v8137_v20, %v8138_v25  ;;  %v22003_v38 = vpack.c.bf16 %v8169_v0, %v8162_v14 }
 0xe39   :  { %21990 = vmatpush3.bf16.msra.mxu0 %v21987_v27 }
 0xe3a   :  { %v8171_v32 = vsub.f32 %v8169_v0, %v8170_v29  ;;  %21992 = vmatprep.subr.bf16.mxu0 %v21991_v30  ;;  %v8140_v33 = vand.u32 4294901760, %v8139_v31  ;;  %v22019_v40 = vpack.c.bf16 %v8170_v29, %v8163_v21 }
 0xe3c   :  { %20906 = vmatmul.mubr.f32.vlgmr.msra.gmra.mrb[16].mxu0 %v8140_v33  ;;  %v8172_v35 = vand.u32 4294901760, %v8171_v32 }
 0xe3d   :  { %21994 = vmatpush3.bf16.msra.mxu0 %v21991_v30  ;;  %20916 = vmatprep.mubr.f32.mxu0 %v23726_v56 }
 0xe3e   :  { %v21995_v36 = vpack.c.bf16 %v8172_v35, %v8165_v34 }
 0xe40   :  { %21996 = vmatprep.subr.bf16.mxu0 %v21995_v36 }
 0xe41   :  { %21998 = vmatpush3.bf16.msra.mxu0 %v21995_v36  ;;  %v19617_v36 = vld [vmem:[#allocation8 + $0xc] ss:$0 sm:$0xff] }
 0xe42   :  { %22000 = vmatprep.subr.bf16.mxu0 %v21999_v37 }
 0xe44   :  { %20917 = vmatmul.mubr.f32.vlgmr.msra.gmra.mrb[16].mxu0 %v8136_v16 }
 0xe45   :  { %22002 = vmatpush3.bf16.msra.mxu0 %v21999_v37  ;;  %20927 = vmatprep.mubr.f32.mxu0 %v8127_v58  ;;  %v23759_v58 = vld [vmem:[#allocation5 + $0x8] sm:$0xff] }
 0xe46   :  { %22004 = vmatprep.subr.bf16.mxu0 %v22003_v38 }
 0xe49   :  { %22006 = vmatpush3.bf16.msra.mxu0 %v22003_v38  ;;  %v19618_v38 = vld [vmem:[#allocation8 + $0xd] ss:$0 sm:$0xff] }
 0xe4a   :  { %22008 = vmatprep.subr.bf16.mxu0 %v23729_v61 }
 0xe4c   :  { %20928 = vmatmul.mubr.f32.vlgmr.msra.gmra.mrb[16].mxu0 %v8137_v20  ;;  %v8750_v20 = vand.u32 4294901760, %v8749_v19 }
 0xe4d   :  { %22010 = vmatpush3.bf16.msra.mxu0 %v23729_v61  ;;  %20938 = vmatprep.mubr.f32.mxu0 %v8128_v63  ;;  %v8646_v63 = vand.u32 4294901760, %v23761_v59 }
 0xe4e   :  { %22012 = vmatprep.subr.bf16.mxu0 %v21987_v27 }
 0xe4f   :  { %v8740_v5 = vsub.f32 %v23761_v59, %v8646_v63 }
 0xe51   :  { %22014 = vmatpush3.bf16.msra.mxu0 %v21987_v27  ;;  %v8741_v7 = vand.u32 4294901760, %v8740_v5 }
 0xe52   :  { %22016 = vmatprep.subr.bf16.mxu0 %v22015_v39 }
 0xe53   :  { %v8742_v10 = vsub.f32 %v8740_v5, %v8741_v7 }
 0xe54   :  { %20939 = vmatmul.mubr.f32.vlgmr.msra.gmra.mrb[16].mxu0 %v8138_v25 }
 0xe55   :  { %22018 = vmatpush3.bf16.msra.mxu0 %v22015_v39  ;;  %20949 = vmatprep.mubr.f32.mxu0 %v23726_v56  ;;  %v8743_v9 = vand.u32 4294901760, %v8742_v10  ;;  %v9194_v10 = vld [vmem:[#allocation7 + $0x30] sm:$0xff] }
 0xe56   :  { %22020 = vmatprep.subr.bf16.mxu0 %v22019_v40 }
 0xe59   :  { %22022 = vmatpush3.bf16.msra.mxu0 %v22019_v40 }
 0xe5a   :  { %22024 = vmatprep.subr.bf16.mxu0 %v23729_v61 }
 0xe5c   :  { %20950 = vmatmul.mubr.f32.vlgmr.msra.gmra.mrb[16].mxu0 %v8136_v16 }
 0xe5d   :  { %22026 = vmatpush3.bf16.msra.mxu0 %v23729_v61  ;;  %20960 = vmatprep.mubr.f32.mxu0 %v23726_v56  ;;  %v8643_v61 = vand.u32 4294901760, %v23759_v58 }
 0xe5e   :  { %22028 = vmatprep.subr.bf16.mxu0 %v21987_v27 }
 0xe5f   :  { %v23771_v2 = vpack.c.bf16 %v8646_v63, %v8643_v61  ;;  %v8733_v26 = vsub.f32 %v23759_v58, %v8643_v61  ;;  %v9189_v61 = vld [vmem:[#allocation7 + $0x8] sm:$0xff] }
 0xe60   :  { %v9212_v1 = vand.u32 4294901760, %v9189_v61 }
 0xe61   :  { %22030 = vmatpush3.bf16.msra.mxu0 %v21987_v27  ;;  %22032 = vmatprep.subr.bf16.mxu1 %v23771_v2  ;;  %v8734_v6 = vand.u32 4294901760, %v8733_v26  ;;  %v22047_v25 = vpack.c.bf16 %v8740_v5, %v8733_v26  ;;  %v22051_v27 = vpack.c.bf16 %v8754_v12, %v8747_v11  ;;  %v9191_v5 = vld [vmem:[#allocation7 + $0x18] sm:$0xff] }
 0xe62   :  { %22034 = vmatpush3.bf16.msra.mxu1 %v23771_v2 }
 0xe63   :  { %22036 = vmatprep.subr.bf16.mxu1 %v23773_v24  ;;  %v8735_v8 = vsub.f32 %v8733_v26, %v8734_v6  ;;  %v22063_v0 = vpack.c.bf16 %v8741_v7, %v8734_v6  ;;  %v9190_v26 = vld [vmem:[#allocation7 + $0x10] sm:$0xff]  ;;  %v9192_v7 = vld [vmem:[#allocation7 + $0x20] sm:$0xff] }
 0xe64   :  { %20961 = vmatmul.mubr.f32.vlgmr.msra.gmra.mrb[16].mxu0 %v8136_v16  ;;  %v8755_v16 = vand.u32 4294901760, %v8754_v12  ;;  %v9215_v6 = vand.u32 4294901760, %v9190_v26  ;;  %v9221_v11 = vand.u32 4294901760, %v9192_v7 }
 0xe65   :  { %v8736_v14 = vand.u32 4294901760, %v8735_v8  ;;  %v9193_v8 = vld [vmem:[#allocation7 + $0x28] sm:$0xff] }
 0xe66   :  { %22038 = vmatpush3.bf16.msra.mxu1 %v23773_v24  ;;  %v8756_v21 = vsub.f32 %v8754_v12, %v8755_v16  ;;  %v22067_v28 = vpack.c.bf16 %v8755_v16, %v8748_v15  ;;  %v9224_v12 = vand.u32 4294901760, %v9193_v8 }
 0xe67   :  { %v22039_v17 = vpack.c.bf16 %v8743_v9, %v8736_v14  ;;  %v9195_v14 = vld [vmem:[#allocation7 + $0x38] sm:$0xff]  ;;  %v9227_v9 = vand.u32 4294901760, %v9194_v10 }
 0xe68   :  { %v8757_v22 = vand.u32 4294901760, %v8756_v21  ;;  %v9230_v15 = vand.u32 4294901760, %v9195_v14  ;;  %v23805_v16 = vpack.c.bf16 %v9224_v12, %v9221_v11  ;;  %v9310_v21 = vsub.f32 %v9189_v61, %v9212_v1 }
 0xe69   :  { %22040 = vmatprep.subr.bf16.mxu1 %v22039_v17 }
 0xe6a   :  { %v22043_v23 = vpack.c.bf16 %v8757_v22, %v8750_v20  ;;  %v9311_v22 = vand.u32 4294901760, %v9310_v21 }
 0xf37   :  { %v20962_v42 = vpop.f32.mrb[16].mxu0 }
 0xf38   :  { %v22417_v44 = vadd.f32 %v20962_v42, %v19616_v41  ;;  %v8575_v45 = vpop.f32.mrb[17].mxu0 }
 0xf39   :  { %v22418_v43 = vadd.f32 %v19616_v41, %v8575_v45 }
 0xf3a   :  { %v23746_v46 = vadd.f32 %v22417_v44, %v23197_v4 }
 0xf3b   :  { %v23749_v47 = vadd.f32 %v22418_v43, %v23195_v3 }
 0xf3c   :  { %v8592_v48 = vsel %vm80_vm0, %v23746_v46, 0.0 }
 0xf3d   :  { %8593 = vadd.xlane.f32.xlu1 %v8592_v48  ;;  %v8589_v49 = vsel %vm80_vm0, %v23749_v47, 0.0 }
 0xf3e   :  { %8590 = vadd.xlane.f32.xlu0 %v8589_v49 }
 0xfca   :  { %v8594_v50 = vpop.xlane.xlu1 %8593 }
 0xfcb   :  { %v8596_v51 = vmul.f32 0.03125, %v8594_v50  ;;  %v8591_v52 = vpop.xlane.xlu0 %8590 }
 0xfcc   :  { %v8595_v53 = vmul.f32 0.03125, %v8591_v52 }
 0xfcd   :  { %v8598_v54 = vsub.f32 %v23746_v46, %v8596_v51 }
 0xfce   :  { %v8597_v4 = vsub.f32 %v23749_v47, %v8595_v53 }
 0xfcf   :  { %v8600_v56 = vmul.f32 %v8598_v54, %v8598_v54 }
 0xfd0   :  { %v8599_v55 = vmul.f32 %v8597_v4, %v8597_v4 }
 0xfd1   :  { %v8604_v57 = vsel %vm80_vm0, %v8600_v56, 0.0 }
 0xfd2   :  { %v8601_v3 = vsel %vm80_vm0, %v8599_v55, 0.0 }
 0xfd3   :  { %8602 = vadd.xlane.f32.xlu0 %v8601_v3 }
 0xfd7   :  { %8605 = vadd.xlane.f32.xlu0 %v8604_v57 }
0x1060   :  { %v8603_v29 = vpop.xlane.xlu0 %8602 }
0x1061   :  { %v8607_v30 = vmul.f32 0.03125, %v8603_v29 }
0x1063   :  { %v8609_v31 = vadd.f32 1e-06, %v8607_v30 }
0x1064   :  { %v8606_v32 = vpop.xlane.xlu0 %8605 }
0x1065   :  { %22891 = vrsqrt.f32 %v8609_v31  ;;  %v8608_v33 = vmul.f32 0.03125, %v8606_v32 }
0x1067   :  { %v8610_v34 = vadd.f32 1e-06, %v8608_v33 }
0x1069   :  { %22893 = vrsqrt.f32 %v8610_v34 }
0x106f   :  { %v22892_v35 = vpop.eup %22891 }
0x1070   :  { %v8613_v37 = vmul.f32 %v22892_v35, %v8597_v4  ;;  %v9331_v35 = vsub.f32 %v9192_v7, %v9221_v11 }
0x1072   :  { %v8619_v39 = vmul.f32 %v19617_v36, %v8613_v37 }
0x1073   :  { %v22894_v40 = vpop.eup %22893 }
0x1074   :  { %v8614_v41 = vmul.f32 %v22894_v40, %v8598_v54  ;;  %v8625_v42 = vadd.f32 %v19618_v38, %v8619_v39  ;;  %v9188_v54 = vld [vmem:[#allocation7] sm:$0xff]  ;;  %v9332_v40 = vand.u32 4294901760, %v9331_v35 }
0x1075   :  { %v9209_v63 = vand.u32 4294901760, %v9188_v54 }
0x1076   :  { %v8620_v44 = vmul.f32 %v19617_v36, %v8614_v41  ;;  %v8637_v45 = vsel %vm80_vm0, %v8625_v42, 0  ;;  %v9338_v36 = vsub.f32 %v9193_v8, %v9224_v12 }
0x1077   :  { %v8711_v43 = vand.u32 4294901760, %v8637_v45  ;;  %v23793_v18 = vpack.c.bf16 %v9212_v1, %v9209_v63  ;;  %v9303_v19 = vsub.f32 %v9188_v54, %v9209_v63 }
0x1078   :  { %v8626_v48 = vadd.f32 %v19618_v38, %v8620_v44  ;;  %v9339_v41 = vand.u32 4294901760, %v9338_v36 }
0x1079   :  { %v8712_v49 = vsub.f32 %v8637_v45, %v8711_v43  ;;  %22128 = vmatprep.subr.bf16.mxu0 %v23793_v18  ;;  %v9304_v20 = vand.u32 4294901760, %v9303_v19  ;;  %v9333_v45 = vsub.f32 %v9331_v35, %v9332_v40  ;;  %v23835_v1 = vpack.c.bf16 %v9310_v21, %v9303_v19 }
0x107a   :  { %v8640_v50 = vsel %vm80_vm0, %v8626_v48, 0  ;;  %22130 = vmatpush3.bf16.msra.mxu0 %v23793_v18  ;;  %v23825_v44 = vpack.c.bf16 %v9339_v41, %v9332_v40  ;;  %v9345_v48 = vsub.f32 %v9194_v10, %v9227_v9 }
0x107b   :  { %v8713_v51 = vand.u32 4294901760, %v8712_v49  ;;  %v8721_v52 = vand.u32 4294901760, %v8640_v50 }
0x107d   :  { %v8714_v53 = vsub.f32 %v8712_v49, %v8713_v51  ;;  %v8722_v55 = vsub.f32 %v8640_v50, %v8721_v52  ;;  %v9352_v50 = vsub.f32 %v9195_v14, %v9230_v15 }
0x107f   :  { %v8715_v3 = vand.u32 4294901760, %v8714_v53  ;;  %v8723_v56 = vand.u32 4294901760, %v8722_v55  ;;  %v9346_v53 = vand.u32 4294901760, %v9345_v48 }
0x1081   :  { %20971 = vmatprep.mubr.f32.mxu1 %v8715_v3  ;;  %v8724_v4 = vsub.f32 %v8722_v55, %v8723_v56 }
0x1083   :  { %v8725_v57 = vand.u32 4294901760, %v8724_v4 }
0x1085   :  { %20972 = vmatmul.mubr.f32.vlgmr.msra.gmra.mrb[18].mxu1 %v8725_v57 }
0x1086   :  { %22042 = vmatpush3.bf16.msra.mxu1 %v22039_v17  ;;  %20982 = vmatprep.mubr.f32.mxu1 %v8711_v43  ;;  %v23807_v17 = vpack.c.bf16 %v9230_v15, %v9227_v9 }
0x1087   :  { %22044 = vmatprep.subr.bf16.mxu1 %v22043_v23 }
0x108a   :  { %22046 = vmatpush3.bf16.msra.mxu1 %v22043_v23  ;;  %v23817_v23 = vpack.c.bf16 %v9311_v22, %v9304_v20 }
0x108b   :  { %22048 = vmatprep.subr.bf16.mxu1 %v22047_v25 }
0x108d   :  { %20983 = vmatmul.mubr.f32.vlgmr.msra.gmra.mrb[18].mxu1 %v8721_v52 }
0x108e   :  { %22050 = vmatpush3.bf16.msra.mxu1 %v22047_v25  ;;  %20993 = vmatprep.mubr.f32.mxu1 %v8712_v49  ;;  %v9305_v25 = vsub.f32 %v9303_v19, %v9304_v20 }
0x108f   :  { %22052 = vmatprep.subr.bf16.mxu1 %v22051_v27 }
0x1090   :  { %v9306_v29 = vand.u32 4294901760, %v9305_v25 }
0x1092   :  { %22054 = vmatpush3.bf16.msra.mxu1 %v22051_v27  ;;  %v9312_v27 = vsub.f32 %v9310_v21, %v9311_v22 }
0x1093   :  { %22056 = vmatprep.subr.bf16.mxu1 %v23771_v2 }
0x1094   :  { %v9313_v30 = vand.u32 4294901760, %v9312_v27 }
0x1095   :  { %20994 = vmatmul.mubr.f32.vlgmr.msra.gmra.mrb[18].mxu1 %v8722_v55  ;;  %v9353_v55 = vand.u32 4294901760, %v9352_v50 }
0x1096   :  { %22058 = vmatpush3.bf16.msra.mxu1 %v23771_v2  ;;  %21004 = vmatprep.mubr.f32.mxu1 %v8713_v51  ;;  %v23820_v33 = vpack.c.bf16 %v9313_v30, %v9306_v29  ;;  %v9334_v51 = vand.u32 4294901760, %v9333_v45 }
0x1097   :  { %22060 = vmatprep.subr.bf16.mxu1 %v23773_v24  ;;  %v23831_v4 = vpack.c.bf16 %v9353_v55, %v9346_v53  ;;  %v9354_v57 = vsub.f32 %v9352_v50, %v9353_v55 }
0x1099   :  { %v9355_v61 = vand.u32 4294901760, %v9354_v57 }
0x109a   :  { %22062 = vmatpush3.bf16.msra.mxu1 %v23773_v24 }
0x109b   :  { %22064 = vmatprep.subr.bf16.mxu1 %v22063_v0 }
0x109d   :  { %21005 = vmatmul.mubr.f32.vlgmr.msra.gmra.mrb[18].mxu1 %v8723_v56  ;;  %v9347_v56 = vsub.f32 %v9345_v48, %v9346_v53 }
0x109e   :  { %22066 = vmatpush3.bf16.msra.mxu1 %v22063_v0  ;;  %21015 = vmatprep.mubr.f32.mxu1 %v8711_v43  ;;  %v9317_v0 = vsub.f32 %v9190_v26, %v9215_v6 }
0x109f   :  { %22068 = vmatprep.subr.bf16.mxu1 %v22067_v28  ;;  %v9348_v54 = vand.u32 4294901760, %v9347_v56 }
0x10a0   :  { %v9318_v31 = vand.u32 4294901760, %v9317_v0 }
0x10a1   :  { %v23833_v63 = vpack.c.bf16 %v9355_v61, %v9348_v54 }
0x10a2   :  { %22070 = vmatpush3.bf16.msra.mxu1 %v22067_v28  ;;  %v9319_v34 = vsub.f32 %v9317_v0, %v9318_v31 }
0x10a3   :  { %22072 = vmatprep.subr.bf16.mxu1 %v23771_v2 }
0x10a4   :  { %v9320_v39 = vand.u32 4294901760, %v9319_v34 }
0x10a5   :  { %21016 = vmatmul.mubr.f32.vlgmr.msra.gmra.mrb[18].mxu1 %v8721_v52 }
0x10a6   :  { %22074 = vmatpush3.bf16.msra.mxu1 %v23771_v2  ;;  %21026 = vmatprep.mubr.f32.mxu1 %v8711_v43  ;;  %v9218_v2 = vand.u32 4294901760, %v9191_v5  ;;  %v9340_v43 = vsub.f32 %v9338_v36, %v9339_v41 }
0x10a7   :  { %22076 = vmatprep.subr.bf16.mxu1 %v23773_v24 }
0x10a8   :  { %v9324_v28 = vsub.f32 %v9191_v5, %v9218_v2  ;;  %v23839_v5 = vpack.c.bf16 %v9338_v36, %v9331_v35 }
0x10aa   :  { %22078 = vmatpush3.bf16.msra.mxu1 %v23773_v24  ;;  %v23799_v24 = vpack.c.bf16 %v9218_v2, %v9215_v6  ;;  %v9325_v32 = vand.u32 4294901760, %v9324_v28  ;;  %v23837_v26 = vpack.c.bf16 %v9324_v28, %v9317_v0  ;;  %v23841_v6 = vpack.c.bf16 %v9352_v50, %v9345_v48  ;;  %v19619_v2 = vld [vmem:[#allocation8 + $0xe] ss:$0 sm:$0xff] }
0x10ab   :  { %22080 = vmatprep.subr.bf16.mxu1 %v23793_v18 }
0x10ac   :  { %22132 = vmatprep.subr.bf16.mxu0 %v23799_v24  ;;  %v23822_v37 = vpack.c.bf16 %v9325_v32, %v9318_v31  ;;  %v9326_v38 = vsub.f32 %v9324_v28, %v9325_v32 }
0x10ad   :  { %21027 = vmatmul.mubr.f32.vlgmr.msra.gmra.mrb[18].mxu1 %v8721_v52  ;;  %22134 = vmatpush3.bf16.msra.mxu0 %v23799_v24  ;;  %v9341_v52 = vand.u32 4294901760, %v9340_v43 }
0x10ae   :  { %22082 = vmatpush3.bf16.msra.mxu1 %v23793_v18  ;;  %22136 = vmatprep.subr.bf16.mxu0 %v23805_v16  ;;  %v9327_v42 = vand.u32 4294901760, %v9326_v38 }
0x10af   :  { %22084 = vmatprep.subr.bf16.mxu1 %v23799_v24  ;;  %v23829_v3 = vpack.c.bf16 %v9341_v52, %v9334_v51 }
0x10b0   :  { %v23827_v49 = vpack.c.bf16 %v9327_v42, %v9320_v39 }
0x10b1   :  { %22138 = vmatpush3.bf16.msra.mxu0 %v23805_v16 }
0x10b2   :  { %22086 = vmatpush3.bf16.msra.mxu1 %v23799_v24  ;;  %22140 = vmatprep.subr.bf16.mxu0 %v23807_v17 }
0x10b3   :  { %22088 = vmatprep.subr.bf16.mxu1 %v23805_v16 }
0x10b5   :  { %22142 = vmatpush3.bf16.msra.mxu0 %v23807_v17 }
0x10b6   :  { %22090 = vmatpush3.bf16.msra.mxu1 %v23805_v16  ;;  %22144 = vmatprep.subr.bf16.mxu0 %v23817_v23 }
0x10b7   :  { %22092 = vmatprep.subr.bf16.mxu1 %v23807_v17 }
0x10ba   :  { %22094 = vmatpush3.bf16.msra.mxu1 %v23807_v17 }
0x10bb   :  { %22096 = vmatprep.subr.bf16.mxu1 %v23820_v33 }
0x1180   :  { %v21028_v7 = vpop.f32.mrb[18].mxu1 }
0x1181   :  { %v22419_v8 = vadd.f32 %v21028_v7, %v19619_v2  ;;  %v9160_v10 = vpop.f32.mrb[19].mxu1  ;;  %v9835_v7 = vld [vmem:[#allocation5 + $0x40] sm:$0xff] }
0x1182   :  { %v22420_v11 = vadd.f32 %v19619_v2, %v9160_v10  ;;  %v9833_v2 = vld [vmem:[#allocation5 + $0x28] sm:$0xff] }
0x1183   :  { %v9173_v12 = vmul.f32 0.044715, %v22419_v8  ;;  %v9171_v29 = vmul.f32 0.5, %v22419_v8 }
0x1184   :  { %v9172_v14 = vmul.f32 0.044715, %v22420_v11  ;;  %v9170_v31 = vmul.f32 0.5, %v22420_v11 }
0x1185   :  { %v9175_v9 = vmul.f32 %v22419_v8, %v9173_v12 }
0x1186   :  { %v9174_v15 = vmul.f32 %v22420_v11, %v9172_v14 }
0x1187   :  { %v9177_v20 = vmul.f32 %v22419_v8, %v9175_v9 }
0x1188   :  { %v9176_v22 = vmul.f32 %v22420_v11, %v9174_v15 }
0x1189   :  { %v9179_v25 = vadd.f32 %v22419_v8, %v9177_v20  ;;  %v9837_v8 = vld [vmem:[#allocation5 + $0x58] sm:$0xff] }
0x118a   :  { %v9178_v19 = vadd.f32 %v22420_v11, %v9176_v22 }
0x118b   :  { %v9181_v21 = vmul.f32 0.7978846, %v9179_v25 }
0x118c   :  { %v9180_v27 = vmul.f32 0.7978846, %v9178_v19 }
0x118d   :  { %22895 = vtanh.f32 %v9181_v21 }
0x118e   :  { %22897 = vtanh.f32 %v9180_v27 }
0x1197   :  { %v22896_v0 = vpop.eup %22895 }
0x1198   :  { %v22898_v28 = vpop.eup %22897  ;;  %v9185_v30 = vadd.f32 1.0, %v22896_v0 }
0x1199   :  { %v9184_v32 = vadd.f32 1.0, %v22898_v28 }
0x119a   :  { %v9187_v34 = vmul.f32 %v9185_v30, %v9171_v29 }
0x119b   :  { %v9186_v35 = vmul.f32 %v9184_v32, %v9170_v31  ;;  %v19621_v31 = vld [vmem:[#allocation8 + $0x10] ss:$0 sm:$0xff] }
0x119c   :  { %v9206_v36 = vsel %vm9201_vm5, %v9187_v34, 0 }
0x119d   :  { %v9203_v38 = vsel %vm9201_vm5, %v9186_v35, 0  ;;  %v9291_v39 = vand.u32 4294901760, %v9206_v36 }
0x119e   :  { %v9281_v40 = vand.u32 4294901760, %v9203_v38 }
0x119f   :  { %v9292_v41 = vsub.f32 %v9206_v36, %v9291_v39 }
0x11a0   :  { %v9282_v42 = vsub.f32 %v9203_v38, %v9281_v40 }
0x11a1   :  { %v9293_v45 = vand.u32 4294901760, %v9292_v41 }
0x11a2   :  { %v9283_v43 = vand.u32 4294901760, %v9282_v42 }
0x11a3   :  { %v9294_v48 = vsub.f32 %v9292_v41, %v9293_v45 }
0x11a4   :  { %21102 = vmatprep.mubr.f32.mxu0 %v9283_v43  ;;  %v9284_v50 = vsub.f32 %v9282_v42, %v9283_v43 }
0x11a5   :  { %21103 = vmatmul.mubr.f32.vlgmr.msra.gmra.mrb[18].mxu0 %v9293_v45  ;;  %v9295_v52 = vand.u32 4294901760, %v9294_v48 }
0x11a6   :  { %22146 = vmatpush3.bf16.msra.mxu0 %v23817_v23  ;;  %21121 = vmatprep.mubr.f32.mxu0 %v9281_v40  ;;  %v9285_v51 = vand.u32 4294901760, %v9284_v50 }
0x11a7   :  { %22148 = vmatprep.subr.bf16.mxu0 %v23822_v37 }
0x11a8   :  { %21045 = vmatprep.mubr.f32.mxu1 %v9285_v51  ;;  %v19622_v51 = vld [vmem:[#allocation8 + $0x11] ss:$0 sm:$0xff] }
0x11a9   :  { %21046 = vmatmul.mubr.f32.vlgmr.msra.gmra.mrb[20].mxu1 %v9295_v52 }
0x11aa   :  { %22098 = vmatpush3.bf16.msra.mxu1 %v23820_v33  ;;  %22150 = vmatpush3.bf16.msra.mxu0 %v23822_v37 }
0x11ab   :  { %21064 = vmatprep.mubr.f32.mxu1 %v9281_v40  ;;  %22100 = vmatprep.subr.bf16.mxu1 %v23827_v49 }
0x11ac   :  { %22152 = vmatprep.subr.bf16.mxu0 %v23825_v44 }
0x11ae   :  { %22102 = vmatpush3.bf16.msra.mxu1 %v23827_v49  ;;  %22154 = vmatpush3.bf16.msra.mxu0 %v23825_v44 }
0x11af   :  { %22104 = vmatprep.subr.bf16.mxu1 %v23829_v3  ;;  %22156 = vmatprep.subr.bf16.mxu0 %v23831_v4 }
0x11b2   :  { %22106 = vmatpush3.bf16.msra.mxu1 %v23829_v3  ;;  %22158 = vmatpush3.bf16.msra.mxu0 %v23831_v4 }
0x11b3   :  { %22108 = vmatprep.subr.bf16.mxu1 %v23833_v63  ;;  %22160 = vmatprep.subr.bf16.mxu0 %v23793_v18 }
0x11b5   :  { %21122 = vmatmul.mubr.f32.vlgmr.msra.gmra.mrb[18].mxu0 %v9291_v39 }
0x11b6   :  { %22110 = vmatpush3.bf16.msra.mxu1 %v23833_v63  ;;  %22162 = vmatpush3.bf16.msra.mxu0 %v23793_v18 }
0x11b7   :  { %21140 = vmatprep.mubr.f32.mxu0 %v9281_v40  ;;  %22112 = vmatprep.subr.bf16.mxu1 %v23835_v1 }
0x11b8   :  { %22164 = vmatprep.subr.bf16.mxu0 %v23799_v24 }
0x11b9   :  { %21065 = vmatmul.mubr.f32.vlgmr.msra.gmra.mrb[20].mxu1 %v9291_v39 }
0x11ba   :  { %22114 = vmatpush3.bf16.msra.mxu1 %v23835_v1  ;;  %21083 = vmatprep.mubr.f32.mxu1 %v9282_v42 }
0x11bb   :  { %22166 = vmatpush3.bf16.msra.mxu0 %v23799_v24  ;;  %22116 = vmatprep.subr.bf16.mxu1 %v23837_v26 }
0x11bc   :  { %22168 = vmatprep.subr.bf16.mxu0 %v23805_v16 }
0x11be   :  { %22118 = vmatpush3.bf16.msra.mxu1 %v23837_v26 }
0x11bf   :  { %22170 = vmatpush3.bf16.msra.mxu0 %v23805_v16  ;;  %22120 = vmatprep.subr.bf16.mxu1 %v23839_v5  ;;  %v19620_v16 = vld [vmem:[#allocation8 + $0xf] ss:$0 sm:$0xff] }
0x11c0   :  { %22172 = vmatprep.subr.bf16.mxu0 %v23807_v17 }
0x11c2   :  { %22122 = vmatpush3.bf16.msra.mxu1 %v23839_v5 }
0x11c3   :  { %22174 = vmatpush3.bf16.msra.mxu0 %v23807_v17  ;;  %22124 = vmatprep.subr.bf16.mxu1 %v23841_v6 }
0x11c4   :  { %21269 = vmatprep.subr.mxu0 %v23089_v13 }
0x11c6   :  { %21141 = vmatmul.mubr.f32.vlgmr.msra.gmra.mrb[18].mxu0 %v9291_v39  ;;  %22126 = vmatpush3.bf16.msra.mxu1 %v23841_v6  ;;  %v9831_v6 = vld [vmem:[#allocation5 + $0x10] sm:$0xff] }
0x11c7   :  { %21271 = vmatprep.mubr.msk.f32.mxu0 %vm23090_vm1, %v23089_v13 }
0x11c9   :  { %21084 = vmatmul.mubr.f32.vlgmr.msra.gmra.mrb[20].mxu1 %v9292_v41 }
0x1299   :  { %v21142_v18 = vpop.f32.mrb[18].mxu0 }
0x129a   :  { %v9778_v24 = vpop.f32.mrb[19].mxu0 }
0x129c   :  { %v21085_v23 = vpop.f32.mrb[20].mxu1 }
0x129d   :  { %v22421_v33 = vadd.f32 %v21085_v23, %v19620_v16  ;;  %v9502_v37 = vpop.f32.mrb[21].mxu1 }
0x129e   :  { %v22423_v44 = vadd.f32 %v19620_v16, %v9502_v37 }
0x129f   :  { %v22422_v49 = vadd.f32 %v22421_v33, %v21142_v18 }
0x12a0   :  { %v22424_v17 = vadd.f32 %v22423_v44, %v9778_v24 }
0x12a1   :  { %v23879_v53 = vadd.f32 %v22422_v49, %v23746_v46 }
0x12a2   :  { %v23882_v55 = vadd.f32 %v22424_v17, %v23749_v47 }
0x12a3   :  { %v9795_v3 = vsel %vm80_vm0, %v23879_v53, 0.0 }
0x12a4   :  { %9796 = vadd.xlane.f32.xlu1 %v9795_v3  ;;  %v9792_v56 = vsel %vm80_vm0, %v23882_v55, 0.0 }
0x12a5   :  { %9793 = vadd.xlane.f32.xlu0 %v9792_v56 }
0x1331   :  { %v9797_v4 = vpop.xlane.xlu1 %9796 }
0x1332   :  { %v9799_v57 = vmul.f32 0.03125, %v9797_v4  ;;  %v9794_v54 = vpop.xlane.xlu0 %9793 }
0x1333   :  { %v9798_v61 = vmul.f32 0.03125, %v9794_v54 }
0x1334   :  { %v9801_v63 = vsub.f32 %v23879_v53, %v9799_v57 }
0x1335   :  { %v9800_v46 = vsub.f32 %v23882_v55, %v9798_v61 }
0x1336   :  { %v9803_v1 = vmul.f32 %v9801_v63, %v9801_v63 }
0x1337   :  { %v9802_v26 = vmul.f32 %v9800_v46, %v9800_v46 }
0x1338   :  { %v9807_v47 = vsel %vm80_vm0, %v9803_v1, 0.0 }
0x1339   :  { %9808 = vadd.xlane.f32.xlu1 %v9807_v47  ;;  %v9804_v5 = vsel %vm80_vm0, %v9802_v26, 0.0 }
0x133a   :  { %9805 = vadd.xlane.f32.xlu0 %v9804_v5 }
0x134a   :  { %9853 = vrot.lane.b32.xlu1 %v9831_v6, %s23092_s14 }
0x134e   :  { %9855 = vrot.lane.b32.xlu1 %v23761_v59, %s23092_s14 }
0x1350   :  { %9851 = vrot.lane.b32.xlu0 %v23759_v58, %s23092_s14 }
0x1352   :  { %9857 = vrot.lane.b32.xlu1 %v9833_v2, %s23092_s14 }
0x1354   :  { %9859 = vrot.lane.b32.xlu0 %v23763_v60, %s23092_s14 }
0x1356   :  { %9861 = vrot.lane.b32.xlu1 %v9835_v7, %s23092_s14 }
0x1358   :  { %9863 = vrot.lane.b32.xlu0 %v23767_v62, %s23092_s14 }
0x135a   :  { %9865 = vrot.lane.b32.xlu1 %v9837_v8, %s23092_s14 }
0x13c6   :  { %v9809_v10 = vpop.xlane.xlu1 %9808 }
0x13c7   :  { %v9811_v59 = vmul.f32 0.03125, %v9809_v10  ;;  %v9806_v11 = vpop.xlane.xlu0 %9805 }
0x13c8   :  { %v9810_v12 = vmul.f32 0.03125, %v9806_v11 }
0x13c9   :  { %v9813_v14 = vadd.f32 1e-06, %v9811_v59 }
0x13ca   :  { %v9812_v58 = vadd.f32 1e-06, %v9810_v12  ;;  %v9854_v9 = vpop.permute.xlu1 %9853 }
0x13cb   :  { %22899 = vrsqrt.f32 %v9813_v14  ;;  %v9852_v15 = vpop.permute.xlu0 %9851  ;;  %v18382_v22 = vand.u32 4294901760, %v9854_v9 }
0x13cc   :  { %22901 = vrsqrt.f32 %v9812_v58  ;;  %v9867_v60 = vsel %vm9201_vm5, %v9852_v15, %v9854_v9 }
0x13cd   :  { %v9882_v20 = vand.u32 4294901760, %v9867_v60  ;;  %v23907_v62 = vsub.f32 %v9854_v9, %v18382_v22 }
0x13ce   :  { %v9856_v25 = vpop.permute.xlu1 %9855 }
0x13cf   :  { %v23905_v19 = vsub.f32 %v9867_v60, %v9882_v20  ;;  %v9860_v27 = vpop.permute.xlu0 %9859  ;;  %v18473_v39 = vand.u32 4294901760, %v23907_v62 }
0x13d1   :  { %v9973_v32 = vand.u32 4294901760, %v23905_v19  ;;  %v18474_v4 = vsub.f32 %v23907_v62, %v18473_v39 }
0x13d2   :  { %v9858_v21 = vpop.permute.xlu1 %9857 }
0x13d3   :  { %v9868_v0 = vsel %vm9201_vm5, %v9856_v25, %v9858_v21  ;;  %v18385_v28 = vand.u32 4294901760, %v9858_v21  ;;  %v9864_v24 = vpop.permute.xlu0 %9863  ;;  %v9974_v33 = vsub.f32 %v23905_v19, %v9973_v32  ;;  %v18475_v58 = vand.u32 4294901760, %v18474_v4 }
0x13d4   :  { %v9885_v29 = vand.u32 4294901760, %v9868_v0 }
0x13d5   :  { %v22900_v30 = vpop.eup %22899  ;;  %v23911_v34 = vpack.c.bf16 %v18385_v28, %v18382_v22  ;;  %v23913_v35 = vsub.f32 %v9858_v21, %v18385_v28  ;;  %v9975_v6 = vand.u32 4294901760, %v9974_v33 }
0x13d6   :  { %v22902_v36 = vpop.eup %22901  ;;  %v9817_v38 = vmul.f32 %v22900_v30, %v9801_v63  ;;  %v23916_v40 = vpack.c.bf16 %v9885_v29, %v9882_v20  ;;  %v23918_v41 = vsub.f32 %v9868_v0, %v9885_v29  ;;  %v23920_v42 = vpop.permute.xlu1 %9861 }
0x13d7   :  { %v9816_v45 = vmul.f32 %v22902_v36, %v9800_v46  ;;  %v18480_v43 = vand.u32 4294901760, %v23913_v35  ;;  %v18388_v48 = vand.u32 4294901760, %v23920_v42  ;;  %v9869_v50 = vsel %vm9201_vm5, %v9860_v27, %v23920_v42 }
0x13d8   :  { %v9823_v52 = vmul.f32 %v19621_v31, %v9817_v38  ;;  %v9888_v18 = vand.u32 4294901760, %v9869_v50  ;;  %22176 = vmatprep.subr.bf16.mxu1 %v23916_v40  ;;  %v9980_v16 = vand.u32 4294901760, %v23918_v41  ;;  %v23937_v44 = vpack.c.bf16 %v23913_v35, %v23907_v62 }
0x13d9   :  { %v18486_v23 = vsub.f32 %v23920_v42, %v18388_v48  ;;  %22178 = vmatpush3.bf16.msra.mxu1 %v23916_v40  ;;  %v9822_v37 = vmul.f32 %v19621_v31, %v9816_v45  ;;  %v18481_v63 = vsub.f32 %v23913_v35, %v18480_v43  ;;  %v23969_v36 = vpack.c.bf16 %v18480_v43, %v18473_v39  ;;  %v22953_v42 = vld [vmem:[#allocation5 + $0x40] sm:$0xff] }
0x13da   :  { %v23939_v49 = vsub.f32 %v9869_v50, %v9888_v18  ;;  %v23941_v17 = vpop.permute.xlu1 %9865  ;;  %v9981_v3 = vsub.f32 %v23918_v41, %v9980_v16  ;;  %v9829_v56 = vadd.f32 %v19622_v51, %v9823_v52  ;;  %v22207_v43 = vpack.c.bf16 %v9980_v16, %v9973_v32 }
0x13db   :  { %v18391_v57 = vand.u32 4294901760, %v23941_v17  ;;  %v9870_v54 = vsel %vm9201_vm5, %v9864_v24, %v23941_v17  ;;  %v9828_v61 = vadd.f32 %v19622_v51, %v9822_v37  ;;  %v18487_v46 = vand.u32 4294901760, %v18486_v23 }
0x13dc   :  { %v9891_v1 = vand.u32 4294901760, %v9870_v54  ;;  %v9982_v26 = vand.u32 4294901760, %v9981_v3  ;;  %v9879_v47 = vsel %vm80_vm0, %v9829_v56, 0  ;;  %v9987_v8 = vand.u32 4294901760, %v23939_v49 }
0x13dd   :  { %v18493_v5 = vsub.f32 %v23941_v17, %v18391_v57  ;;  %v9876_v2 = vsel %vm80_vm0, %v9828_v61, 0  ;;  %v23956_v7 = vand.u32 4294901760, %v9879_v47  ;;  %v18482_v9 = vand.u32 4294901760, %v18481_v63 }
0x13de   :  { %v23959_v10 = vpack.c.bf16 %v9891_v1, %v9888_v18  ;;  %v9993_v59 = vsub.f32 %v9870_v54, %v9891_v1  ;;  %v9950_v11 = vand.u32 4294901760, %v9876_v2  ;;  %v22183_v60 = vpack.c.bf16 %v9982_v26, %v9975_v6 }
0x13df   :  { %v18494_v12 = vand.u32 4294901760, %v18493_v5  ;;  %v9961_v14 = vsub.f32 %v9879_v47, %v23956_v7  ;;  %v18488_v22 = vsub.f32 %v18486_v23, %v18487_v46  ;;  %v23964_v62 = vpack.c.bf16 %v18482_v9, %v18475_v58 }
0x13e0   :  { %v9994_v15 = vand.u32 4294901760, %v9993_v59  ;;  %22180 = vmatprep.subr.bf16.mxu1 %v23959_v10  ;;  %v9951_v20 = vsub.f32 %v9876_v2, %v9950_v11  ;;  %v9988_v0 = vsub.f32 %v23939_v49, %v9987_v8  ;;  %v23967_v35 = vpack.c.bf16 %v18493_v5, %v18486_v23 }
0x13e1   :  { %22182 = vmatpush3.bf16.msra.mxu1 %v23959_v10  ;;  %v9962_v25 = vand.u32 4294901760, %v9961_v14  ;;  %v18495_v21 = vsub.f32 %v18493_v5, %v18494_v12  ;;  %v18489_v29 = vand.u32 4294901760, %v18488_v22  ;;  %v23971_v45 = vpack.c.bf16 %v18494_v12, %v18487_v46 }
0x13e2   :  { %22184 = vmatprep.subr.bf16.mxu1 %v22183_v60  ;;  %v9952_v27 = vand.u32 4294901760, %v9951_v20  ;;  %v9995_v28 = vsub.f32 %v9993_v59, %v9994_v15  ;;  %v9989_v24 = vand.u32 4294901760, %v9988_v0  ;;  %v22191_v23 = vpack.c.bf16 %v23918_v41, %v23905_v19  ;;  %v19623_v19 = vld [vmem:[#allocation8 + $0x12] ss:$0 sm:$0xff] }
0x13e3   :  { %v9963_v30 = vsub.f32 %v9961_v14, %v9962_v25  ;;  %v18496_v31 = vand.u32 4294901760, %v18495_v21  ;;  %v22195_v39 = vpack.c.bf16 %v9993_v59, %v23939_v49  ;;  %v22211_v37 = vpack.c.bf16 %v9994_v15, %v9987_v8 }
0x13e4   :  { %v9953_v38 = vsub.f32 %v9951_v20, %v9952_v27  ;;  %v9996_v50 = vand.u32 4294901760, %v9995_v28 }
0x13e5   :  { %v23973_v51 = vpack.c.bf16 %v18496_v31, %v18489_v29  ;;  %v9964_v18 = vand.u32 4294901760, %v9963_v30 }
0x13e6   :  { %v9954_v52 = vand.u32 4294901760, %v9953_v38  ;;  %v22187_v33 = vpack.c.bf16 %v9996_v50, %v9989_v24 }
0x13e8   :  { %21151 = vmatprep.mubr.f32.mxu1 %v9954_v52 }
0x13e9   :  { %21152 = vmatmul.mubr.f32.vlgmr.msra.gmra.mrb[22].mxu1 %v9964_v18 }
0x13ea   :  { %22186 = vmatpush3.bf16.msra.mxu1 %v22183_v60  ;;  %21162 = vmatprep.mubr.f32.mxu1 %v9950_v11 }
0x13eb   :  { %22188 = vmatprep.subr.bf16.mxu1 %v22187_v33 }
0x13ee   :  { %22190 = vmatpush3.bf16.msra.mxu1 %v22187_v33 }
0x13ef   :  { %22192 = vmatprep.subr.bf16.mxu1 %v22191_v23 }
0x13f1   :  { %21163 = vmatmul.mubr.f32.vlgmr.msra.gmra.mrb[22].mxu1 %v23956_v7 }
0x13f2   :  { %22194 = vmatpush3.bf16.msra.mxu1 %v22191_v23  ;;  %21173 = vmatprep.mubr.f32.mxu1 %v9951_v20 }
0x13f3   :  { %22196 = vmatprep.subr.bf16.mxu1 %v22195_v39 }
0x13f6   :  { %22198 = vmatpush3.bf16.msra.mxu1 %v22195_v39 }
0x13f7   :  { %22200 = vmatprep.subr.bf16.mxu1 %v23916_v40 }
0x13f9   :  { %21174 = vmatmul.mubr.f32.vlgmr.msra.gmra.mrb[22].mxu1 %v9961_v14 }
0x13fa   :  { %22202 = vmatpush3.bf16.msra.mxu1 %v23916_v40  ;;  %21184 = vmatprep.mubr.f32.mxu1 %v9952_v27 }
0x13fb   :  { %22204 = vmatprep.subr.bf16.mxu1 %v23959_v10 }
0x13fe   :  { %22206 = vmatpush3.bf16.msra.mxu1 %v23959_v10 }
0x13ff   :  { %22208 = vmatprep.subr.bf16.mxu1 %v22207_v43 }
0x1401   :  { %21185 = vmatmul.mubr.f32.vlgmr.msra.gmra.mrb[22].mxu1 %v9962_v25 }
0x1402   :  { %22210 = vmatpush3.bf16.msra.mxu1 %v22207_v43  ;;  %21195 = vmatprep.mubr.f32.mxu1 %v9950_v11 }
0x1403   :  { %22212 = vmatprep.subr.bf16.mxu1 %v22211_v37 }
0x1406   :  { %22214 = vmatpush3.bf16.msra.mxu1 %v22211_v37 }
0x1407   :  { %22216 = vmatprep.subr.bf16.mxu1 %v23916_v40 }
0x1409   :  { %21196 = vmatmul.mubr.f32.vlgmr.msra.gmra.mrb[22].mxu1 %v23956_v7 }
0x140a   :  { %22218 = vmatpush3.bf16.msra.mxu1 %v23916_v40  ;;  %21206 = vmatprep.mubr.f32.mxu1 %v9950_v11 }
0x140b   :  { %22220 = vmatprep.subr.bf16.mxu1 %v23959_v10 }
0x140e   :  { %22222 = vmatpush3.bf16.msra.mxu1 %v23959_v10 }
0x140f   :  { %21209 = vmatprep.subr.mxu1 %v23089_v13 }
0x1411   :  { %21207 = vmatmul.mubr.f32.vlgmr.msra.gmra.mrb[22].mxu1 %v23956_v7 }
0x1412   :  { %21211 = vmatprep.mubr.msk.f32.mxu1 %vm23090_vm1, %v23089_v13 }
0x14e4   :  { %v21208_v32 = vpop.f32.mrb[22].mxu1 }
0x14e5   :  { %v23996_v41 = vadd.f32 %v21208_v32, %v19623_v19  ;;  %v10399_v16 = vpop.f32.mrb[23].mxu1 }
0x14e6   :  { %v23998_v49 = vadd.f32 %v19623_v19, %v10399_v16 }
0x14e7   :  { %10863 = vrot.lane.b32.xlu1 %v23996_v41, %s23091_s3  ;;  %v10865_v7 = vsel %vm666_vm2, %v23996_v41, 0 }
0x14e8   :  { %10410 = vrot.lane.b32.xlu0 %v23998_v49, %s23091_s3  ;;  %v10412_v40 = vsel %vm666_vm2, %v23998_v49, 0  ;;  %v10935_v10 = vand.u32 4294901760, %v10865_v7 }
0x14e9   :  { %v10482_v3 = vand.u32 4294901760, %v10412_v40 }
0x14ea   :  { %v10936_v11 = vsub.f32 %v10865_v7, %v10935_v10 }
0x14eb   :  { %v10483_v56 = vsub.f32 %v10412_v40, %v10482_v3 }
0x14ec   :  { %v10937_v14 = vand.u32 4294901760, %v10936_v11 }
0x14ed   :  { %v10484_v4 = vand.u32 4294901760, %v10483_v56 }
0x14ee   :  { %v10938_v9 = vsub.f32 %v10936_v11, %v10937_v14 }
0x14ef   :  { %v10485_v63 = vsub.f32 %v10483_v56, %v10484_v4 }
0x14f0   :  { %v10939_v60 = vand.u32 4294901760, %v10938_v9 }
0x14f1   :  { %v10486_v26 = vand.u32 4294901760, %v10485_v63 }
0x1559   :  { %v10864_v2 = vpop.permute.xlu1 %10863 }
0x155a   :  { %v10411_v54 = vpop.permute.xlu0 %10410  ;;  %v10867_v8 = vsel %vm666_vm2, %v10864_v2, 0 }
0x155b   :  { %v10414_v61 = vsel %vm666_vm2, %v10411_v54, 0  ;;  %v10870_v59 = vand.u32 4294901760, %v10867_v8 }
0x155c   :  { %v10417_v46 = vand.u32 4294901760, %v10414_v61 }
0x155d   :  { %v10947_v12 = vsub.f32 %v10867_v8, %v10870_v59 }
0x155e   :  { %v10494_v1 = vsub.f32 %v10414_v61, %v10417_v46  ;;  %21210 = vmatpush3.xpose.msra.mxu1 %v10417_v46 }
0x155f   :  { %21214 = vmatprep.subr.mxu1 %v23089_v13  ;;  %v10948_v58 = vand.u32 4294901760, %v10947_v12 }
0x1560   :  { %v10495_v47 = vand.u32 4294901760, %v10494_v1 }
0x1561   :  { %21212 = vmatmul.mubr.f32.vlgmr.msra.gmra.mrb[24].mxu1 %v10486_v26  ;;  %v10949_v15 = vsub.f32 %v10947_v12, %v10948_v58 }
0x1562   :  { %v10496_v5 = vsub.f32 %v10494_v1, %v10495_v47  ;;  %21216 = vmatprep.mubr.msk.f32.mxu1 %vm23090_vm1, %v23089_v13 }
0x1563   :  { %v10950_v20 = vand.u32 4294901760, %v10949_v15 }
0x1564   :  { %v10497_v6 = vand.u32 4294901760, %v10496_v5 }
0x1566   :  { %21215 = vmatpush3.xpose.msra.mxu1 %v10497_v6 }
0x1567   :  { %21219 = vmatprep.subr.mxu1 %v23089_v13 }
0x1569   :  { %21217 = vmatmul.mubr.f32.vlgmr.msra.gmra.mrb[24].mxu1 %v10482_v3 }
0x156a   :  { %21220 = vmatpush3.xpose.msra.mxu1 %v10494_v1  ;;  %21221 = vmatprep.mubr.msk.f32.mxu1 %vm23090_vm1, %v23089_v13 }
0x156b   :  { %21224 = vmatprep.subr.mxu1 %v23089_v13 }
0x1571   :  { %21222 = vmatmul.mubr.f32.vlgmr.msra.gmra.mrb[24].mxu1 %v10483_v56 }
0x1572   :  { %21225 = vmatpush3.xpose.msra.mxu1 %v10417_v46  ;;  %21226 = vmatprep.mubr.msk.f32.mxu1 %vm23090_vm1, %v23089_v13 }
0x1573   :  { %21229 = vmatprep.subr.mxu1 %v23089_v13 }
0x1579   :  { %21227 = vmatmul.mubr.f32.vlgmr.msra.gmra.mrb[24].mxu1 %v10484_v4 }
0x157a   :  { %21230 = vmatpush3.xpose.msra.mxu1 %v10495_v47  ;;  %21231 = vmatprep.mubr.msk.f32.mxu1 %vm23090_vm1, %v23089_v13 }
0x157b   :  { %21234 = vmatprep.subr.mxu1 %v23089_v13 }
0x1581   :  { %21232 = vmatmul.mubr.f32.vlgmr.msra.gmra.mrb[24].mxu1 %v10482_v3 }
0x1582   :  { %21235 = vmatpush3.xpose.msra.mxu1 %v10417_v46  ;;  %21236 = vmatprep.mubr.msk.f32.mxu1 %vm23090_vm1, %v23089_v13 }
0x1583   :  { %21239 = vmatprep.subr.mxu1 %v23089_v13 }
0x1589   :  { %21237 = vmatmul.mubr.f32.vlgmr.msra.gmra.mrb[24].mxu1 %v10482_v3 }
0x158a   :  { %21240 = vmatpush3.xpose.msra.mxu1 %v10870_v59  ;;  %21241 = vmatprep.mubr.msk.f32.mxu1 %vm23090_vm1, %v23089_v13 }
0x158b   :  { %21244 = vmatprep.subr.mxu1 %v23089_v13 }
0x158d   :  { %21242 = vmatmul.mubr.f32.vlgmr.msra.gmra.mrb[26].mxu1 %v10939_v60 }
0x158e   :  { %21245 = vmatpush3.xpose.msra.mxu1 %v10950_v20  ;;  %21246 = vmatprep.mubr.msk.f32.mxu1 %vm23090_vm1, %v23089_v13 }
0x158f   :  { %21249 = vmatprep.subr.mxu1 %v23089_v13 }
0x1595   :  { %21247 = vmatmul.mubr.f32.vlgmr.msra.gmra.mrb[26].mxu1 %v10935_v10 }
0x1596   :  { %21250 = vmatpush3.xpose.msra.mxu1 %v10947_v12  ;;  %21251 = vmatprep.mubr.msk.f32.mxu1 %vm23090_vm1, %v23089_v13 }
0x1597   :  { %21254 = vmatprep.subr.mxu1 %v23089_v13 }
0x159d   :  { %21252 = vmatmul.mubr.f32.vlgmr.msra.gmra.mrb[26].mxu1 %v10936_v11 }
0x159e   :  { %21255 = vmatpush3.xpose.msra.mxu1 %v10870_v59  ;;  %21256 = vmatprep.mubr.msk.f32.mxu1 %vm23090_vm1, %v23089_v13 }
0x159f   :  { %21259 = vmatprep.subr.mxu1 %v23089_v13 }
0x15a5   :  { %21257 = vmatmul.mubr.f32.vlgmr.msra.gmra.mrb[26].mxu1 %v10937_v14 }
0x15a6   :  { %21260 = vmatpush3.xpose.msra.mxu1 %v10948_v58  ;;  %21261 = vmatprep.mubr.msk.f32.mxu1 %vm23090_vm1, %v23089_v13 }
0x15a7   :  { %21264 = vmatprep.subr.mxu1 %v23089_v13 }
0x15ad   :  { %21262 = vmatmul.mubr.f32.vlgmr.msra.gmra.mrb[26].mxu1 %v10935_v10 }
0x15ae   :  { %21265 = vmatpush3.xpose.msra.mxu1 %v10870_v59  ;;  %21266 = vmatprep.mubr.msk.f32.mxu1 %vm23090_vm1, %v23089_v13 }
0x15af   :  { %21299 = vmatprep.subr.mxu1 %v23089_v13 }
0x15b5   :  { %21267 = vmatmul.mubr.f32.vlgmr.msra.gmra.mrb[26].mxu1 %v10935_v10 }
0x15b6   :  { %21301 = vmatprep.mubr.msk.f32.mxu1 %vm23090_vm1, %v23089_v13 }
0x165c   :  { %v10858_v22 = vpop.f32.mrb[24].mxu1 }
0x165d   :  { %v21238_v25 = vpop.f32.mrb[25].mxu1  ;;  %v11315_v21 = vsel %vm666_vm2, %v10858_v22, -inf }
0x165e   :  { %11316 = vmax.xlane.f32.xlu0 %v11315_v21 }
0x1688   :  { %v11311_v27 = vpop.f32.mrb[26].mxu1 }
0x1689   :  { %v21268_v0 = vpop.f32.mrb[27].mxu1  ;;  %v11318_v28 = vsel %vm666_vm2, %v11311_v27, -inf }
0x168a   :  { %11319 = vmax.xlane.f32.xlu1 %v11318_v28 }
0x169b   :  { %11789 = vrot.lane.b32.xlu1 %v23996_v41, %s23092_s14 }
0x169f   :  { %12241 = vrot.lane.b32.xlu1 %v23998_v49, %s23094_s16 }
0x16a3   :  { %12695 = vrot.lane.b32.xlu1 %v23996_v41, %s23094_s16 }
0x16a7   :  { %12697 = vrot.lane.b32.xlu1 %v23996_v41, %s23093_s15 }
0x16eb   :  { %v11317_v29 = vpop.xlane.xlu0 %11316 }
0x16ec   :  { %v11321_v30 = vsub.f32 %v10858_v22, %v11317_v29 }
0x16ee   :  { %v11323_v31 = vmul.f32 1.442695, %v11321_v30 }
0x16f0   :  { %22903 = vpow2.f32 %v11323_v31 }
0x16fa   :  { %v22904_v38 = vpop.eup %22903 }
0x16fb   :  { %v11327_v50 = vsel %vm666_vm2, %v22904_v38, 0.0 }
0x16fc   :  { %11328 = vadd.xlane.f32.xlu0 %v11327_v50 }
0x1717   :  { %v11320_v52 = vpop.xlane.xlu1 %11319 }
0x1718   :  { %v11322_v18 = vsub.f32 %v11311_v27, %v11320_v52 }
0x171a   :  { %v11325_v24 = vmul.f32 1.442695, %v11322_v18 }
0x171b   :  { %v11790_v33 = vpop.permute.xlu1 %11789 }
0x171c   :  { %22905 = vpow2.f32 %v11325_v24  ;;  %v24057_v23 = vand.u32 4294901760, %v11790_v33 }
0x171e   :  { %21300 = vmatpush3.msra.mxu1 %v24057_v23  ;;  %v11873_v6 = vsub.f32 %v11790_v33, %v24057_v23 }
0x171f   :  { %21304 = vmatprep.subr.mxu1 %v23089_v13  ;;  %v12242_v60 = vpop.permute.xlu1 %12241 }
0x1720   :  { %v11874_v59 = vand.u32 4294901760, %v11873_v6  ;;  %v12245_v22 = vsel %vm666_vm2, %v12242_v60, 0 }
0x1721   :  { %v24092_v21 = vand.u32 4294901760, %v12245_v22 }
0x1722   :  { %v11875_v14 = vsub.f32 %v11873_v6, %v11874_v59 }
0x1723   :  { %v12316_v0 = vsub.f32 %v12245_v22, %v24092_v21  ;;  %v12696_v29 = vpop.permute.xlu1 %12695 }
0x1724   :  { %v11876_v15 = vand.u32 4294901760, %v11875_v14  ;;  %v12699_v18 = vsel %vm666_vm2, %v12696_v29, 0 }
0x1725   :  { %v12317_v30 = vand.u32 4294901760, %v12316_v0 }
0x1726   :  { %v22906_v39 = vpop.eup %22905 }
0x1727   :  { %v11330_v43 = vsel %vm666_vm2, %v22906_v39, 0.0  ;;  %v12698_v50 = vpop.permute.xlu1 %12697 }
0x1728   :  { %11331 = vadd.xlane.f32.xlu0 %v11330_v43  ;;  %v12701_v24 = vsel %vm666_vm2, %v12698_v50, 0 }
0x173e   :  { %11337 = vrot.lane.b32.xlu0 %v23998_v49, %s23092_s14 }
0x1742   :  { %12243 = vrot.lane.b32.xlu0 %v23998_v49, %s23093_s15 }
0x1789   :  { %v11329_v37 = vpop.xlane.xlu0 %11328 }
0x178a   :  { %22907 = vrcp.f32 %v11329_v37  ;;  %v12704_v37 = vand.u32 4294901760, %v12701_v24 }
0x1794   :  { %v22908_v19 = vpop.eup %22907 }
0x1795   :  { %v11334_v32 = vmul.f32 %v22908_v19, %v22904_v38  ;;  %v12318_v38 = vsub.f32 %v12316_v0, %v12317_v30 }
0x1797   :  { %v11341_v16 = vsel %vm666_vm2, %v11334_v32, 0  ;;  %v12319_v33 = vand.u32 4294901760, %v12318_v38  ;;  %v12781_v32 = vsub.f32 %v12701_v24, %v12704_v37 }
0x1798   :  { %v24067_v40 = vand.u32 4294901760, %v11341_v16 }
0x179a   :  { %v11410_v3 = vsub.f32 %v11341_v16, %v24067_v40 }
0x179c   :  { %v11411_v56 = vand.u32 4294901760, %v11410_v3 }
0x179e   :  { %v11412_v54 = vsub.f32 %v11410_v3, %v11411_v56 }
0x17a0   :  { %v11413_v46 = vand.u32 4294901760, %v11412_v54 }
0x17b5   :  { %v11332_v4 = vpop.xlane.xlu0 %11331 }
0x17b6   :  { %22909 = vrcp.f32 %v11332_v4 }
0x17b9   :  { %v11338_v61 = vpop.permute.xlu0 %11337 }
0x17ba   :  { %v11344_v63 = vand.u32 4294901760, %v11338_v61 }
0x17bc   :  { %v11421_v1 = vsub.f32 %v11338_v61, %v11344_v63  ;;  %21270 = vmatpush3.msra.mxu0 %v11344_v63 }
0x17bd   :  { %21272 = vmatmul.mubr.f32.vlgmr.msra.gmra.mrb[20].mxu0 %v11413_v46  ;;  %21274 = vmatprep.subr.mxu0 %v23089_v13  ;;  %v12244_v20 = vpop.permute.xlu0 %12243 }
0x17be   :  { %v11422_v26 = vand.u32 4294901760, %v11421_v1  ;;  %21276 = vmatprep.mubr.msk.f32.mxu0 %vm23090_vm1, %v23089_v13  ;;  %v12247_v25 = vsel %vm666_vm2, %v12244_v20, 0 }
0x17bf   :  { %v24096_v27 = vand.u32 4294901760, %v12247_v25 }
0x17c0   :  { %v22910_v47 = vpop.eup %22909  ;;  %v11423_v5 = vsub.f32 %v11421_v1, %v11422_v26 }
0x17c1   :  { %v11336_v2 = vmul.f32 %v22910_v47, %v22906_v39  ;;  %v12327_v28 = vsub.f32 %v12247_v25, %v24096_v27  ;;  %v24118_v39 = vand.u32 4294901760, %v12699_v18 }
0x17c2   :  { %v11424_v7 = vand.u32 4294901760, %v11423_v5 }
0x17c3   :  { %v11793_v8 = vsel %vm666_vm2, %v11336_v2, 0  ;;  %v12328_v31 = vand.u32 4294901760, %v12327_v28  ;;  %v12770_v19 = vsub.f32 %v12699_v18, %v24118_v39 }
0x17c4   :  { %21275 = vmatpush3.msra.mxu0 %v11424_v7  ;;  %v24075_v10 = vand.u32 4294901760, %v11793_v8 }
0x17c5   :  { %21277 = vmatmul.mubr.f32.vlgmr.msra.gmra.mrb[20].mxu0 %v24067_v40  ;;  %21279 = vmatprep.subr.mxu0 %v23089_v13  ;;  %v12329_v52 = vsub.f32 %v12327_v28, %v12328_v31  ;;  %v12771_v16 = vand.u32 4294901760, %v12770_v19 }
0x17c6   :  { %21280 = vmatpush3.msra.mxu0 %v11421_v1  ;;  %21281 = vmatprep.mubr.msk.f32.mxu0 %vm23090_vm1, %v23089_v13  ;;  %v11862_v11 = vsub.f32 %v11793_v8, %v24075_v10 }
0x17c7   :  { %21284 = vmatprep.subr.mxu0 %v23089_v13  ;;  %v12330_v43 = vand.u32 4294901760, %v12329_v52 }
0x17c8   :  { %v11863_v12 = vand.u32 4294901760, %v11862_v11 }
0x17ca   :  { %v11864_v58 = vsub.f32 %v11862_v11, %v11863_v12 }
0x17cc   :  { %v11865_v9 = vand.u32 4294901760, %v11864_v58 }
0x17cd   :  { %21282 = vmatmul.mubr.f32.vlgmr.msra.gmra.mrb[20].mxu0 %v11410_v3  ;;  %v12772_v3 = vsub.f32 %v12770_v19, %v12771_v16 }
0x17ce   :  { %21285 = vmatpush3.msra.mxu0 %v11344_v63  ;;  %21302 = vmatmul.mubr.f32.vlgmr.msra.gmra.mrb[28].mxu1 %v11865_v9 }
0x17cf   :  { %21305 = vmatpush3.msra.mxu1 %v11876_v15  ;;  %21286 = vmatprep.mubr.msk.f32.mxu0 %vm23090_vm1, %v23089_v13 }
0x17d0   :  { %21289 = vmatprep.subr.mxu0 %v23089_v13  ;;  %21306 = vmatprep.mubr.msk.f32.mxu1 %vm23090_vm1, %v23089_v13 }
0x17d1   :  { %21309 = vmatprep.subr.mxu1 %v23089_v13 }
0x17d5   :  { %21287 = vmatmul.mubr.f32.vlgmr.msra.gmra.mrb[20].mxu0 %v11411_v56 }
0x17d6   :  { %21290 = vmatpush3.msra.mxu0 %v11422_v26  ;;  %21307 = vmatmul.mubr.f32.vlgmr.msra.gmra.mrb[28].mxu1 %v24075_v10 }
0x17d7   :  { %21310 = vmatpush3.msra.mxu1 %v11873_v6  ;;  %21291 = vmatprep.mubr.msk.f32.mxu0 %vm23090_vm1, %v23089_v13 }
0x17d8   :  { %21294 = vmatprep.subr.mxu0 %v23089_v13  ;;  %21311 = vmatprep.mubr.msk.f32.mxu1 %vm23090_vm1, %v23089_v13 }
0x17d9   :  { %21314 = vmatprep.subr.mxu1 %v23089_v13 }
0x17dd   :  { %21292 = vmatmul.mubr.f32.vlgmr.msra.gmra.mrb[20].mxu0 %v24067_v40 }
0x17de   :  { %21295 = vmatpush3.msra.mxu0 %v11344_v63  ;;  %21312 = vmatmul.mubr.f32.vlgmr.msra.gmra.mrb[28].mxu1 %v11862_v11 }
0x17df   :  { %21315 = vmatpush3.msra.mxu1 %v24057_v23  ;;  %21296 = vmatprep.mubr.msk.f32.mxu0 %vm23090_vm1, %v23089_v13 }
0x17e0   :  { %21329 = vmatprep.subr.mxu0 %v23089_v13  ;;  %21316 = vmatprep.mubr.msk.f32.mxu1 %vm23090_vm1, %v23089_v13 }
0x17e1   :  { %21319 = vmatprep.subr.mxu1 %v23089_v13 }
0x17e5   :  { %21297 = vmatmul.mubr.f32.vlgmr.msra.gmra.mrb[20].mxu0 %v24067_v40  ;;  %v12782_v40 = vand.u32 4294901760, %v12781_v32 }
0x17e6   :  { %21330 = vmatpush3.xpose.msra.mxu0 %v24096_v27  ;;  %21317 = vmatmul.mubr.f32.vlgmr.msra.gmra.mrb[28].mxu1 %v11863_v12 }
0x17e7   :  { %21320 = vmatpush3.msra.mxu1 %v11874_v59  ;;  %21331 = vmatprep.mubr.msk.f32.mxu0 %vm23090_vm1, %v23089_v13  ;;  %v12783_v56 = vsub.f32 %v12781_v32, %v12782_v40 }
0x17e8   :  { %21334 = vmatprep.subr.mxu0 %v23089_v13  ;;  %21321 = vmatprep.mubr.msk.f32.mxu1 %vm23090_vm1, %v23089_v13 }
0x17e9   :  { %21332 = vmatmul.mubr.f32.vlgmr.msra.gmra.mrb[22].mxu0 %v12319_v33  ;;  %21324 = vmatprep.subr.mxu1 %v23089_v13  ;;  %v12784_v4 = vand.u32 4294901760, %v12783_v56 }
0x17ea   :  { %21335 = vmatpush3.xpose.msra.mxu0 %v12330_v43  ;;  %21336 = vmatprep.mubr.msk.f32.mxu0 %vm23090_vm1, %v23089_v13 }
0x17eb   :  { %21339 = vmatprep.subr.mxu0 %v23089_v13 }
0x17ee   :  { %21322 = vmatmul.mubr.f32.vlgmr.msra.gmra.mrb[28].mxu1 %v24075_v10 }
0x17ef   :  { %21325 = vmatpush3.msra.mxu1 %v24057_v23  ;;  %21326 = vmatprep.mubr.msk.f32.mxu1 %vm23090_vm1, %v23089_v13  ;;  %v12773_v23 = vand.u32 4294901760, %v12772_v3 }
0x17f0   :  { %21359 = vmatprep.subr.mxu1 %v23089_v13 }
0x17f1   :  { %21337 = vmatmul.mubr.f32.vlgmr.msra.gmra.mrb[22].mxu0 %v24092_v21 }
0x17f2   :  { %21340 = vmatpush3.xpose.msra.mxu0 %v12327_v28  ;;  %21341 = vmatprep.mubr.msk.f32.mxu0 %vm23090_vm1, %v23089_v13 }
0x17f3   :  { %21344 = vmatprep.subr.mxu0 %v23089_v13 }
0x17f6   :  { %21327 = vmatmul.mubr.f32.vlgmr.msra.gmra.mrb[28].mxu1 %v24075_v10 }
0x17f7   :  { %21360 = vmatpush3.xpose.msra.mxu1 %v12704_v37  ;;  %21361 = vmatprep.mubr.msk.f32.mxu1 %vm23090_vm1, %v23089_v13 }
0x17f8   :  { %21364 = vmatprep.subr.mxu1 %v23089_v13 }
0x17f9   :  { %21342 = vmatmul.mubr.f32.vlgmr.msra.gmra.mrb[22].mxu0 %v12316_v0 }
0x17fa   :  { %21345 = vmatpush3.xpose.msra.mxu0 %v24096_v27  ;;  %21362 = vmatmul.mubr.f32.vlgmr.msra.gmra.mrb[30].mxu1 %v12773_v23 }
0x17fb   :  { %21365 = vmatpush3.xpose.msra.mxu1 %v12784_v4  ;;  %21346 = vmatprep.mubr.msk.f32.mxu0 %vm23090_vm1, %v23089_v13 }
0x17fc   :  { %21349 = vmatprep.subr.mxu0 %v23089_v13  ;;  %21366 = vmatprep.mubr.msk.f32.mxu1 %vm23090_vm1, %v23089_v13 }
0x17fd   :  { %21369 = vmatprep.subr.mxu1 %v23089_v13 }
0x1801   :  { %21347 = vmatmul.mubr.f32.vlgmr.msra.gmra.mrb[22].mxu0 %v12317_v30 }
0x1802   :  { %21350 = vmatpush3.xpose.msra.mxu0 %v12328_v31  ;;  %21367 = vmatmul.mubr.f32.vlgmr.msra.gmra.mrb[30].mxu1 %v24118_v39 }
0x1803   :  { %21370 = vmatpush3.xpose.msra.mxu1 %v12781_v32  ;;  %21351 = vmatprep.mubr.msk.f32.mxu0 %vm23090_vm1, %v23089_v13 }
0x1804   :  { %21354 = vmatprep.subr.mxu0 %v23089_v13  ;;  %21371 = vmatprep.mubr.msk.f32.mxu1 %vm23090_vm1, %v23089_v13 }
0x1805   :  { %21374 = vmatprep.subr.mxu1 %v23089_v13 }
0x1809   :  { %21352 = vmatmul.mubr.f32.vlgmr.msra.gmra.mrb[22].mxu0 %v24092_v21 }
0x180a   :  { %21355 = vmatpush3.xpose.msra.mxu0 %v24096_v27  ;;  %21372 = vmatmul.mubr.f32.vlgmr.msra.gmra.mrb[30].mxu1 %v12770_v19 }
0x180b   :  { %21375 = vmatpush3.xpose.msra.mxu1 %v12704_v37  ;;  %21356 = vmatprep.mubr.msk.f32.mxu0 %vm23090_vm1, %v23089_v13 }
0x180c   :  { %21376 = vmatprep.mubr.msk.f32.mxu1 %vm23090_vm1, %v23089_v13  ;;  %21379 = vmatprep.subr.mxu1 %v23089_v13 }
0x180d   :  { %21389 = vmatprep.subr.mxu0 %v23089_v13 }
0x1811   :  { %21357 = vmatmul.mubr.f32.vlgmr.msra.gmra.mrb[22].mxu0 %v24092_v21 }
0x1812   :  { %21377 = vmatmul.mubr.f32.vlgmr.msra.gmra.mrb[30].mxu1 %v12771_v16  ;;  %21391 = vmatprep.mubr.msk.f32.mxu0 %vm23090_vm1, %v23089_v13 }
0x1813   :  { %21380 = vmatpush3.xpose.msra.mxu1 %v12782_v40  ;;  %21381 = vmatprep.mubr.msk.f32.mxu1 %vm23090_vm1, %v23089_v13 }
0x1814   :  { %21384 = vmatprep.subr.mxu1 %v23089_v13 }
0x181a   :  { %21382 = vmatmul.mubr.f32.vlgmr.msra.gmra.mrb[30].mxu1 %v24118_v39 }
0x181b   :  { %21385 = vmatpush3.xpose.msra.mxu1 %v12704_v37  ;;  %21386 = vmatprep.mubr.msk.f32.mxu1 %vm23090_vm1, %v23089_v13 }
0x181c   :  { %21419 = vmatprep.subr.mxu1 %v23089_v13 }
0x1822   :  { %21387 = vmatmul.mubr.f32.vlgmr.msra.gmra.mrb[30].mxu1 %v24118_v39 }
0x1823   :  { %21421 = vmatprep.mubr.msk.f32.mxu1 %vm23090_vm1, %v23089_v13 }
0x18b8   :  { %v24176_v54 = vpop.f32.mrb[20].mxu0 }
0x18b9   :  { %v21298_v61 = vpop.f32.mrb[21].mxu0 }
0x18c9   :  { %v24178_v63 = vpop.f32.mrb[28].mxu1 }
0x18ca   :  { %v21328_v46 = vpop.f32.mrb[29].mxu1 }
0x18e4   :  { %v12691_v1 = vpop.f32.mrb[22].mxu0 }
0x18e5   :  { %v21358_v26 = vpop.f32.mrb[23].mxu0  ;;  %v13149_v47 = vsel %vm666_vm2, %v12691_v1, -inf }
0x18e6   :  { %13150 = vmax.xlane.f32.xlu0 %v13149_v47 }
0x18f5   :  { %v13145_v5 = vpop.f32.mrb[30].mxu1 }
0x18f6   :  { %v21388_v6 = vpop.f32.mrb[31].mxu1  ;;  %v13152_v2 = vsel %vm666_vm2, %v13145_v5, -inf }
0x18f7   :  { %13153 = vmax.xlane.f32.xlu1 %v13152_v2 }
0x1908   :  { %13623 = vrot.lane.b32.xlu1 %v23996_v41, %s23095_s17 }
0x190c   :  { %14075 = vrot.lane.b32.xlu1 %v23998_v49, %s23096_s18 }
0x1910   :  { %14529 = vrot.lane.b32.xlu1 %v23996_v41, %s23096_s18 }
0x1914   :  { %14531 = vrot.lane.b32.xlu1 %v23996_v41, %s23097_s19 }
0x1973   :  { %v13151_v7 = vpop.xlane.xlu0 %13150 }
0x1974   :  { %v13155_v8 = vsub.f32 %v12691_v1, %v13151_v7 }
0x1976   :  { %v13157_v10 = vmul.f32 1.442695, %v13155_v8 }
0x1978   :  { %22911 = vpow2.f32 %v13157_v10 }
0x1982   :  { %v22912_v59 = vpop.eup %22911 }
0x1983   :  { %v13161_v11 = vsel %vm666_vm2, %v22912_v59, 0.0 }
0x1984   :  { %13162 = vadd.xlane.f32.xlu0 %v13161_v11  ;;  %v13154_v12 = vpop.xlane.xlu1 %13153 }
0x1985   :  { %v13156_v14 = vsub.f32 %v13145_v5, %v13154_v12 }
0x1987   :  { %v13159_v58 = vmul.f32 1.442695, %v13156_v14 }
0x1988   :  { %v13624_v9 = vpop.permute.xlu1 %13623 }
0x1989   :  { %22913 = vpow2.f32 %v13159_v58  ;;  %v24191_v15 = vand.u32 4294901760, %v13624_v9 }
0x198b   :  { %21420 = vmatpush3.msra.mxu1 %v24191_v15  ;;  %v13707_v43 = vsub.f32 %v13624_v9, %v24191_v15 }
0x198c   :  { %21424 = vmatprep.subr.mxu1 %v23089_v13  ;;  %v14076_v1 = vpop.permute.xlu1 %14075 }
0x198d   :  { %v13708_v40 = vand.u32 4294901760, %v13707_v43  ;;  %v14079_v47 = vsel %vm666_vm2, %v14076_v1, 0 }
0x198e   :  { %v24226_v6 = vand.u32 4294901760, %v14079_v47 }
0x198f   :  { %v13709_v23 = vsub.f32 %v13707_v43, %v13708_v40 }
0x1990   :  { %v14150_v7 = vsub.f32 %v14079_v47, %v24226_v6  ;;  %v14530_v10 = vpop.permute.xlu1 %14529 }
0x1991   :  { %v13710_v46 = vand.u32 4294901760, %v13709_v23  ;;  %v14533_v9 = vsel %vm666_vm2, %v14530_v10, 0 }
0x1993   :  { %v22914_v60 = vpop.eup %22913 }
0x1994   :  { %v13164_v20 = vsel %vm666_vm2, %v22914_v60, 0.0  ;;  %v14532_v14 = vpop.permute.xlu1 %14531 }
0x1995   :  { %13165 = vadd.xlane.f32.xlu0 %v13164_v20 }
0x19ab   :  { %13171 = vrot.lane.b32.xlu0 %v23998_v49, %s23095_s17 }
0x19af   :  { %14077 = vrot.lane.b32.xlu0 %v23998_v49, %s23097_s19 }
0x1a11   :  { %v13163_v22 = vpop.xlane.xlu0 %13162 }
0x1a12   :  { %22915 = vrcp.f32 %v13163_v22  ;;  %v24252_v22 = vand.u32 4294901760, %v14533_v9 }
0x1a1c   :  { %v22916_v25 = vpop.eup %22915 }
0x1a1d   :  { %v13168_v21 = vmul.f32 %v22916_v25, %v22912_v59  ;;  %v14151_v59 = vand.u32 4294901760, %v14150_v7 }
0x1a1f   :  { %v13175_v27 = vsel %vm666_vm2, %v13168_v21, 0  ;;  %v14152_v12 = vsub.f32 %v14150_v7, %v14151_v59 }
0x1a20   :  { %v24201_v0 = vand.u32 4294901760, %v13175_v27 }
0x1a21   :  { %v14153_v20 = vand.u32 4294901760, %v14152_v12 }
0x1a22   :  { %v13166_v28 = vpop.xlane.xlu0 %13165  ;;  %v13244_v29 = vsub.f32 %v13175_v27, %v24201_v0  ;;  %v14604_v27 = vsub.f32 %v14533_v9, %v24252_v22 }
0x1a23   :  { %22917 = vrcp.f32 %v13166_v28 }
0x1a24   :  { %v13245_v30 = vand.u32 4294901760, %v13244_v29  ;;  %v14605_v28 = vand.u32 4294901760, %v14604_v27 }
0x1a26   :  { %v13172_v31 = vpop.permute.xlu0 %13171  ;;  %v13246_v38 = vsub.f32 %v13244_v29, %v13245_v30 }
0x1a27   :  { %v13178_v50 = vand.u32 4294901760, %v13172_v31 }
0x1a28   :  { %v13247_v52 = vand.u32 4294901760, %v13246_v38 }
0x1a29   :  { %v13255_v18 = vsub.f32 %v13172_v31, %v13178_v50  ;;  %21390 = vmatpush3.msra.mxu0 %v13178_v50 }
0x1a2a   :  { %21392 = vmatmul.mubr.f32.vlgmr.msra.gmra.mrb[24].mxu0 %v13247_v52  ;;  %21394 = vmatprep.subr.mxu0 %v23089_v13  ;;  %v14078_v26 = vpop.permute.xlu0 %14077 }
0x1a2b   :  { %v13256_v24 = vand.u32 4294901760, %v13255_v18  ;;  %21396 = vmatprep.mubr.msk.f32.mxu0 %vm23090_vm1, %v23089_v13  ;;  %v14081_v5 = vsel %vm666_vm2, %v14078_v26, 0 }
0x1a2c   :  { %v24230_v2 = vand.u32 4294901760, %v14081_v5 }
0x1a2d   :  { %v22918_v33 = vpop.eup %22917  ;;  %v13257_v39 = vsub.f32 %v13255_v18, %v13256_v24 }
0x1a2e   :  { %v13170_v37 = vmul.f32 %v22918_v33, %v22914_v60  ;;  %v14161_v8 = vsub.f32 %v14081_v5, %v24230_v2  ;;  %v14535_v60 = vsel %vm666_vm2, %v14532_v14, 0 }
0x1a2f   :  { %v13258_v19 = vand.u32 4294901760, %v13257_v39  ;;  %v14538_v21 = vand.u32 4294901760, %v14535_v60 }
0x1a30   :  { %v13627_v32 = vsel %vm666_vm2, %v13170_v37, 0  ;;  %v14162_v11 = vand.u32 4294901760, %v14161_v8 }
0x1a31   :  { %21395 = vmatpush3.msra.mxu0 %v13258_v19  ;;  %v24209_v16 = vand.u32 4294901760, %v13627_v32 }
0x1a32   :  { %21397 = vmatmul.mubr.f32.vlgmr.msra.gmra.mrb[24].mxu0 %v24201_v0  ;;  %21399 = vmatprep.subr.mxu0 %v23089_v13  ;;  %v14163_v58 = vsub.f32 %v14161_v8, %v14162_v11 }
0x1a33   :  { %21400 = vmatpush3.msra.mxu0 %v13255_v18  ;;  %21401 = vmatprep.mubr.msk.f32.mxu0 %vm23090_vm1, %v23089_v13  ;;  %v13696_v3 = vsub.f32 %v13627_v32, %v24209_v16 }
0x1a34   :  { %21404 = vmatprep.subr.mxu0 %v23089_v13  ;;  %v14164_v25 = vand.u32 4294901760, %v14163_v58 }
0x1a35   :  { %v13697_v56 = vand.u32 4294901760, %v13696_v3 }
0x1a37   :  { %v13698_v4 = vsub.f32 %v13696_v3, %v13697_v56 }
0x1a39   :  { %v13699_v61 = vand.u32 4294901760, %v13698_v4 }
0x1a3a   :  { %21402 = vmatmul.mubr.f32.vlgmr.msra.gmra.mrb[24].mxu0 %v13244_v29 }
0x1a3b   :  { %21405 = vmatpush3.msra.mxu0 %v13178_v50  ;;  %21422 = vmatmul.mubr.f32.vlgmr.msra.gmra.mrb[32].mxu1 %v13699_v61 }
0x1a3c   :  { %21425 = vmatpush3.msra.mxu1 %v13710_v46  ;;  %21406 = vmatprep.mubr.msk.f32.mxu0 %vm23090_vm1, %v23089_v13 }
0x1a3d   :  { %21409 = vmatprep.subr.mxu0 %v23089_v13  ;;  %21426 = vmatprep.mubr.msk.f32.mxu1 %vm23090_vm1, %v23089_v13 }
0x1a3e   :  { %21429 = vmatprep.subr.mxu1 %v23089_v13 }
0x1a42   :  { %21407 = vmatmul.mubr.f32.vlgmr.msra.gmra.mrb[24].mxu0 %v13245_v30  ;;  %v14606_v30 = vsub.f32 %v14604_v27, %v14605_v28 }
0x1a43   :  { %21410 = vmatpush3.msra.mxu0 %v13256_v24  ;;  %21427 = vmatmul.mubr.f32.vlgmr.msra.gmra.mrb[32].mxu1 %v24209_v16 }
0x1a44   :  { %21430 = vmatpush3.msra.mxu1 %v13707_v43  ;;  %21411 = vmatprep.mubr.msk.f32.mxu0 %vm23090_vm1, %v23089_v13 }
0x1a45   :  { %21414 = vmatprep.subr.mxu0 %v23089_v13  ;;  %21431 = vmatprep.mubr.msk.f32.mxu1 %vm23090_vm1, %v23089_v13 }
0x1a46   :  { %21434 = vmatprep.subr.mxu1 %v23089_v13 }
0x1a4a   :  { %21412 = vmatmul.mubr.f32.vlgmr.msra.gmra.mrb[24].mxu0 %v24201_v0 }
0x1a4b   :  { %21415 = vmatpush3.msra.mxu0 %v13178_v50  ;;  %21432 = vmatmul.mubr.f32.vlgmr.msra.gmra.mrb[32].mxu1 %v13696_v3 }
0x1a4c   :  { %21435 = vmatpush3.msra.mxu1 %v24191_v15  ;;  %21416 = vmatprep.mubr.msk.f32.mxu0 %vm23090_vm1, %v23089_v13 }
0x1a4d   :  { %21449 = vmatprep.subr.mxu0 %v23089_v13  ;;  %21436 = vmatprep.mubr.msk.f32.mxu1 %vm23090_vm1, %v23089_v13 }
0x1a4e   :  { %21439 = vmatprep.subr.mxu1 %v23089_v13 }
0x1a52   :  { %21417 = vmatmul.mubr.f32.vlgmr.msra.gmra.mrb[24].mxu0 %v24201_v0  ;;  %v14615_v0 = vsub.f32 %v14535_v60, %v14538_v21 }
0x1a53   :  { %21450 = vmatpush3.xpose.msra.mxu0 %v24230_v2  ;;  %21437 = vmatmul.mubr.f32.vlgmr.msra.gmra.mrb[32].mxu1 %v13697_v56 }
0x1a54   :  { %21440 = vmatpush3.msra.mxu1 %v13708_v40  ;;  %21451 = vmatprep.mubr.msk.f32.mxu0 %vm23090_vm1, %v23089_v13  ;;  %v14616_v29 = vand.u32 4294901760, %v14615_v0 }
0x1a55   :  { %21454 = vmatprep.subr.mxu0 %v23089_v13  ;;  %21441 = vmatprep.mubr.msk.f32.mxu1 %vm23090_vm1, %v23089_v13 }
0x1a56   :  { %21452 = vmatmul.mubr.f32.vlgmr.msra.gmra.mrb[26].mxu0 %v14153_v20  ;;  %21444 = vmatprep.subr.mxu1 %v23089_v13  ;;  %v14617_v31 = vsub.f32 %v14615_v0, %v14616_v29 }
0x1a57   :  { %21455 = vmatpush3.xpose.msra.mxu0 %v14164_v25  ;;  %21456 = vmatprep.mubr.msk.f32.mxu0 %vm23090_vm1, %v23089_v13 }
0x1a58   :  { %21459 = vmatprep.subr.mxu0 %v23089_v13  ;;  %v14618_v38 = vand.u32 4294901760, %v14617_v31 }
0x1a5b   :  { %21442 = vmatmul.mubr.f32.vlgmr.msra.gmra.mrb[32].mxu1 %v24209_v16 }
0x1a5c   :  { %21445 = vmatpush3.msra.mxu1 %v24191_v15  ;;  %21446 = vmatprep.mubr.msk.f32.mxu1 %vm23090_vm1, %v23089_v13  ;;  %v14607_v15 = vand.u32 4294901760, %v14606_v30 }
0x1a5d   :  { %21479 = vmatprep.subr.mxu1 %v23089_v13 }
0x1a5e   :  { %21457 = vmatmul.mubr.f32.vlgmr.msra.gmra.mrb[26].mxu0 %v24226_v6 }
0x1a5f   :  { %21460 = vmatpush3.xpose.msra.mxu0 %v14161_v8  ;;  %21461 = vmatprep.mubr.msk.f32.mxu0 %vm23090_vm1, %v23089_v13 }
0x1a60   :  { %21464 = vmatprep.subr.mxu0 %v23089_v13 }
0x1a63   :  { %21447 = vmatmul.mubr.f32.vlgmr.msra.gmra.mrb[32].mxu1 %v24209_v16 }
0x1a64   :  { %21480 = vmatpush3.xpose.msra.mxu1 %v14538_v21  ;;  %21481 = vmatprep.mubr.msk.f32.mxu1 %vm23090_vm1, %v23089_v13 }
0x1a65   :  { %21484 = vmatprep.subr.mxu1 %v23089_v13 }
0x1a66   :  { %21462 = vmatmul.mubr.f32.vlgmr.msra.gmra.mrb[26].mxu0 %v14150_v7 }
0x1a67   :  { %21465 = vmatpush3.xpose.msra.mxu0 %v24230_v2  ;;  %21482 = vmatmul.mubr.f32.vlgmr.msra.gmra.mrb[34].mxu1 %v14607_v15 }
0x1a68   :  { %21485 = vmatpush3.xpose.msra.mxu1 %v14618_v38  ;;  %21466 = vmatprep.mubr.msk.f32.mxu0 %vm23090_vm1, %v23089_v13 }
0x1a69   :  { %21469 = vmatprep.subr.mxu0 %v23089_v13  ;;  %21486 = vmatprep.mubr.msk.f32.mxu1 %vm23090_vm1, %v23089_v13 }
0x1a6a   :  { %21489 = vmatprep.subr.mxu1 %v23089_v13 }
0x1a6e   :  { %21467 = vmatmul.mubr.f32.vlgmr.msra.gmra.mrb[26].mxu0 %v14151_v59 }
0x1a6f   :  { %21470 = vmatpush3.xpose.msra.mxu0 %v14162_v11  ;;  %21487 = vmatmul.mubr.f32.vlgmr.msra.gmra.mrb[34].mxu1 %v24252_v22 }
0x1a70   :  { %21490 = vmatpush3.xpose.msra.mxu1 %v14615_v0  ;;  %21471 = vmatprep.mubr.msk.f32.mxu0 %vm23090_vm1, %v23089_v13 }
0x1a71   :  { %21474 = vmatprep.subr.mxu0 %v23089_v13  ;;  %21491 = vmatprep.mubr.msk.f32.mxu1 %vm23090_vm1, %v23089_v13 }
0x1a72   :  { %21494 = vmatprep.subr.mxu1 %v23089_v13 }
0x1a76   :  { %21472 = vmatmul.mubr.f32.vlgmr.msra.gmra.mrb[26].mxu0 %v24226_v6 }
0x1a77   :  { %21475 = vmatpush3.xpose.msra.mxu0 %v24230_v2  ;;  %21492 = vmatmul.mubr.f32.vlgmr.msra.gmra.mrb[34].mxu1 %v14604_v27 }
0x1a78   :  { %21495 = vmatpush3.xpose.msra.mxu1 %v14538_v21  ;;  %21476 = vmatprep.mubr.msk.f32.mxu0 %vm23090_vm1, %v23089_v13 }
0x1a79   :  { %21496 = vmatprep.mubr.msk.f32.mxu1 %vm23090_vm1, %v23089_v13  ;;  %21499 = vmatprep.subr.mxu1 %v23089_v13 }
0x1a7a   :  { %21509 = vmatprep.subr.mxu0 %v23089_v13 }
0x1a7e   :  { %21477 = vmatmul.mubr.f32.vlgmr.msra.gmra.mrb[26].mxu0 %v24226_v6 }
0x1a7f   :  { %21497 = vmatmul.mubr.f32.vlgmr.msra.gmra.mrb[34].mxu1 %v14605_v28  ;;  %21511 = vmatprep.mubr.msk.f32.mxu0 %vm23090_vm1, %v23089_v13 }
0x1a80   :  { %21500 = vmatpush3.xpose.msra.mxu1 %v14616_v29  ;;  %21501 = vmatprep.mubr.msk.f32.mxu1 %vm23090_vm1, %v23089_v13 }
0x1a81   :  { %21504 = vmatprep.subr.mxu1 %v23089_v13 }
0x1a87   :  { %21502 = vmatmul.mubr.f32.vlgmr.msra.gmra.mrb[34].mxu1 %v24252_v22 }
0x1a88   :  { %21505 = vmatpush3.xpose.msra.mxu1 %v14538_v21  ;;  %21506 = vmatprep.mubr.msk.f32.mxu1 %vm23090_vm1, %v23089_v13 }
0x1a89   :  { %21539 = vmatprep.subr.mxu1 %v23089_v13 }
0x1a8f   :  { %21507 = vmatmul.mubr.f32.vlgmr.msra.gmra.mrb[34].mxu1 %v24252_v22 }
0x1a90   :  { %21541 = vmatprep.mubr.msk.f32.mxu1 %vm23090_vm1, %v23089_v13 }
0x1b25   :  { %v24310_v50 = vpop.f32.mrb[24].mxu0 }
0x1b26   :  { %v21418_v52 = vpop.f32.mrb[25].mxu0 }
0x1b36   :  { %v24312_v18 = vpop.f32.mrb[32].mxu1 }
0x1b37   :  { %v21448_v24 = vpop.f32.mrb[33].mxu1 }
0x1b51   :  { %v14525_v33 = vpop.f32.mrb[26].mxu0 }
0x1b52   :  { %v21478_v39 = vpop.f32.mrb[27].mxu0  ;;  %v14983_v43 = vsel %vm666_vm2, %v14525_v33, -inf }
0x1b53   :  { %14984 = vmax.xlane.f32.xlu0 %v14983_v43 }
0x1b62   :  { %v14979_v37 = vpop.f32.mrb[34].mxu1 }
0x1b63   :  { %v21508_v19 = vpop.f32.mrb[35].mxu1  ;;  %v14986_v32 = vsel %vm666_vm2, %v14979_v37, -inf }
0x1b64   :  { %14987 = vmax.xlane.f32.xlu1 %v14986_v32 }
0x1b75   :  { %15457 = vrot.lane.b32.xlu1 %v23996_v41, %s23098_s20 }
0x1b79   :  { %15909 = vrot.lane.b32.xlu1 %v23998_v49, %s23099_s21 }
0x1b7d   :  { %16363 = vrot.lane.b32.xlu1 %v23996_v41, %s23099_s21 }
0x1b81   :  { %16365 = vrot.lane.b32.xlu1 %v23996_v41, %s23100_s22 }
0x1be0   :  { %v14985_v16 = vpop.xlane.xlu0 %14984 }
0x1be1   :  { %v14989_v40 = vsub.f32 %v14525_v33, %v14985_v16 }
0x1be3   :  { %v14991_v3 = vmul.f32 1.442695, %v14989_v40 }
0x1be5   :  { %22919 = vpow2.f32 %v14991_v3 }
0x1bef   :  { %v22920_v56 = vpop.eup %22919 }
0x1bf0   :  { %v14995_v23 = vsel %vm666_vm2, %v22920_v56, 0.0 }
0x1bf1   :  { %14996 = vadd.xlane.f32.xlu0 %v14995_v23  ;;  %v14988_v4 = vpop.xlane.xlu1 %14987 }
0x1bf2   :  { %v14990_v61 = vsub.f32 %v14979_v37, %v14988_v4 }
0x1bf4   :  { %v14993_v46 = vmul.f32 1.442695, %v14990_v61 }
0x1bf5   :  { %v15458_v1 = vpop.permute.xlu1 %15457 }
0x1bf6   :  { %22921 = vpow2.f32 %v14993_v46  ;;  %v24325_v26 = vand.u32 4294901760, %v15458_v1 }
0x1bf8   :  { %21540 = vmatpush3.msra.mxu1 %v24325_v26  ;;  %v15541_v27 = vsub.f32 %v15458_v1, %v24325_v26 }
0x1bf9   :  { %21544 = vmatprep.subr.mxu1 %v23089_v13  ;;  %v15910_v43 = vpop.permute.xlu1 %15909 }
0x1bfa   :  { %v15542_v31 = vand.u32 4294901760, %v15541_v27  ;;  %v15913_v19 = vsel %vm666_vm2, %v15910_v43, 0 }
0x1bfb   :  { %v24360_v16 = vand.u32 4294901760, %v15913_v19 }
0x1bfc   :  { %v15543_v52 = vsub.f32 %v15541_v27, %v15542_v31 }
0x1bfd   :  { %v15984_v3 = vsub.f32 %v15913_v19, %v24360_v16  ;;  %v16364_v23 = vpop.permute.xlu1 %16363 }
0x1bfe   :  { %v15544_v39 = vand.u32 4294901760, %v15543_v52 }
0x1bff   :  { %v15985_v4 = vand.u32 4294901760, %v15984_v3 }
0x1c00   :  { %v22922_v47 = vpop.eup %22921 }
0x1c01   :  { %v14998_v5 = vsel %vm666_vm2, %v22922_v47, 0.0  ;;  %v15986_v46 = vsub.f32 %v15984_v3, %v15985_v4  ;;  %v16366_v1 = vpop.permute.xlu1 %16365 }
0x1c02   :  { %14999 = vadd.xlane.f32.xlu0 %v14998_v5  ;;  %v16367_v5 = vsel %vm666_vm2, %v16364_v23, 0 }
0x1c18   :  { %15005 = vrot.lane.b32.xlu0 %v23998_v49, %s23098_s20 }
0x1c1c   :  { %15911 = vrot.lane.b32.xlu0 %v23998_v49, %s23100_s22 }
0x1c7e   :  { %v14997_v6 = vpop.xlane.xlu0 %14996 }
0x1c7f   :  { %22923 = vrcp.f32 %v14997_v6  ;;  %v16369_v6 = vsel %vm666_vm2, %v16366_v1, 0 }
0x1c89   :  { %v22924_v2 = vpop.eup %22923 }
0x1c8a   :  { %v15002_v7 = vmul.f32 %v22924_v2, %v22920_v56  ;;  %v15987_v2 = vand.u32 4294901760, %v15986_v46 }
0x1c8c   :  { %v15009_v8 = vsel %vm666_vm2, %v15002_v7, 0  ;;  %v24386_v7 = vand.u32 4294901760, %v16367_v5 }
0x1c8d   :  { %v24335_v10 = vand.u32 4294901760, %v15009_v8 }
0x1c8f   :  { %v15000_v59 = vpop.xlane.xlu0 %14999  ;;  %v15078_v11 = vsub.f32 %v15009_v8, %v24335_v10 }
0x1c90   :  { %22925 = vrcp.f32 %v15000_v59  ;;  %v16372_v59 = vand.u32 4294901760, %v16369_v6 }
0x1c91   :  { %v15079_v12 = vand.u32 4294901760, %v15078_v11 }
0x1c93   :  { %v15006_v14 = vpop.permute.xlu0 %15005  ;;  %v15080_v58 = vsub.f32 %v15078_v11, %v15079_v12 }
0x1c94   :  { %v15012_v9 = vand.u32 4294901760, %v15006_v14 }
0x1c95   :  { %v15081_v60 = vand.u32 4294901760, %v15080_v58 }
0x1c96   :  { %v15089_v20 = vsub.f32 %v15006_v14, %v15012_v9  ;;  %21510 = vmatpush3.msra.mxu0 %v15012_v9 }
0x1c97   :  { %21512 = vmatmul.mubr.f32.vlgmr.msra.gmra.mrb[28].mxu0 %v15081_v60  ;;  %21514 = vmatprep.subr.mxu0 %v23089_v13  ;;  %v15912_v37 = vpop.permute.xlu0 %15911 }
0x1c98   :  { %v15090_v22 = vand.u32 4294901760, %v15089_v20  ;;  %21516 = vmatprep.mubr.msk.f32.mxu0 %vm23090_vm1, %v23089_v13  ;;  %v15915_v32 = vsel %vm666_vm2, %v15912_v37, 0 }
0x1c99   :  { %v24364_v40 = vand.u32 4294901760, %v15915_v32 }
0x1c9a   :  { %v22926_v25 = vpop.eup %22925  ;;  %v15091_v21 = vsub.f32 %v15089_v20, %v15090_v22 }
0x1c9b   :  { %v15004_v0 = vmul.f32 %v22926_v25, %v22922_v47  ;;  %v15995_v56 = vsub.f32 %v15915_v32, %v24364_v40 }
0x1c9c   :  { %v15092_v28 = vand.u32 4294901760, %v15091_v21 }
0x1c9d   :  { %v15461_v29 = vsel %vm666_vm2, %v15004_v0, 0  ;;  %v15996_v61 = vand.u32 4294901760, %v15995_v56 }
0x1c9e   :  { %21515 = vmatpush3.msra.mxu0 %v15092_v28  ;;  %v24343_v30 = vand.u32 4294901760, %v15461_v29 }
0x1c9f   :  { %21517 = vmatmul.mubr.f32.vlgmr.msra.gmra.mrb[28].mxu0 %v24335_v10  ;;  %21519 = vmatprep.subr.mxu0 %v23089_v13  ;;  %v15997_v47 = vsub.f32 %v15995_v56, %v15996_v61 }
0x1ca0   :  { %21520 = vmatpush3.msra.mxu0 %v15089_v20  ;;  %21521 = vmatprep.mubr.msk.f32.mxu0 %vm23090_vm1, %v23089_v13  ;;  %v15530_v15 = vsub.f32 %v15461_v29, %v24343_v30 }
0x1ca1   :  { %21524 = vmatprep.subr.mxu0 %v23089_v13  ;;  %v15998_v8 = vand.u32 4294901760, %v15997_v47 }
0x1ca2   :  { %v15531_v38 = vand.u32 4294901760, %v15530_v15 }
0x1ca4   :  { %v15532_v24 = vsub.f32 %v15530_v15, %v15531_v38 }
0x1ca6   :  { %v15533_v33 = vand.u32 4294901760, %v15532_v24 }
0x1ca7   :  { %21522 = vmatmul.mubr.f32.vlgmr.msra.gmra.mrb[28].mxu0 %v15078_v11  ;;  %v16449_v11 = vsub.f32 %v16369_v6, %v16372_v59 }
0x1ca8   :  { %21525 = vmatpush3.msra.mxu0 %v15012_v9  ;;  %21542 = vmatmul.mubr.f32.vlgmr.msra.gmra.mrb[36].mxu1 %v15533_v33 }
0x1ca9   :  { %21545 = vmatpush3.msra.mxu1 %v15544_v39  ;;  %21526 = vmatprep.mubr.msk.f32.mxu0 %vm23090_vm1, %v23089_v13  ;;  %v16450_v14 = vand.u32 4294901760, %v16449_v11 }
0x1caa   :  { %21529 = vmatprep.subr.mxu0 %v23089_v13  ;;  %21546 = vmatprep.mubr.msk.f32.mxu1 %vm23090_vm1, %v23089_v13 }
0x1cab   :  { %21549 = vmatprep.subr.mxu1 %v23089_v13 }
0x1caf   :  { %21527 = vmatmul.mubr.f32.vlgmr.msra.gmra.mrb[28].mxu0 %v15079_v12 }
0x1cb0   :  { %21530 = vmatpush3.msra.mxu0 %v15090_v22  ;;  %21547 = vmatmul.mubr.f32.vlgmr.msra.gmra.mrb[36].mxu1 %v24343_v30 }
0x1cb1   :  { %21550 = vmatpush3.msra.mxu1 %v15541_v27  ;;  %21531 = vmatprep.mubr.msk.f32.mxu0 %vm23090_vm1, %v23089_v13 }
0x1cb2   :  { %21534 = vmatprep.subr.mxu0 %v23089_v13  ;;  %21551 = vmatprep.mubr.msk.f32.mxu1 %vm23090_vm1, %v23089_v13 }
0x1cb3   :  { %21554 = vmatprep.subr.mxu1 %v23089_v13 }
0x1cb7   :  { %21532 = vmatmul.mubr.f32.vlgmr.msra.gmra.mrb[28].mxu0 %v24335_v10 }
0x1cb8   :  { %21535 = vmatpush3.msra.mxu0 %v15012_v9  ;;  %21552 = vmatmul.mubr.f32.vlgmr.msra.gmra.mrb[36].mxu1 %v15530_v15  ;;  %v16451_v9 = vsub.f32 %v16449_v11, %v16450_v14  ;;  %v22951_v15 = vld [vmem:[#allocation5 + $0x28] sm:$0xff] }
0x1cb9   :  { %21555 = vmatpush3.msra.mxu1 %v24325_v26  ;;  %21536 = vmatprep.mubr.msk.f32.mxu0 %vm23090_vm1, %v23089_v13 }
0x1cba   :  { %21569 = vmatprep.subr.mxu0 %v23089_v13  ;;  %21556 = vmatprep.mubr.msk.f32.mxu1 %vm23090_vm1, %v23089_v13  ;;  %v16452_v60 = vand.u32 4294901760, %v16451_v9 }
0x1cbb   :  { %21559 = vmatprep.subr.mxu1 %v23089_v13 }
0x1cbf   :  { %21537 = vmatmul.mubr.f32.vlgmr.msra.gmra.mrb[28].mxu0 %v24335_v10  ;;  %v16438_v10 = vsub.f32 %v16367_v5, %v24386_v7 }
0x1cc0   :  { %21570 = vmatpush3.xpose.msra.mxu0 %v24364_v40  ;;  %21557 = vmatmul.mubr.f32.vlgmr.msra.gmra.mrb[36].mxu1 %v15531_v38 }
0x1cc1   :  { %21560 = vmatpush3.msra.mxu1 %v15542_v31  ;;  %21571 = vmatprep.mubr.msk.f32.mxu0 %vm23090_vm1, %v23089_v13  ;;  %v16439_v12 = vand.u32 4294901760, %v16438_v10 }
0x1cc2   :  { %21574 = vmatprep.subr.mxu0 %v23089_v13  ;;  %21561 = vmatprep.mubr.msk.f32.mxu1 %vm23090_vm1, %v23089_v13 }
0x1cc3   :  { %21572 = vmatmul.mubr.f32.vlgmr.msra.gmra.mrb[30].mxu0 %v15987_v2  ;;  %21564 = vmatprep.subr.mxu1 %v23089_v13  ;;  %v16440_v58 = vsub.f32 %v16438_v10, %v16439_v12 }
0x1cc4   :  { %21575 = vmatpush3.xpose.msra.mxu0 %v15998_v8  ;;  %21576 = vmatprep.mubr.msk.f32.mxu0 %vm23090_vm1, %v23089_v13 }
0x1cc5   :  { %21579 = vmatprep.subr.mxu0 %v23089_v13 }
0x1cc8   :  { %21562 = vmatmul.mubr.f32.vlgmr.msra.gmra.mrb[36].mxu1 %v24343_v30 }
0x1cc9   :  { %21565 = vmatpush3.msra.mxu1 %v24325_v26  ;;  %21566 = vmatprep.mubr.msk.f32.mxu1 %vm23090_vm1, %v23089_v13  ;;  %v16441_v26 = vand.u32 4294901760, %v16440_v58 }
0x1cca   :  { %21599 = vmatprep.subr.mxu1 %v23089_v13 }
0x1ccb   :  { %21577 = vmatmul.mubr.f32.vlgmr.msra.gmra.mrb[30].mxu0 %v24360_v16 }
0x1ccc   :  { %21580 = vmatpush3.xpose.msra.mxu0 %v15995_v56  ;;  %21581 = vmatprep.mubr.msk.f32.mxu0 %vm23090_vm1, %v23089_v13 }
0x1ccd   :  { %21584 = vmatprep.subr.mxu0 %v23089_v13 }
0x1cd0   :  { %21567 = vmatmul.mubr.f32.vlgmr.msra.gmra.mrb[36].mxu1 %v24343_v30 }
0x1cd1   :  { %21600 = vmatpush3.xpose.msra.mxu1 %v16372_v59  ;;  %21601 = vmatprep.mubr.msk.f32.mxu1 %vm23090_vm1, %v23089_v13 }
0x1cd2   :  { %21604 = vmatprep.subr.mxu1 %v23089_v13 }
0x1cd3   :  { %21582 = vmatmul.mubr.f32.vlgmr.msra.gmra.mrb[30].mxu0 %v15984_v3 }
0x1cd4   :  { %21585 = vmatpush3.xpose.msra.mxu0 %v24364_v40  ;;  %21602 = vmatmul.mubr.f32.vlgmr.msra.gmra.mrb[38].mxu1 %v16441_v26 }
0x1cd5   :  { %21605 = vmatpush3.xpose.msra.mxu1 %v16452_v60  ;;  %21586 = vmatprep.mubr.msk.f32.mxu0 %vm23090_vm1, %v23089_v13 }
0x1cd6   :  { %21589 = vmatprep.subr.mxu0 %v23089_v13  ;;  %21606 = vmatprep.mubr.msk.f32.mxu1 %vm23090_vm1, %v23089_v13 }
0x1cd7   :  { %21609 = vmatprep.subr.mxu1 %v23089_v13 }
0x1cdb   :  { %21587 = vmatmul.mubr.f32.vlgmr.msra.gmra.mrb[30].mxu0 %v15985_v4 }
0x1cdc   :  { %21590 = vmatpush3.xpose.msra.mxu0 %v15996_v61  ;;  %21607 = vmatmul.mubr.f32.vlgmr.msra.gmra.mrb[38].mxu1 %v24386_v7 }
0x1cdd   :  { %21610 = vmatpush3.xpose.msra.mxu1 %v16449_v11  ;;  %21591 = vmatprep.mubr.msk.f32.mxu0 %vm23090_vm1, %v23089_v13 }
0x1cde   :  { %21594 = vmatprep.subr.mxu0 %v23089_v13  ;;  %21611 = vmatprep.mubr.msk.f32.mxu1 %vm23090_vm1, %v23089_v13 }
0x1cdf   :  { %21614 = vmatprep.subr.mxu1 %v23089_v13 }
0x1ce3   :  { %21592 = vmatmul.mubr.f32.vlgmr.msra.gmra.mrb[30].mxu0 %v24360_v16 }
0x1ce4   :  { %21595 = vmatpush3.xpose.msra.mxu0 %v24364_v40  ;;  %21612 = vmatmul.mubr.f32.vlgmr.msra.gmra.mrb[38].mxu1 %v16438_v10 }
0x1ce5   :  { %21615 = vmatpush3.xpose.msra.mxu1 %v16372_v59  ;;  %21596 = vmatprep.mubr.msk.f32.mxu0 %vm23090_vm1, %v23089_v13 }
0x1ce6   :  { %21616 = vmatprep.mubr.msk.f32.mxu1 %vm23090_vm1, %v23089_v13  ;;  %21619 = vmatprep.subr.mxu1 %v23089_v13 }
0x1ce7   :  { %21629 = vmatprep.subr.mxu0 %v23089_v13 }
0x1ceb   :  { %21597 = vmatmul.mubr.f32.vlgmr.msra.gmra.mrb[30].mxu0 %v24360_v16 }
0x1cec   :  { %21617 = vmatmul.mubr.f32.vlgmr.msra.gmra.mrb[38].mxu1 %v16439_v12  ;;  %21631 = vmatprep.mubr.msk.f32.mxu0 %vm23090_vm1, %v23089_v13 }
0x1ced   :  { %21620 = vmatpush3.xpose.msra.mxu1 %v16450_v14  ;;  %21621 = vmatprep.mubr.msk.f32.mxu1 %vm23090_vm1, %v23089_v13 }
0x1cee   :  { %21624 = vmatprep.subr.mxu1 %v23089_v13 }
0x1cf4   :  { %21622 = vmatmul.mubr.f32.vlgmr.msra.gmra.mrb[38].mxu1 %v24386_v7 }
0x1cf5   :  { %21625 = vmatpush3.xpose.msra.mxu1 %v16372_v59  ;;  %21626 = vmatprep.mubr.msk.f32.mxu1 %vm23090_vm1, %v23089_v13 }
0x1cf6   :  { %21659 = vmatprep.subr.mxu1 %v23089_v13 }
0x1cfc   :  { %21627 = vmatmul.mubr.f32.vlgmr.msra.gmra.mrb[38].mxu1 %v24386_v7 }
0x1cfd   :  { %21661 = vmatprep.mubr.msk.f32.mxu1 %vm23090_vm1, %v23089_v13 }
0x1d92   :  { %v15453_v20 = vpop.f32.mrb[28].mxu0 }
0x1d93   :  { %v21538_v22 = vpop.f32.mrb[29].mxu0 }
0x1da3   :  { %v15905_v25 = vpop.f32.mrb[36].mxu1 }
0x1da4   :  { %v21568_v21 = vpop.f32.mrb[37].mxu1 }
0x1da5   :  { %v24502_v21 = vpack.c.bf16 %v18391_v57, %v18388_v48  ;;  %v22954_v57 = vld [vmem:[#allocation5 + $0x58] sm:$0xff] }
0x1dbe   :  { %v16359_v27 = vpop.f32.mrb[30].mxu0 }
0x1dbf   :  { %v21598_v0 = vpop.f32.mrb[31].mxu0  ;;  %v16817_v28 = vsel %vm666_vm2, %v16359_v27, -inf }
0x1dc0   :  { %16818 = vmax.xlane.f32.xlu0 %v16817_v28  ;;  %v22952_v0 = vld [vmem:[#allocation5 + $0x10] sm:$0xff] }
0x1dcf   :  { %v16813_v29 = vpop.f32.mrb[38].mxu1 }
0x1dd0   :  { %v21628_v30 = vpop.f32.mrb[39].mxu1  ;;  %v16820_v31 = vsel %vm666_vm2, %v16813_v29, -inf }
0x1dd1   :  { %16821 = vmax.xlane.f32.xlu1 %v16820_v31 }
0x1de2   :  { %17291 = vrot.lane.b32.xlu1 %v23996_v41, %s23101_s23 }
0x1de6   :  { %17745 = vrot.lane.b32.xlu1 %v24310_v50, %s23086_s13 }
0x1dea   :  { %17747 = vrot.lane.b32.xlu1 %v24312_v18, %s23086_s13 }
0x1dee   :  { %17755 = vrot.lane.b32.xlu1 %v15905_v25, %s23102_s24 }
0x1df2   :  { %17780 = vrot.lane.b32.xlu1 %v22951_v15, %s23091_s3 }
0x1e4d   :  { %v16819_v38 = vpop.xlane.xlu0 %16818 }
0x1e4e   :  { %v16823_v52 = vsub.f32 %v16359_v27, %v16819_v38 }
0x1e50   :  { %v16825_v24 = vmul.f32 1.442695, %v16823_v52 }
0x1e52   :  { %22927 = vpow2.f32 %v16825_v24 }
0x1e5c   :  { %v22928_v33 = vpop.eup %22927 }
0x1e5d   :  { %v16829_v39 = vsel %vm666_vm2, %v22928_v33, 0.0 }
0x1e5e   :  { %16830 = vadd.xlane.f32.xlu0 %v16829_v39  ;;  %v16822_v41 = vpop.xlane.xlu1 %16821 }
0x1e5f   :  { %v16824_v43 = vsub.f32 %v16813_v29, %v16822_v41 }
0x1e61   :  { %v16827_v37 = vmul.f32 1.442695, %v16824_v43 }
0x1e62   :  { %v17292_v50 = vpop.permute.xlu1 %17291 }
0x1e63   :  { %22929 = vpow2.f32 %v16827_v37  ;;  %v24455_v19 = vand.u32 4294901760, %v17292_v50 }
0x1e65   :  { %21660 = vmatpush3.msra.mxu1 %v24455_v19  ;;  %v17375_v59 = vsub.f32 %v17292_v50, %v24455_v19 }
0x1e66   :  { %21664 = vmatprep.subr.mxu1 %v23089_v13  ;;  %v17746_v28 = vpop.permute.xlu1 %17745 }
0x1e67   :  { %v17376_v58 = vand.u32 4294901760, %v17375_v59  ;;  %v17767_v15 = vsel %vm666_vm2, %v24176_v54, %v17746_v28 }
0x1e69   :  { %v17377_v60 = vsub.f32 %v17375_v59, %v17376_v58 }
0x1e6a   :  { %v17748_v29 = vpop.permute.xlu1 %17747 }
0x1e6b   :  { %v17378_v25 = vand.u32 4294901760, %v17377_v60 }
0x1e6d   :  { %v22930_v18 = vpop.eup %22929 }
0x1e6e   :  { %v16832_v32 = vsel %vm666_vm2, %v22930_v18, 0.0  ;;  %v17756_v31 = vpop.permute.xlu1 %17755 }
0x1e6f   :  { %16833 = vadd.xlane.f32.xlu0 %v16832_v32 }
0x1e72   :  { %v17781_v39 = vpop.permute.xlu1 %17780 }
0x1e85   :  { %16839 = vrot.lane.b32.xlu0 %v23998_v49, %s23101_s23 }
0x1e89   :  { %17753 = vrot.lane.b32.xlu0 %v15453_v20, %s23102_s24 }
0x1eeb   :  { %v16831_v16 = vpop.xlane.xlu0 %16830 }
0x1eec   :  { %22931 = vrcp.f32 %v16831_v16 }
0x1ef6   :  { %v22932_v40 = vpop.eup %22931 }
0x1ef7   :  { %v16836_v3 = vmul.f32 %v22932_v40, %v22928_v33 }
0x1ef9   :  { %v16843_v56 = vsel %vm666_vm2, %v16836_v3, 0 }
0x1efa   :  { %v16911_v23 = vand.u32 4294901760, %v16843_v56 }
0x1efc   :  { %v16834_v4 = vpop.xlane.xlu0 %16833  ;;  %v16912_v61 = vsub.f32 %v16843_v56, %v16911_v23 }
0x1efd   :  { %22933 = vrcp.f32 %v16834_v4 }
0x1efe   :  { %v16913_v46 = vand.u32 4294901760, %v16912_v61 }
0x1f00   :  { %v16840_v1 = vpop.permute.xlu0 %16839  ;;  %v16914_v47 = vsub.f32 %v16912_v61, %v16913_v46 }
0x1f01   :  { %v16846_v5 = vand.u32 4294901760, %v16840_v1 }
0x1f02   :  { %v16915_v6 = vand.u32 4294901760, %v16914_v47 }
0x1f03   :  { %v16923_v2 = vsub.f32 %v16840_v1, %v16846_v5  ;;  %21630 = vmatpush3.msra.mxu0 %v16846_v5 }
0x1f04   :  { %21632 = vmatmul.mubr.f32.vlgmr.msra.gmra.mrb[32].mxu0 %v16915_v6  ;;  %21634 = vmatprep.subr.mxu0 %v23089_v13  ;;  %v17754_v30 = vpop.permute.xlu0 %17753 }
0x1f05   :  { %v16924_v49 = vand.u32 4294901760, %v16923_v2  ;;  %21636 = vmatprep.mubr.msk.f32.mxu0 %vm23090_vm1, %v23089_v13  ;;  %v17769_v38 = vsel %vm8024_vm4, %v17767_v15, %v17754_v30  ;;  %v19624_v30 = vld [vmem:[#allocation8 + $0x13] ss:$0 sm:$0xff] }
0x1f07   :  { %v22934_v7 = vpop.eup %22933  ;;  %v16925_v8 = vsub.f32 %v16923_v2, %v16924_v49 }
0x1f08   :  { %v16838_v10 = vmul.f32 %v22934_v7, %v22930_v18 }
0x1f09   :  { %v16926_v11 = vand.u32 4294901760, %v16925_v8 }
0x1f0a   :  { %v17295_v12 = vsel %vm666_vm2, %v16838_v10, 0 }
0x1f0b   :  { %21635 = vmatpush3.msra.mxu0 %v16926_v11  ;;  %v17363_v14 = vand.u32 4294901760, %v17295_v12 }
0x1f0c   :  { %21637 = vmatmul.mubr.f32.vlgmr.msra.gmra.mrb[32].mxu0 %v16911_v23  ;;  %21639 = vmatprep.subr.mxu0 %v23089_v13 }
0x1f0d   :  { %21640 = vmatpush3.msra.mxu0 %v16923_v2  ;;  %21641 = vmatprep.mubr.msk.f32.mxu0 %vm23090_vm1, %v23089_v13  ;;  %v17364_v9 = vsub.f32 %v17295_v12, %v17363_v14 }
0x1f0e   :  { %21644 = vmatprep.subr.mxu0 %v23089_v13 }
0x1f0f   :  { %v17365_v26 = vand.u32 4294901760, %v17364_v9 }
0x1f11   :  { %v17366_v20 = vsub.f32 %v17364_v9, %v17365_v26 }
0x1f13   :  { %v17367_v22 = vand.u32 4294901760, %v17366_v20 }
0x1f14   :  { %21642 = vmatmul.mubr.f32.vlgmr.msra.gmra.mrb[32].mxu0 %v16912_v61 }
0x1f15   :  { %21645 = vmatpush3.msra.mxu0 %v16846_v5  ;;  %21662 = vmatmul.mubr.f32.vlgmr.msra.gmra.mrb[40].mxu1 %v17367_v22 }
0x1f16   :  { %21665 = vmatpush3.msra.mxu1 %v17378_v25  ;;  %21646 = vmatprep.mubr.msk.f32.mxu0 %vm23090_vm1, %v23089_v13 }
0x1f17   :  { %21649 = vmatprep.subr.mxu0 %v23089_v13  ;;  %21666 = vmatprep.mubr.msk.f32.mxu1 %vm23090_vm1, %v23089_v13 }
0x1f18   :  { %21669 = vmatprep.subr.mxu1 %v23089_v13 }
0x1f1c   :  { %21647 = vmatmul.mubr.f32.vlgmr.msra.gmra.mrb[32].mxu0 %v16913_v46  ;;  %v17768_v46 = vsel %vm666_vm2, %v24178_v63, %v17748_v29 }
0x1f1d   :  { %21650 = vmatpush3.msra.mxu0 %v16924_v49  ;;  %21667 = vmatmul.mubr.f32.vlgmr.msra.gmra.mrb[40].mxu1 %v17363_v14  ;;  %v17770_v1 = vsel %vm8024_vm4, %v17768_v46, %v17756_v31  ;;  %v22961_v46 = vld [vmem:[#allocation7 + $0x20] sm:$0xff] }
0x1f1e   :  { %21670 = vmatpush3.msra.mxu1 %v17375_v59  ;;  %21651 = vmatprep.mubr.msk.f32.mxu0 %vm23090_vm1, %v23089_v13 }
0x1f1f   :  { %21654 = vmatprep.subr.mxu0 %v23089_v13  ;;  %21671 = vmatprep.mubr.msk.f32.mxu1 %vm23090_vm1, %v23089_v13 }
0x1f20   :  { %21674 = vmatprep.subr.mxu1 %v23089_v13 }
0x1f24   :  { %21652 = vmatmul.mubr.f32.vlgmr.msra.gmra.mrb[32].mxu0 %v16911_v23 }
0x1f25   :  { %21655 = vmatpush3.msra.mxu0 %v16846_v5  ;;  %21672 = vmatmul.mubr.f32.vlgmr.msra.gmra.mrb[40].mxu1 %v17364_v9 }
0x1f26   :  { %21675 = vmatpush3.msra.mxu1 %v24455_v19  ;;  %21656 = vmatprep.mubr.msk.f32.mxu0 %vm23090_vm1, %v23089_v13 }
0x1f27   :  { %21676 = vmatprep.mubr.msk.f32.mxu1 %vm23090_vm1, %v23089_v13  ;;  %21679 = vmatprep.subr.mxu1 %v23089_v13 }
0x1f2c   :  { %21657 = vmatmul.mubr.f32.vlgmr.msra.gmra.mrb[32].mxu0 %v16911_v23 }
0x1f2d   :  { %21677 = vmatmul.mubr.f32.vlgmr.msra.gmra.mrb[40].mxu1 %v17365_v26 }
0x1f2e   :  { %21680 = vmatpush3.msra.mxu1 %v17376_v58  ;;  %21681 = vmatprep.mubr.msk.f32.mxu1 %vm23090_vm1, %v23089_v13 }
0x1f2f   :  { %21684 = vmatprep.subr.mxu1 %v23089_v13 }
0x1f35   :  { %21682 = vmatmul.mubr.f32.vlgmr.msra.gmra.mrb[40].mxu1 %v17363_v14 }
0x1f36   :  { %21685 = vmatpush3.msra.mxu1 %v24455_v19  ;;  %21686 = vmatprep.mubr.msk.f32.mxu1 %vm23090_vm1, %v23089_v13  ;;  %v17800_v19 = vand.u32 4294901760, %v17781_v39 }
0x1f37   :  { %22272 = vmatprep.subr.bf16.mxu1 %v23911_v34 }
0x1f38   :  { %v17894_v54 = vsub.f32 %v17781_v39, %v17800_v19 }
0x1f3a   :  { %v17895_v23 = vand.u32 4294901760, %v17894_v54 }
0x1f3c   :  { %v17896_v47 = vsub.f32 %v17894_v54, %v17895_v23 }
0x1f3d   :  { %21687 = vmatmul.mubr.f32.vlgmr.msra.gmra.mrb[40].mxu1 %v17363_v14 }
0x1f3e   :  { %22274 = vmatpush3.bf16.msra.mxu1 %v23911_v34  ;;  %v17897_v10 = vand.u32 4294901760, %v17896_v47 }
0x1f3f   :  { %22276 = vmatprep.subr.bf16.mxu1 %v24502_v21 }
0x1f42   :  { %22278 = vmatpush3.bf16.msra.mxu1 %v24502_v21 }
0x1f43   :  { %22280 = vmatprep.subr.bf16.mxu1 %v23964_v62 }
0x1fff   :  { %v17287_v27 = vpop.f32.mrb[32].mxu0 }
0x2000   :  { %17761 = vrot.lane.b32.xlu0 %v17287_v27, %s23083_s26  ;;  %v21658_v13 = vpop.f32.mrb[33].mxu0 }
0x2004   :  { %17778 = vrot.lane.b32.xlu0 %v22952_v0, %s23091_s3 }
0x2008   :  { %17782 = vrot.lane.b32.xlu0 %v22953_v42, %s23091_s3 }
0x2010   :  { %v17739_v48 = vpop.f32.mrb[40].mxu1 }
0x2011   :  { %17763 = vrot.lane.b32.xlu1 %v17739_v48, %s23083_s26  ;;  %v21688_v17 = vpop.f32.mrb[41].mxu1  ;;  %s23104_s26 = smov [#allocation10]  }
0x2012   :  { %s19599_s27 = sshll.u32 %s23104_s26, 4  ;;  %s19600_s27 = int_to_ptr.vmem [resolvable:$true] %s19599_s27 }
0x2013   :  { %s23051_s0 = scalar_lea.vmem %s19600_s27, 256  ;;  %p23056_p5 = scmp.lt.s32.totalorder %s19600_s27, %s19600_s27 }
0x2014   :  { %p23052_p4 = scmp.ne.s32.totalorder %s19600_s27, %s23051_s0  ;;  %p23057_p6 = scmp.lt.s32.totalorder %s23051_s0, %s23051_s0 }
0x2015   :  { %17784 = vrot.lane.b32.xlu1 %v22954_v57, %s23091_s3 }
0x2016   :  { %p23058_p7 = por %p23057_p6, %p23056_p5 }
0x2018   :  { %p23059_p8 = pnand %p23058_p7, %p23052_p4 }
0x2072   :  { %v17762_v52 = vpop.permute.xlu0 %17761 }
0x2073   :  { %v17771_v24 = vsel %vm8027_vm3, %v17769_v38, %v17762_v52 }
0x2074   :  { %v17791_v33 = vsel %vm80_vm0, %v17771_v24, 0 }
0x2075   :  { %v24518_v41 = vand.u32 4294901760, %v17791_v33 }
0x2076   :  { %v17779_v43 = vpop.permute.xlu0 %17778 }
0x2077   :  { %v17866_v37 = vsub.f32 %v17791_v33, %v24518_v41  ;;  %v17797_v50 = vand.u32 4294901760, %v17779_v43 }
0x2079   :  { %v17867_v18 = vand.u32 4294901760, %v17866_v37  ;;  %v24521_v32 = vpack.c.bf16 %v17800_v19, %v17797_v50  ;;  %v17887_v40 = vsub.f32 %v17779_v43, %v17797_v50  ;;  %v22955_v43 = vld [vmem:[#allocation7 + $0x8] sm:$0xff]  ;;  %v22957_v50 = vld [vmem:[#allocation7 + $0x18] sm:$0xff] }
0x207a   :  { %v17783_v56 = vpop.permute.xlu0 %17782 }
0x207b   :  { %v17868_v16 = vsub.f32 %v17866_v37, %v17867_v18  ;;  %22224 = vmatprep.subr.bf16.mxu0 %v24521_v32  ;;  %v17888_v4 = vand.u32 4294901760, %v17887_v40  ;;  %v17803_v61 = vand.u32 4294901760, %v17783_v56  ;;  %v22239_v17 = vpack.c.bf16 %v17894_v54, %v17887_v40 }
0x207c   :  { %22226 = vmatpush3.bf16.msra.mxu0 %v24521_v32 }
0x207d   :  { %v17869_v3 = vand.u32 4294901760, %v17868_v16  ;;  %v17889_v6 = vsub.f32 %v17887_v40, %v17888_v4  ;;  %v17901_v49 = vsub.f32 %v17783_v56, %v17803_v61  ;;  %v22255_v28 = vpack.c.bf16 %v17895_v23, %v17888_v4 }
0x207f   :  { %21697 = vmatprep.mubr.f32.mxu0 %v17869_v3  ;;  %v17902_v12 = vand.u32 4294901760, %v17901_v49  ;;  %v17890_v58 = vand.u32 4294901760, %v17889_v6 }
0x2081   :  { %v17903_v60 = vsub.f32 %v17901_v49, %v17902_v12  ;;  %v22231_v22 = vpack.c.bf16 %v17897_v10, %v17890_v58 }
0x2083   :  { %v17764_v5 = vpop.permute.xlu1 %17763  ;;  %v17904_v0 = vand.u32 4294901760, %v17903_v60 }
0x2084   :  { %v17772_v2 = vsel %vm8027_vm3, %v17770_v1, %v17764_v5  ;;  %v22962_v1 = vld [vmem:[#allocation7 + $0x30] sm:$0xff] }
0x2085   :  { %v17794_v7 = vsel %vm80_vm0, %v17772_v2, 0 }
0x2086   :  { %v17875_v8 = vand.u32 4294901760, %v17794_v7 }
0x2087   :  { %v17785_v59 = vpop.permute.xlu1 %17784 }
0x2088   :  { %v17876_v11 = vsub.f32 %v17794_v7, %v17875_v8  ;;  %v17806_v14 = vand.u32 4294901760, %v17785_v59 }
0x208a   :  { %v17877_v9 = vand.u32 4294901760, %v17876_v11  ;;  %v22227_v26 = vpack.c.bf16 %v17806_v14, %v17803_v61  ;;  %v17908_v63 = vsub.f32 %v17785_v59, %v17806_v14  ;;  %v22960_v61 = vld [vmem:[#allocation7] sm:$0xff]  ;;  %v19625_v59 = vld [vmem:[#allocation8 + $0x14] ss:$0 sm:$0xff] }
0x208c   :  { %v17909_v20 = vand.u32 4294901760, %v17908_v63  ;;  %22228 = vmatprep.subr.bf16.mxu0 %v22227_v26  ;;  %v17878_v25 = vsub.f32 %v17876_v11, %v17877_v9  ;;  %v22243_v57 = vpack.c.bf16 %v17908_v63, %v17901_v49 }
0x208d   :  { %22230 = vmatpush3.bf16.msra.mxu0 %v22227_v26 }
0x208e   :  { %v17910_v27 = vsub.f32 %v17908_v63, %v17909_v20  ;;  %22232 = vmatprep.subr.bf16.mxu0 %v22231_v22  ;;  %v17879_v13 = vand.u32 4294901760, %v17878_v25  ;;  %v22259_v29 = vpack.c.bf16 %v17909_v20, %v17902_v12 }
0x2090   :  { %21698 = vmatmul.mubr.f32.vlgmr.msra.gmra.mrb[34].mxu0 %v17879_v13  ;;  %v17911_v42 = vand.u32 4294901760, %v17910_v27 }
0x2091   :  { %22234 = vmatpush3.bf16.msra.mxu0 %v22231_v22  ;;  %21708 = vmatprep.mubr.f32.mxu0 %v24518_v41 }
0x2092   :  { %v22235_v48 = vpack.c.bf16 %v17911_v42, %v17904_v0 }
0x2094   :  { %22236 = vmatprep.subr.bf16.mxu0 %v22235_v48 }
0x2095   :  { %22238 = vmatpush3.bf16.msra.mxu0 %v22235_v48 }
0x2096   :  { %22240 = vmatprep.subr.bf16.mxu0 %v22239_v17 }
0x2098   :  { %21709 = vmatmul.mubr.f32.vlgmr.msra.gmra.mrb[34].mxu0 %v17875_v8 }
0x2099   :  { %22242 = vmatpush3.bf16.msra.mxu0 %v22239_v17  ;;  %21719 = vmatprep.mubr.f32.mxu0 %v17866_v37  ;;  %v22956_v37 = vld [vmem:[#allocation7 + $0x10] sm:$0xff] }
0x209a   :  { %22244 = vmatprep.subr.bf16.mxu0 %v22243_v57 }
0x209d   :  { %22246 = vmatpush3.bf16.msra.mxu0 %v22243_v57 }
0x209e   :  { %22248 = vmatprep.subr.bf16.mxu0 %v24521_v32 }
0x20a0   :  { %21720 = vmatmul.mubr.f32.vlgmr.msra.gmra.mrb[34].mxu0 %v17876_v11  ;;  %v19626_v11 = vld [vmem:[#allocation8 + $0x15] ss:$0 sm:$0xff] }
0x20a1   :  { %22250 = vmatpush3.bf16.msra.mxu0 %v24521_v32  ;;  %21730 = vmatprep.mubr.f32.mxu0 %v17867_v18 }
0x20a2   :  { %22252 = vmatprep.subr.bf16.mxu0 %v22227_v26 }
0x20a5   :  { %22254 = vmatpush3.bf16.msra.mxu0 %v22227_v26 }
0x20a6   :  { %22256 = vmatprep.subr.bf16.mxu0 %v22255_v28 }
0x20a8   :  { %21731 = vmatmul.mubr.f32.vlgmr.msra.gmra.mrb[34].mxu0 %v17877_v9 }
0x20a9   :  { %22258 = vmatpush3.bf16.msra.mxu0 %v22255_v28  ;;  %21741 = vmatprep.mubr.f32.mxu0 %v24518_v41 }
0x20aa   :  { %22260 = vmatprep.subr.bf16.mxu0 %v22259_v29 }
0x20ad   :  { %22262 = vmatpush3.bf16.msra.mxu0 %v22259_v29 }
0x20ae   :  { %22264 = vmatprep.subr.bf16.mxu0 %v24521_v32 }
0x20b0   :  { %21742 = vmatmul.mubr.f32.vlgmr.msra.gmra.mrb[34].mxu0 %v17875_v8 }
0x20b1   :  { %22266 = vmatpush3.bf16.msra.mxu0 %v24521_v32  ;;  %21752 = vmatprep.mubr.f32.mxu0 %v24518_v41 }
0x20b2   :  { %22268 = vmatprep.subr.bf16.mxu0 %v22227_v26 }
0x20b5   :  { %22270 = vmatpush3.bf16.msra.mxu0 %v22227_v26 }
0x20b8   :  { %21753 = vmatmul.mubr.f32.vlgmr.msra.gmra.mrb[34].mxu0 %v17875_v8 }
0x218b   :  { %v21754_v31 = vpop.f32.mrb[34].mxu0 }
0x218c   :  { %v22427_v15 = vadd.f32 %v21754_v31, %v19624_v30  ;;  %v18314_v38 = vpop.f32.mrb[35].mxu0 }
0x218d   :  { %v22428_v52 = vadd.f32 %v19624_v30, %v18314_v38 }
0x218e   :  { %v24538_v24 = vadd.f32 %v22427_v15, %v23879_v53  ;;  %v22958_v53 = vld [vmem:[#allocation7 + $0x28] sm:$0xff] }
0x218f   :  { %v24541_v33 = vadd.f32 %v22428_v52, %v23882_v55  ;;  %v22959_v55 = vld [vmem:[#allocation7 + $0x38] sm:$0xff] }
0x2190   :  { %v18331_v39 = vsel %vm80_vm0, %v24538_v24, 0.0 }
0x2191   :  { %18332 = vadd.xlane.f32.xlu1 %v18331_v39  ;;  %v18328_v41 = vsel %vm80_vm0, %v24541_v33, 0.0 }
0x2192   :  { %18329 = vadd.xlane.f32.xlu0 %v18328_v41 }
0x21a2   :  { %18942 = vrot.lane.b32.xlu1 %v22955_v43, %s23091_s3 }
0x21a6   :  { %18944 = vrot.lane.b32.xlu1 %v22956_v37, %s23091_s3 }
0x21aa   :  { %18946 = vrot.lane.b32.xlu1 %v22957_v50, %s23091_s3 }
0x21ae   :  { %18950 = vrot.lane.b32.xlu1 %v22958_v53, %s23091_s3 }
0x21b2   :  { %18954 = vrot.lane.b32.xlu1 %v22959_v55, %s23091_s3 }
0x221e   :  { %v18333_v19 = vpop.xlane.xlu1 %18332 }
0x221f   :  { %v18335_v18 = vmul.f32 0.03125, %v18333_v19  ;;  %v18330_v32 = vpop.xlane.xlu0 %18329 }
0x2220   :  { %v18334_v16 = vmul.f32 0.03125, %v18330_v32 }
0x2221   :  { %v18337_v54 = vsub.f32 %v24538_v24, %v18335_v18 }
0x2222   :  { %v18336_v40 = vsub.f32 %v24541_v33, %v18334_v16 }
0x2223   :  { %v18339_v23 = vmul.f32 %v18337_v54, %v18337_v54 }
0x2224   :  { %v18338_v3 = vmul.f32 %v18336_v40, %v18336_v40 }
0x2225   :  { %v18343_v4 = vsel %vm80_vm0, %v18339_v23, 0.0 }
0x2226   :  { %v18340_v56 = vsel %vm80_vm0, %v18338_v3, 0.0 }
0x2227   :  { %18341 = vadd.xlane.f32.xlu0 %v18340_v56 }
0x222b   :  { %18344 = vadd.xlane.f32.xlu0 %v18343_v4 }
0x2241   :  { %18940 = vrot.lane.b32.xlu0 %v22960_v61, %s23091_s3 }
0x2245   :  { %18948 = vrot.lane.b32.xlu0 %v22961_v46, %s23091_s3 }
0x2249   :  { %18952 = vrot.lane.b32.xlu0 %v22962_v1, %s23091_s3 }
0x22b4   :  { %v18342_v47 = vpop.xlane.xlu0 %18341 }
0x22b5   :  { %v18346_v5 = vmul.f32 0.03125, %v18342_v47 }
0x22b7   :  { %v18348_v6 = vadd.f32 1e-06, %v18346_v5 }
0x22b8   :  { %v18345_v2 = vpop.xlane.xlu0 %18344 }
0x22b9   :  { %22935 = vrsqrt.f32 %v18348_v6  ;;  %v18347_v49 = vmul.f32 0.03125, %v18345_v2 }
0x22bb   :  { %v18349_v7 = vadd.f32 1e-06, %v18347_v49 }
0x22bd   :  { %22937 = vrsqrt.f32 %v18349_v7 }
0x22c3   :  { %v22936_v8 = vpop.eup %22935 }
0x22c4   :  { %v18352_v10 = vmul.f32 %v22936_v8, %v18336_v40 }
0x22c6   :  { %v18358_v12 = vmul.f32 %v19625_v59, %v18352_v10 }
0x22c7   :  { %v22938_v14 = vpop.eup %22937 }
0x22c8   :  { %v18353_v58 = vmul.f32 %v22938_v14, %v18337_v54  ;;  %v18364_v9 = vadd.f32 %v19626_v11, %v18358_v12 }
0x22ca   :  { %v18359_v26 = vmul.f32 %v19625_v59, %v18353_v58  ;;  %v18376_v63 = vsel %vm80_vm0, %v18364_v9, 0 }
0x22cb   :  { %v18450_v60 = vand.u32 4294901760, %v18376_v63 }
0x22cc   :  { %v18365_v20 = vadd.f32 %v19626_v11, %v18359_v26 }
0x22cd   :  { %v18451_v22 = vsub.f32 %v18376_v63, %v18450_v60 }
0x22ce   :  { %v18379_v25 = vsel %vm80_vm0, %v18365_v20, 0 }
0x22cf   :  { %v18452_v27 = vand.u32 4294901760, %v18451_v22  ;;  %v18460_v13 = vand.u32 4294901760, %v18379_v25 }
0x22d1   :  { %v18453_v0 = vsub.f32 %v18451_v22, %v18452_v27  ;;  %v18461_v42 = vsub.f32 %v18379_v25, %v18460_v13 }
0x22d3   :  { %v18454_v48 = vand.u32 4294901760, %v18453_v0  ;;  %v18462_v17 = vand.u32 4294901760, %v18461_v42 }
0x22d5   :  { %21763 = vmatprep.mubr.f32.mxu1 %v18454_v48  ;;  %v18463_v57 = vsub.f32 %v18461_v42, %v18462_v17 }
0x22d7   :  { %v18464_v28 = vand.u32 4294901760, %v18463_v57 }
0x22d9   :  { %21764 = vmatmul.mubr.f32.vlgmr.msra.gmra.mrb[42].mxu1 %v18464_v28 }
0x22da   :  { %22282 = vmatpush3.bf16.msra.mxu1 %v23964_v62  ;;  %21774 = vmatprep.mubr.f32.mxu1 %v18450_v60 }
0x22db   :  { %22284 = vmatprep.subr.bf16.mxu1 %v23973_v51 }
0x22de   :  { %22286 = vmatpush3.bf16.msra.mxu1 %v23973_v51 }
0x22df   :  { %22288 = vmatprep.subr.bf16.mxu1 %v23937_v44 }
0x22e1   :  { %21775 = vmatmul.mubr.f32.vlgmr.msra.gmra.mrb[42].mxu1 %v18460_v13 }
0x22e2   :  { %22290 = vmatpush3.bf16.msra.mxu1 %v23937_v44  ;;  %21785 = vmatprep.mubr.f32.mxu1 %v18451_v22  ;;  %v18943_v44 = vpop.permute.xlu1 %18942 }
0x22e3   :  { %22292 = vmatprep.subr.bf16.mxu1 %v23967_v35 }
0x22e6   :  { %22294 = vmatpush3.bf16.msra.mxu1 %v23967_v35  ;;  %v18945_v62 = vpop.permute.xlu1 %18944  ;;  %v18941_v35 = vpop.permute.xlu0 %18940 }
0x22e7   :  { %22296 = vmatprep.subr.bf16.mxu1 %v23911_v34  ;;  %v18971_v51 = vand.u32 4294901760, %v18941_v35 }
0x22e9   :  { %21786 = vmatmul.mubr.f32.vlgmr.msra.gmra.mrb[42].mxu1 %v18461_v42  ;;  %v19065_v52 = vsub.f32 %v18941_v35, %v18971_v51  ;;  %v19627_v35 = vld [vmem:[#allocation8 + $0x16] ss:$0 sm:$0xff] }
0x22ea   :  { %22298 = vmatpush3.bf16.msra.mxu1 %v23911_v34  ;;  %21796 = vmatprep.mubr.f32.mxu1 %v18452_v27  ;;  %v18947_v30 = vpop.permute.xlu1 %18946  ;;  %v18949_v38 = vpop.permute.xlu0 %18948 }
0x22eb   :  { %22300 = vmatprep.subr.bf16.mxu1 %v24502_v21  ;;  %v18980_v31 = vand.u32 4294901760, %v18947_v30  ;;  %v18983_v41 = vand.u32 4294901760, %v18949_v38  ;;  %v19066_v50 = vand.u32 4294901760, %v19065_v52 }
0x22ed   :  { %v19086_v53 = vsub.f32 %v18947_v30, %v18980_v31  ;;  %v19093_v18 = vsub.f32 %v18949_v38, %v18983_v41  ;;  %v19067_v3 = vsub.f32 %v19065_v52, %v19066_v50 }
0x22ee   :  { %22302 = vmatpush3.bf16.msra.mxu1 %v24502_v21  ;;  %v18951_v15 = vpop.permute.xlu1 %18950  ;;  %v18953_v16 = vpop.permute.xlu0 %18952 }
0x22ef   :  { %22304 = vmatprep.subr.bf16.mxu1 %v23969_v36  ;;  %v18986_v39 = vand.u32 4294901760, %v18951_v15  ;;  %v19087_v56 = vand.u32 4294901760, %v19086_v53  ;;  %v18989_v4 = vand.u32 4294901760, %v18953_v16  ;;  %v19068_v1 = vand.u32 4294901760, %v19067_v3 }
0x22f0   :  { %v19094_v8 = vand.u32 4294901760, %v19093_v18 }
0x22f1   :  { %21797 = vmatmul.mubr.f32.vlgmr.msra.gmra.mrb[42].mxu1 %v18462_v17  ;;  %v19100_v55 = vsub.f32 %v18951_v15, %v18986_v39  ;;  %v24588_v19 = vpack.c.bf16 %v18986_v39, %v18983_v41  ;;  %v19088_v46 = vsub.f32 %v19086_v53, %v19087_v56  ;;  %v19107_v11 = vsub.f32 %v18953_v16, %v18989_v4 }
0x22f2   :  { %22306 = vmatpush3.bf16.msra.mxu1 %v23969_v36  ;;  %21807 = vmatprep.mubr.f32.mxu1 %v18450_v60  ;;  %v18974_v36 = vand.u32 4294901760, %v18943_v44  ;;  %v18955_v32 = vpop.permute.xlu1 %18954 }
0x22f3   :  { %22308 = vmatprep.subr.bf16.mxu1 %v23971_v45  ;;  %v18992_v23 = vand.u32 4294901760, %v18955_v32  ;;  %v19101_v7 = vand.u32 4294901760, %v19100_v55  ;;  %v19089_v14 = vand.u32 4294901760, %v19088_v46  ;;  %v19108_v20 = vand.u32 4294901760, %v19107_v11 }
0x22f4   :  { %v24580_v29 = vpack.c.bf16 %v18974_v36, %v18971_v51  ;;  %v24607_v22 = vpack.c.bf16 %v19100_v55, %v19093_v18 }
0x22f5   :  { %v24592_v5 = vpack.c.bf16 %v18992_v23, %v18989_v4  ;;  %v19114_v59 = vsub.f32 %v18955_v32, %v18992_v23  ;;  %v19102_v63 = vsub.f32 %v19100_v55, %v19101_v7  ;;  %v19109_v27 = vsub.f32 %v19107_v11, %v19108_v20 }
0x22f6   :  { %22310 = vmatpush3.bf16.msra.mxu1 %v23971_v45  ;;  %v18977_v45 = vand.u32 4294901760, %v18945_v62  ;;  %22320 = vmatprep.subr.bf16.mxu0 %v24580_v29  ;;  %v24609_v42 = vpack.c.bf16 %v19101_v7, %v19094_v8 }
0x22f7   :  { %22312 = vmatprep.subr.bf16.mxu1 %v23911_v34  ;;  %22322 = vmatpush3.bf16.msra.mxu0 %v24580_v29  ;;  %v19115_v26 = vand.u32 4294901760, %v19114_v59  ;;  %v19103_v0 = vand.u32 4294901760, %v19102_v63  ;;  %v22363_v17 = vpack.c.bf16 %v19114_v59, %v19107_v11  ;;  %v19110_v57 = vand.u32 4294901760, %v19109_v27 }
0x22f8   :  { %v19079_v37 = vsub.f32 %v18945_v62, %v18977_v45 }
0x22f9   :  { %21808 = vmatmul.mubr.f32.vlgmr.msra.gmra.mrb[42].mxu1 %v18460_v13  ;;  %v19116_v25 = vsub.f32 %v19114_v59, %v19115_v26 }
0x22fa   :  { %22314 = vmatpush3.bf16.msra.mxu1 %v23911_v34  ;;  %21818 = vmatprep.mubr.f32.mxu1 %v18450_v60  ;;  %v24584_v34 = vpack.c.bf16 %v18980_v31, %v18977_v45  ;;  %v19080_v40 = vand.u32 4294901760, %v19079_v37  ;;  %v24598_v49 = vpack.c.bf16 %v19086_v53, %v19079_v37  ;;  %v19095_v60 = vsub.f32 %v19093_v18, %v19094_v8 }
0x22fb   :  { %22316 = vmatprep.subr.bf16.mxu1 %v24502_v21  ;;  %v19117_v28 = vand.u32 4294901760, %v19116_v25 }
0x22fc   :  { %22324 = vmatprep.subr.bf16.mxu0 %v24584_v34  ;;  %v19081_v61 = vsub.f32 %v19079_v37, %v19080_v40  ;;  %v24604_v58 = vpack.c.bf16 %v19087_v56, %v19080_v40 }
0x22fd   :  { %22326 = vmatpush3.bf16.msra.mxu0 %v24584_v34  ;;  %v22347_v62 = vpack.c.bf16 %v19117_v28, %v19110_v57  ;;  %v19629_v28 = vld [vmem:[#allocation8 + $0x18] ss:$0 sm:$0xff] }
0x22fe   :  { %22318 = vmatpush3.bf16.msra.mxu1 %v24502_v21  ;;  %v19072_v21 = vsub.f32 %v18943_v44, %v18974_v36  ;;  %22328 = vmatprep.subr.bf16.mxu0 %v24588_v19  ;;  %v19082_v12 = vand.u32 4294901760, %v19081_v61  ;;  %v24611_v44 = vpack.c.bf16 %v19115_v26, %v19108_v20 }
0x2300   :  { %v19073_v43 = vand.u32 4294901760, %v19072_v21  ;;  %v24596_v2 = vpack.c.bf16 %v19072_v21, %v19065_v52  ;;  %v22339_v9 = vpack.c.bf16 %v19089_v14, %v19082_v12 }
0x2301   :  { %21819 = vmatmul.mubr.f32.vlgmr.msra.gmra.mrb[42].mxu1 %v18460_v13  ;;  %22330 = vmatpush3.bf16.msra.mxu0 %v24588_v19  ;;  %v19096_v13 = vand.u32 4294901760, %v19095_v60 }
0x2302   :  { %v19074_v54 = vsub.f32 %v19072_v21, %v19073_v43  ;;  %22332 = vmatprep.subr.bf16.mxu0 %v24592_v5  ;;  %v24601_v10 = vpack.c.bf16 %v19073_v43, %v19066_v50 }
0x2303   :  { %v22343_v48 = vpack.c.bf16 %v19103_v0, %v19096_v13 }
0x2304   :  { %v19075_v47 = vand.u32 4294901760, %v19074_v54 }
0x2305   :  { %22334 = vmatpush3.bf16.msra.mxu0 %v24592_v5 }
0x2306   :  { %v24594_v6 = vpack.c.bf16 %v19075_v47, %v19068_v1 }
0x2308   :  { %22336 = vmatprep.subr.bf16.mxu0 %v24594_v6 }
0x23d4   :  { %v21820_v36 = vpop.f32.mrb[42].mxu1 }
0x23d5   :  { %v22429_v51 = vadd.f32 %v21820_v36, %v19627_v35  ;;  %v18899_v30 = vpop.f32.mrb[43].mxu1 }
0x23d6   :  { %v22430_v45 = vadd.f32 %v19627_v35, %v18899_v30 }
0x23d7   :  { %v18912_v31 = vmul.f32 0.044715, %v22429_v51  ;;  %v18910_v18 = vmul.f32 0.5, %v22429_v51 }
0x23d8   :  { %v18911_v15 = vmul.f32 0.044715, %v22430_v45  ;;  %v18909_v16 = vmul.f32 0.5, %v22430_v45 }
0x23d9   :  { %v18914_v38 = vmul.f32 %v22429_v51, %v18912_v31 }
0x23da   :  { %v18913_v21 = vmul.f32 %v22430_v45, %v18911_v15 }
0x23db   :  { %v18916_v52 = vmul.f32 %v22429_v51, %v18914_v38 }
0x23dc   :  { %v18915_v39 = vmul.f32 %v22430_v45, %v18913_v21 }
0x23dd   :  { %v18918_v41 = vadd.f32 %v22429_v51, %v18916_v52 }
0x23de   :  { %v18917_v43 = vadd.f32 %v22430_v45, %v18915_v39 }
0x23df   :  { %v18920_v37 = vmul.f32 0.7978846, %v18918_v41 }
0x23e0   :  { %v18919_v50 = vmul.f32 0.7978846, %v18917_v43 }
0x23e1   :  { %22939 = vtanh.f32 %v18920_v37 }
0x23e2   :  { %22941 = vtanh.f32 %v18919_v50 }
0x23eb   :  { %v22940_v53 = vpop.eup %22939 }
0x23ec   :  { %v22942_v55 = vpop.eup %22941  ;;  %v18924_v32 = vadd.f32 1.0, %v22940_v53 }
0x23ed   :  { %v18923_v54 = vadd.f32 1.0, %v22942_v55 }
0x23ee   :  { %v18926_v40 = vmul.f32 %v18924_v32, %v18910_v18 }
0x23ef   :  { %v18925_v3 = vmul.f32 %v18923_v54, %v18909_v16 }
0x23f0   :  { %v18968_v56 = vsel %vm9201_vm5, %v18926_v40, 0 }
0x23f1   :  { %v18965_v23 = vsel %vm9201_vm5, %v18925_v3, 0  ;;  %v19053_v4 = vand.u32 4294901760, %v18968_v56 }
0x23f2   :  { %v19043_v61 = vand.u32 4294901760, %v18965_v23 }
0x23f3   :  { %v19054_v46 = vsub.f32 %v18968_v56, %v19053_v4 }
0x23f4   :  { %v19044_v1 = vsub.f32 %v18965_v23, %v19043_v61 }
0x23f5   :  { %v19055_v47 = vand.u32 4294901760, %v19054_v46 }
0x23f6   :  { %v19045_v7 = vand.u32 4294901760, %v19044_v1 }
0x23f7   :  { %v19056_v8 = vsub.f32 %v19054_v46, %v19055_v47 }
0x23f8   :  { %v19046_v59 = vsub.f32 %v19044_v1, %v19045_v7 }
0x23f9   :  { %v19057_v12 = vand.u32 4294901760, %v19056_v8 }
0x23fa   :  { %v19047_v11 = vand.u32 4294901760, %v19046_v59 }
0x23fc   :  { %21837 = vmatprep.mubr.f32.mxu0 %v19047_v11 }
0x23fd   :  { %21838 = vmatmul.mubr.f32.vlgmr.msra.gmra.mrb[36].mxu0 %v19057_v12 }
0x23fe   :  { %22338 = vmatpush3.bf16.msra.mxu0 %v24594_v6  ;;  %21856 = vmatprep.mubr.f32.mxu0 %v19043_v61  ;;  %v19628_v6 = vld [vmem:[#allocation8 + $0x17] ss:$0 sm:$0xff] }
0x23ff   :  { %22340 = vmatprep.subr.bf16.mxu0 %v22339_v9 }
0x2402   :  { %22342 = vmatpush3.bf16.msra.mxu0 %v22339_v9 }
0x2403   :  { %22344 = vmatprep.subr.bf16.mxu0 %v22343_v48 }
0x2406   :  { %22346 = vmatpush3.bf16.msra.mxu0 %v22343_v48 }
0x2407   :  { %22348 = vmatprep.subr.bf16.mxu0 %v22347_v62 }
0x240a   :  { %22350 = vmatpush3.bf16.msra.mxu0 %v22347_v62  ;;  %v19630_v62 = vld [vmem:[#allocation8 + $0x19] ss:$0 sm:$0xff] }
0x240b   :  { %22352 = vmatprep.subr.bf16.mxu0 %v24596_v2 }
0x240d   :  { %21857 = vmatmul.mubr.f32.vlgmr.msra.gmra.mrb[36].mxu0 %v19053_v4 }
0x240e   :  { %22354 = vmatpush3.bf16.msra.mxu0 %v24596_v2  ;;  %21875 = vmatprep.mubr.f32.mxu0 %v19044_v1 }
0x240f   :  { %22356 = vmatprep.subr.bf16.mxu0 %v24598_v49 }
0x2412   :  { %22358 = vmatpush3.bf16.msra.mxu0 %v24598_v49 }
0x2413   :  { %22360 = vmatprep.subr.bf16.mxu0 %v24607_v22 }
0x2416   :  { %22362 = vmatpush3.bf16.msra.mxu0 %v24607_v22 }
0x2417   :  { %22364 = vmatprep.subr.bf16.mxu0 %v22363_v17 }
0x241a   :  { %22366 = vmatpush3.bf16.msra.mxu0 %v22363_v17 }
0x241b   :  { %22368 = vmatprep.subr.bf16.mxu0 %v24580_v29 }
0x241d   :  { %21876 = vmatmul.mubr.f32.vlgmr.msra.gmra.mrb[36].mxu0 %v19054_v46 }
0x241e   :  { %22370 = vmatpush3.bf16.msra.mxu0 %v24580_v29  ;;  %21894 = vmatprep.mubr.f32.mxu0 %v19045_v7 }
0x241f   :  { %22372 = vmatprep.subr.bf16.mxu0 %v24584_v34 }
0x2422   :  { %22374 = vmatpush3.bf16.msra.mxu0 %v24584_v34 }
0x2423   :  { %22376 = vmatprep.subr.bf16.mxu0 %v24588_v19 }
0x2426   :  { %22378 = vmatpush3.bf16.msra.mxu0 %v24588_v19 }
0x2427   :  { %22380 = vmatprep.subr.bf16.mxu0 %v24592_v5 }
0x242a   :  { %22382 = vmatpush3.bf16.msra.mxu0 %v24592_v5 }
0x242b   :  { %22384 = vmatprep.subr.bf16.mxu0 %v24601_v10 }
0x242d   :  { %21895 = vmatmul.mubr.f32.vlgmr.msra.gmra.mrb[36].mxu0 %v19055_v47 }
0x242e   :  { %22386 = vmatpush3.bf16.msra.mxu0 %v24601_v10  ;;  %21913 = vmatprep.mubr.f32.mxu0 %v19043_v61 }
0x242f   :  { %22388 = vmatprep.subr.bf16.mxu0 %v24604_v58 }
0x2432   :  { %22390 = vmatpush3.bf16.msra.mxu0 %v24604_v58 }
0x2433   :  { %22392 = vmatprep.subr.bf16.mxu0 %v24609_v42 }
0x2436   :  { %22394 = vmatpush3.bf16.msra.mxu0 %v24609_v42 }
0x2437   :  { %22396 = vmatprep.subr.bf16.mxu0 %v24611_v44 }
0x243a   :  { %22398 = vmatpush3.bf16.msra.mxu0 %v24611_v44 }
0x243b   :  { %22400 = vmatprep.subr.bf16.mxu0 %v24580_v29 }
0x243d   :  { %21914 = vmatmul.mubr.f32.vlgmr.msra.gmra.mrb[36].mxu0 %v19053_v4 }
0x243e   :  { %22402 = vmatpush3.bf16.msra.mxu0 %v24580_v29  ;;  %21932 = vmatprep.mubr.f32.mxu0 %v19043_v61 }
0x243f   :  { %22404 = vmatprep.subr.bf16.mxu0 %v24584_v34 }
0x2442   :  { %22406 = vmatpush3.bf16.msra.mxu0 %v24584_v34 }
0x2443   :  { %22408 = vmatprep.subr.bf16.mxu0 %v24588_v19 }
0x2446   :  { %22410 = vmatpush3.bf16.msra.mxu0 %v24588_v19 }
0x2447   :  { %22412 = vmatprep.subr.bf16.mxu0 %v24592_v5 }
0x244a   :  { %22414 = vmatpush3.bf16.msra.mxu0 %v24592_v5 }
0x244d   :  { %21933 = vmatmul.mubr.f32.vlgmr.msra.gmra.mrb[36].mxu0 %v19053_v4 }
0x2520   :  { %v21934_v2 = vpop.f32.mrb[36].mxu0 }
0x2521   :  { %v22431_v49 = vadd.f32 %v21934_v2, %v19628_v6  ;;  %v19540_v10 = vpop.f32.mrb[37].mxu0 }
0x2522   :  { %v22432_v14 = vadd.f32 %v19628_v6, %v19540_v10 }
0x2523   :  { %v19551_v29 = vadd.f32 %v22431_v49, %v24538_v24 }
0x2524   :  { %v19550_v58 = vadd.f32 %v22432_v14, %v24541_v33 }
0x2525   :  { %v19557_v34 = vsel %vm80_vm0, %v19551_v29, 0.0 }
0x2526   :  { %19558 = vadd.xlane.f32.xlu1 %v19557_v34  ;;  %v19554_v9 = vsel %vm80_vm0, %v19550_v58, 0.0 }
0x2527   :  { %19555 = vadd.xlane.f32.xlu0 %v19554_v9 }
0x25b3   :  { %v19559_v19 = vpop.xlane.xlu1 %19558 }
0x25b4   :  { %v19561_v26 = vmul.f32 0.03125, %v19559_v19  ;;  %v19556_v63 = vpop.xlane.xlu0 %19555 }
0x25b5   :  { %v19560_v5 = vmul.f32 0.03125, %v19556_v63 }
0x25b6   :  { %v19563_v60 = vsub.f32 %v19551_v29, %v19561_v26 }
0x25b7   :  { %v19562_v20 = vsub.f32 %v19550_v58, %v19560_v5 }
0x25b8   :  { %v19565_v27 = vmul.f32 %v19563_v60, %v19563_v60 }
0x25b9   :  { %v19564_v22 = vmul.f32 %v19562_v20, %v19562_v20 }
0x25ba   :  { %v19569_v24 = vsel %vm80_vm0, %v19565_v27, 0.0 }
0x25bb   :  { %v19566_v25 = vsel %vm80_vm0, %v19564_v22, 0.0 }
0x25bc   :  { %19567 = vadd.xlane.f32.xlu0 %v19566_v25 }
0x25c0   :  { %19570 = vadd.xlane.f32.xlu0 %v19569_v24 }
0x2649   :  { %v19568_v33 = vpop.xlane.xlu0 %19567 }
0x264a   :  { %v19572_v13 = vmul.f32 0.03125, %v19568_v33 }
0x264c   :  { %v19574_v0 = vadd.f32 1e-06, %v19572_v13 }
0x264d   :  { %v19571_v42 = vpop.xlane.xlu0 %19570 }
0x264e   :  { %22943 = vrsqrt.f32 %v19574_v0  ;;  %v19573_v48 = vmul.f32 0.03125, %v19571_v42 }
0x2650   :  { %v19575_v17 = vadd.f32 1e-06, %v19573_v48 }
0x2652   :  { %22945 = vrsqrt.f32 %v19575_v17 }
0x2658   :  { %v22944_v57 = vpop.eup %22943 }
0x2659   :  { %v19578_v44 = vmul.f32 %v22944_v57, %v19562_v20 }
0x265b   :  { %v19584_v35 = vmul.f32 %v19629_v28, %v19578_v44 }
0x265c   :  { %v22946_v36 = vpop.eup %22945 }
0x265d   :  { %v19579_v51 = vmul.f32 %v22946_v36, %v19563_v60  ;;  %v19590_v30 = vadd.f32 %v19630_v62, %v19584_v35 }
0x265f   :  { %v19585_v45 = vmul.f32 %v19629_v28, %v19579_v51  ;;  %19592 = vst.msk [vmem:[#allocation10] sm:$0xff] %vm80_vm0, %v19590_v30 }
0x2661   :  { %v19591_v31 = vadd.f32 %v19630_v62, %v19585_v45 }
0x2663   :  { %19593 = vst.msk [vmem:[#allocation10 + $0x8] sm:$0xff] %vm80_vm0, %v19591_v31 }
0x2664   :  { %23062 = shalt.err (!%p23059_p8)
}
0x2665   :  { %s23063_s30 = scalar_lea.hbm %s24673_s4, 256 }
0x2666   :  { %p23064_p9 = scmp.ne.s32.totalorder %s24673_s4, %s23063_s30  ;;  %p23067_p10 = scmp.lt.u32.totalorder %s23063_s30, %s24673_s4 }
0x2668   :  { %p23069_p11 = pnand %p23067_p10, %p23064_p9 }
0x266a   :  { %23072 = shalt.err (!%p23069_p11)
}
0x266b   :  { %19605 = dma.vmem_to_hbm [thread:$0]  %s19600_s27, 256, %s24673_s4, [#allocation4], %s23085_s1, %s23085_s1, %s23086_s13  }
0x266c   :  { %23079 = dma.done.wait [#allocation4], 256  }
0x266d   :  { %23080 = vsyncadd [#allocation4], 4294967040 }
0x266e   :  { %19609 = vsyncpa [#allocation3], 1 }
0x266f   :  { %19610 = vsyncpa [#allocation6], 1 }
0x2670   :  { %19611 = vsyncpa [#allocation9], 1 }
0x2671   :  { %19612 = vsyncpa [#allocation4], 1 }

</bundles_post_ra>
